<compile_context>
chip_gen: v5e
topology: v5e:2x2
jax: 0.10.0
libtpu: 0.0.40
codegen_flags: <defaults>
</compile_context>

<pallas_src>
import jax
import jax.numpy as jnp
from jax import lax
from jax.experimental import pallas as pl
from jax.experimental.pallas import tpu as pltpu

SELU_ALPHA = 1.6732632423543772848170429916717
SELU_SCALE = 1.0507009873554804934193349852946
BN_EPS = 1e-5
MATMUL_DTYPE = jnp.bfloat16  # MXU-native matmul input dtype (f32 accumulation)
LANE = 128
TARGET_M = 256               # target stacked MXU M rows per grid step


def _selu(v):
    return SELU_SCALE * jnp.where(v > 0, v, SELU_ALPHA * (jnp.exp(v) - 1.0))


def _bn_train(v3, gamma, beta, inv_batch):
    """Training-mode BatchNorm1d per mini-batch (reduce over axis=1), folded
    into a single FMA per element.  One-pass moments (E[v^2] - mean^2) keep the
    two sublane reductions independent (shorter latency chain)."""
    s1 = jnp.sum(v3, axis=1, keepdims=True)
    s2 = jnp.sum(v3 * v3, axis=1, keepdims=True)
    mean = s1 * inv_batch
    var = jnp.maximum(s2 * inv_batch - mean * mean, 0.0)
    scale = gamma * lax.rsqrt(var + BN_EPS)
    shift = beta - mean * scale
    return v3 * scale + shift


def _make_kernel(b_blk, batch):
    """Kernel factory: b_blk independent mini-batches of `batch` rows are
    stacked into one (b_blk*batch, feat) activation slab per grid step."""
    m_blk = b_blk * batch
    inv_batch = 1.0 / float(batch)

    def kernel(x_ref,
               w1_ref, b1_ref, g1_ref, be1_ref,
               w2_ref, b2_ref, g2_ref, be2_ref,
               w3_ref, b3_ref, g3_ref, be3_ref,
               w4_ref, b4_ref, g4_ref, be4_ref,
               w5_ref, b5_ref, g5_ref, be5_ref,
               wc_ref, bc_ref,
               o_ref):
        h = x_ref[...]  # (m_blk, dp) bf16 (cast in the wrapper)

        def layer(h, w_ref, b_ref, g_ref, be_ref):
            feat = w_ref.shape[1]
            # bf16 MXU matmul with f32 accumulation over the full stacked M.
            # (.astype is a no-op for layer 1 since x arrives already bf16.)
            z = jnp.dot(h.astype(MATMUL_DTYPE), w_ref[...],
                        preferred_element_type=jnp.float32) + b_ref[...]
            v3 = _selu(z).reshape(b_blk, batch, feat)      # per-mini-batch view
            out3 = _bn_train(v3, g_ref[...], be_ref[...], inv_batch)
            return out3.reshape(m_blk, feat)               # flat for next matmul

        h = layer(h, w1_ref, b1_ref, g1_ref, be1_ref)
        h = layer(h, w2_ref, b2_ref, g2_ref, be2_ref)
        h = layer(h, w3_ref, b3_ref, g3_ref, be3_ref)
        h = layer(h, w4_ref, b4_ref, g4_ref, be4_ref)
        h = layer(h, w5_ref, b5_ref, g5_ref, be5_ref)

        # Final head (output_dims == 1): VPU multiply + lane reduction instead
        # of a degenerate N=1 MXU matmul.  One store per grid step.
        o_ref[...] = jnp.sum(h * wc_ref[...], axis=-1, keepdims=True) + bc_ref[...]

    return kernel


def _round_up(n, m):
    return ((n + m - 1) // m) * m


def _pad_to(a, shape):
    return jnp.pad(a, [(0, t - s) for s, t in zip(a.shape, shape)])


def costnet_forward(x, params):
    """Runs CostNet.forward.

    x: (batch, input_dims) for a single forward pass, or
       (num_batches, batch, input_dims) for several independent forward passes
       fused into one pallas_call.  Mini-batches are stacked into the matmul M
       dimension; BatchNorm stats remain per mini-batch.
    """
    squeeze = x.ndim == 2
    if squeeze:
        x = x[None]
    num_batches, batch, in_dims = x.shape
    hid = params["w1"].shape[1]
    hid1 = params["w4"].shape[1]
    out_dims = params["wc"].shape[1]
    assert out_dims == 1, "reduce-style head is specialized for output_dims=1"

    # ---- choose stacking factor -------------------------------------------
    # Stack enough mini-batches that M ~= TARGET_M rows, but keep >= 2 grid
    # steps when possible (v7x: 2 TensorCores; axis is marked "parallel").
    b_blk = min(num_batches, max(1, TARGET_M // batch))
    if num_batches >= 2:
        b_blk = min(b_blk, (num_batches + 1) // 2)
    if (b_blk * batch) % 8 != 0:
        # (8,128) rule: row blocks must be sublane-aligned unless the block
        # covers the whole array -> fall back to a single full-extent step.
        b_blk = num_batches
    nb_pad = _round_up(num_batches, b_blk)   # pad with zero mini-batches
    grid = nb_pad // b_blk
    m_blk = b_blk * batch

    # ---- lane padding of feature dims --------------------------------------
    dp = _round_up(in_dims, LANE)    # e.g. 32  -> 128
    hp = _round_up(hid, LANE)        # e.g. 320 -> 384
    h1p = _round_up(hid1, LANE)      # e.g. 32  -> 128

    xp = jnp.pad(x, ((0, nb_pad - num_batches), (0, 0), (0, dp - in_dims)))
    xflat = xp.reshape(nb_pad * batch, dp).astype(MATMUL_DTYPE)

    def pad_w(w, rows, cols):        # zero-pad weights + cast to MXU dtype
        return _pad_to(w, (rows, cols)).astype(MATMUL_DTYPE)

    def pad_row(v, cols):
        # NOTE: zero-padding is load-bearing for gamma/beta: padded features
        # get scale=0 / shift=0, so they stay exactly 0 through every layer.
        return _pad_to(v, (1, cols)).astype(jnp.float32)

    args = (
        xflat,
        pad_w(params["w1"], dp, hp), pad_row(params["b1"], hp),
        pad_row(params["g1"], hp), pad_row(params["be1"], hp),
        pad_w(params["w2"], hp, hp), pad_row(params["b2"], hp),
        pad_row(params["g2"], hp), pad_row(params["be2"], hp),
        pad_w(params["w3"], hp, hp), pad_row(params["b3"], hp),
        pad_row(params["g3"], hp), pad_row(params["be3"], hp),
        pad_w(params["w4"], hp, h1p), pad_row(params["b4"], h1p),
        pad_row(params["g4"], h1p), pad_row(params["be4"], h1p),
        pad_w(params["w5"], h1p, h1p), pad_row(params["b5"], h1p),
        pad_row(params["g5"], h1p), pad_row(params["be5"], h1p),
        pad_row(params["wc"].T, h1p),            # (1, h1p) row for reduce head
        params["bc"].reshape(1, 1).astype(jnp.float32),
    )

    def const_spec(a):
        # Full array every grid step; constant block index -> no re-DMA between
        # grid iterations (weights stay VMEM-resident).
        return pl.BlockSpec(a.shape, lambda g, n=a.ndim: (0,) * n)

    in_specs = [pl.BlockSpec((m_blk, dp), lambda g: (g, 0))]
    in_specs += [const_spec(a) for a in args[1:]]
    out_spec = pl.BlockSpec((m_blk, 1), lambda g: (g, 0))

    out = pl.pallas_call(
        _make_kernel(b_blk, batch),
        out_shape=jax.ShapeDtypeStruct((nb_pad * batch, 1), jnp.float32),
        grid=(grid,),
        in_specs=in_specs,
        out_specs=out_spec,
        compiler_params=pltpu.CompilerParams(
            dimension_semantics=("parallel",)),
    )(*args)

    out = out.reshape(nb_pad, batch, 1)[:num_batches]
    return out[0] if squeeze else out


def init_params(key, input_dims, hidden_dims, hidden_dims1, output_dims):
    """Deterministic synthetic parameters (PyTorch Linear-style uniform init)."""
    params = {}

    def linear(key, fan_in, fan_out):
        kw, kb = jax.random.split(key)
        bound = 1.0 / (fan_in ** 0.5)
        w = jax.random.uniform(kw, (fan_in, fan_out), jnp.float32, -bound, bound)
        b = jax.random.uniform(kb, (1, fan_out), jnp.float32, -bound, bound)
        return w, b

    dims = [
        ("1", input_dims, hidden_dims),
        ("2", hidden_dims, hidden_dims),
        ("3", hidden_dims, hidden_dims),
        ("4", hidden_dims, hidden_dims1),
        ("5", hidden_dims1, hidden_dims1),
    ]
    keys = jax.random.split(key, len(dims) + 1)
    for (name, fin, fout), k in zip(dims, keys[:-1]):
        w, b = linear(k, fin, fout)
        params[f"w{name}"] = w
        params[f"b{name}"] = b
        # BatchNorm1d default init: gamma = 1, beta = 0
        params[f"g{name}"] = jnp.ones((1, fout), jnp.float32)
        params[f"be{name}"] = jnp.zeros((1, fout), jnp.float32)

    wc, bc = linear(keys[-1], hidden_dims1, output_dims)
    params["wc"] = wc
    params["bc"] = bc
    return params


def costnet_reference(x, p):
    """Pure-JAX reference for ONE mini-batch, mirroring the kernel's
    bf16-matmul / f32-accumulation policy and one-pass BN moments.
    (bf16 matmul inputs deviate slightly from PyTorch's f32 forward; drop the
    casts here and in the kernel if bit-closeness to PyTorch matters.)"""
    h = x
    for n in ("1", "2", "3", "4", "5"):
        z = jnp.dot(h.astype(MATMUL_DTYPE), p[f"w{n}"].astype(MATMUL_DTYPE),
                    preferred_element_type=jnp.float32) + p[f"b{n}"]
        v = _selu(z)
        mean = jnp.mean(v, axis=0, keepdims=True)
        var = jnp.maximum(jnp.mean(v * v, axis=0, keepdims=True) - mean * mean, 0.0)
        scale = p[f"g{n}"] * lax.rsqrt(var + BN_EPS)
        shift = p[f"be{n}"] - mean * scale
        h = v * scale + shift
    return jnp.sum(h * p["wc"].T, axis=-1, keepdims=True) + p["bc"]


if __name__ == "__main__":
    # Shapes consistent with the module: hidden_dims=320 -> hidden_dims1=32.
    num_batches = 8        # independent forward passes fused into one kernel call
    batch = 8
    input_dims = 32
    hidden_dims = 320
    hidden_dims1 = hidden_dims // 10   # math.floor(hidden_dims / 10)
    output_dims = 1

    key = jax.random.PRNGKey(0)
    kx, kp = jax.random.split(key)
    x = jax.random.normal(kx, (num_batches, batch, input_dims), jnp.float32)
    params = init_params(kp, input_dims, hidden_dims, hidden_dims1, output_dims)

    out = jax.block_until_ready(costnet_forward(x, params))
    ref = jnp.stack([costnet_reference(x[g], params) for g in range(num_batches)])

    assert out.shape == (num_batches, batch, output_dims)
    assert jnp.allclose(out, ref, atol=5e-3, rtol=5e-3), (out, ref)

    print("KERNEL_OK")
</pallas_src>

<mosaic_0001>
module attributes {stable_mosaic.version = 11 : i64} {
  func.func @kernel(%arg0: i32, %arg1: memref<32x128xbf16, #tpu.memory_space<vmem>>, %arg2: memref<128x384xbf16, #tpu.memory_space<vmem>>, %arg3: memref<1x384xf32, #tpu.memory_space<vmem>>, %arg4: memref<1x384xf32, #tpu.memory_space<vmem>>, %arg5: memref<1x384xf32, #tpu.memory_space<vmem>>, %arg6: memref<384x384xbf16, #tpu.memory_space<vmem>>, %arg7: memref<1x384xf32, #tpu.memory_space<vmem>>, %arg8: memref<1x384xf32, #tpu.memory_space<vmem>>, %arg9: memref<1x384xf32, #tpu.memory_space<vmem>>, %arg10: memref<384x384xbf16, #tpu.memory_space<vmem>>, %arg11: memref<1x384xf32, #tpu.memory_space<vmem>>, %arg12: memref<1x384xf32, #tpu.memory_space<vmem>>, %arg13: memref<1x384xf32, #tpu.memory_space<vmem>>, %arg14: memref<384x128xbf16, #tpu.memory_space<vmem>>, %arg15: memref<1x128xf32, #tpu.memory_space<vmem>>, %arg16: memref<1x128xf32, #tpu.memory_space<vmem>>, %arg17: memref<1x128xf32, #tpu.memory_space<vmem>>, %arg18: memref<128x128xbf16, #tpu.memory_space<vmem>>, %arg19: memref<1x128xf32, #tpu.memory_space<vmem>>, %arg20: memref<1x128xf32, #tpu.memory_space<vmem>>, %arg21: memref<1x128xf32, #tpu.memory_space<vmem>>, %arg22: memref<1x128xf32, #tpu.memory_space<vmem>>, %arg23: memref<1x1xf32, #tpu.memory_space<vmem>>, %arg24: memref<32x1xf32, #tpu.memory_space<vmem>>) attributes {dimension_semantics = [#tpu.dimension_semantics<parallel>], iteration_bounds = array<i64: 2>, scalar_prefetch = 0 : i64, scratch_operands = 0 : i64, tpu.core_type = #tpu.core_type<tc>, window_params = [{transform_indices = @transform_0, window_bounds = array<i64: 32, 128>}, {pipeline_mode = #tpu.pipeline_mode<synchronous>, transform_indices = @transform_1, window_bounds = array<i64: 128, 384>}, {pipeline_mode = #tpu.pipeline_mode<synchronous>, transform_indices = @transform_2, window_bounds = array<i64: 1, 384>}, {pipeline_mode = #tpu.pipeline_mode<synchronous>, transform_indices = @transform_3, window_bounds = array<i64: 1, 384>}, {pipeline_mode = #tpu.pipeline_mode<synchronous>, transform_indices = @transform_4, window_bounds = array<i64: 1, 384>}, {pipeline_mode = #tpu.pipeline_mode<synchronous>, transform_indices = @transform_5, window_bounds = array<i64: 384, 384>}, {pipeline_mode = #tpu.pipeline_mode<synchronous>, transform_indices = @transform_6, window_bounds = array<i64: 1, 384>}, {pipeline_mode = #tpu.pipeline_mode<synchronous>, transform_indices = @transform_7, window_bounds = array<i64: 1, 384>}, {pipeline_mode = #tpu.pipeline_mode<synchronous>, transform_indices = @transform_8, window_bounds = array<i64: 1, 384>}, {pipeline_mode = #tpu.pipeline_mode<synchronous>, transform_indices = @transform_9, window_bounds = array<i64: 384, 384>}, {pipeline_mode = #tpu.pipeline_mode<synchronous>, transform_indices = @transform_10, window_bounds = array<i64: 1, 384>}, {pipeline_mode = #tpu.pipeline_mode<synchronous>, transform_indices = @transform_11, window_bounds = array<i64: 1, 384>}, {pipeline_mode = #tpu.pipeline_mode<synchronous>, transform_indices = @transform_12, window_bounds = array<i64: 1, 384>}, {pipeline_mode = #tpu.pipeline_mode<synchronous>, transform_indices = @transform_13, window_bounds = array<i64: 384, 128>}, {pipeline_mode = #tpu.pipeline_mode<synchronous>, transform_indices = @transform_14, window_bounds = array<i64: 1, 128>}, {pipeline_mode = #tpu.pipeline_mode<synchronous>, transform_indices = @transform_15, window_bounds = array<i64: 1, 128>}, {pipeline_mode = #tpu.pipeline_mode<synchronous>, transform_indices = @transform_16, window_bounds = array<i64: 1, 128>}, {pipeline_mode = #tpu.pipeline_mode<synchronous>, transform_indices = @transform_17, window_bounds = array<i64: 128, 128>}, {pipeline_mode = #tpu.pipeline_mode<synchronous>, transform_indices = @transform_18, window_bounds = array<i64: 1, 128>}, {pipeline_mode = #tpu.pipeline_mode<synchronous>, transform_indices = @transform_19, window_bounds = array<i64: 1, 128>}, {pipeline_mode = #tpu.pipeline_mode<synchronous>, transform_indices = @transform_20, window_bounds = array<i64: 1, 128>}, {pipeline_mode = #tpu.pipeline_mode<synchronous>, transform_indices = @transform_21, window_bounds = array<i64: 1, 128>}, {pipeline_mode = #tpu.pipeline_mode<synchronous>, transform_indices = @transform_22, window_bounds = array<i64: 1, 1>}, {transform_indices = @transform_23, window_bounds = array<i64: 32, 1>}]} {
    %c0 = arith.constant 0 : index
    %c0_0 = arith.constant 0 : index
    %0 = vector.load %arg1[%c0, %c0_0] : memref<32x128xbf16, #tpu.memory_space<vmem>>, vector<32x128xbf16>
    %c0_1 = arith.constant 0 : index
    %c0_2 = arith.constant 0 : index
    %1 = vector.load %arg2[%c0_1, %c0_2] : memref<128x384xbf16, #tpu.memory_space<vmem>>, vector<128x384xbf16>
    %cst = arith.constant dense<0.000000e+00> : vector<32x384xf32>
    %2 = tpu.matmul %0, %1, %cst {dimension_numbers = #tpu.dot_dimension_numbers<[1], [0], [0], [1], [0, 0, 1, 1], [], []>} : vector<32x128xbf16>, vector<128x384xbf16>, vector<32x384xf32> -> vector<32x384xf32>
    %c0_3 = arith.constant 0 : index
    %c0_4 = arith.constant 0 : index
    %3 = vector.load %arg3[%c0_3, %c0_4] : memref<1x384xf32, #tpu.memory_space<vmem>>, vector<1x384xf32>
    %4 = vector.broadcast %3 : vector<1x384xf32> to vector<32x384xf32>
    %5 = arith.addf %2, %4 : vector<32x384xf32>
    %cst_5 = arith.constant 0.000000e+00 : f32
    %6 = vector.broadcast %cst_5 : f32 to vector<32x384xf32>
    %7 = arith.cmpf ogt, %5, %6 : vector<32x384xf32>
    %8 = math.exp %5 : vector<32x384xf32>
    %cst_6 = arith.constant 1.000000e+00 : f32
    %9 = vector.broadcast %cst_6 : f32 to vector<32x384xf32>
    %10 = arith.subf %8, %9 : vector<32x384xf32>
    %cst_7 = arith.constant 1.67326319 : f32
    %11 = vector.broadcast %cst_7 : f32 to vector<32x384xf32>
    %12 = arith.mulf %11, %10 : vector<32x384xf32>
    %13 = arith.select %7, %5, %12 : vector<32x384xi1>, vector<32x384xf32>
    %cst_8 = arith.constant 1.05070102 : f32
    %14 = vector.broadcast %cst_8 : f32 to vector<32x384xf32>
    %15 = arith.mulf %14, %13 : vector<32x384xf32>
    %16 = vector.shape_cast %15 : vector<32x384xf32> to vector<4x8x384xf32>
    %c0_9 = arith.constant 0 : index
    %c0_10 = arith.constant 0 : index
    %17 = vector.load %arg4[%c0_9, %c0_10] : memref<1x384xf32, #tpu.memory_space<vmem>>, vector<1x384xf32>
    %c0_11 = arith.constant 0 : index
    %c0_12 = arith.constant 0 : index
    %18 = vector.load %arg5[%c0_11, %c0_12] : memref<1x384xf32, #tpu.memory_space<vmem>>, vector<1x384xf32>
    %cst_13 = arith.constant dense<0.000000e+00> : vector<4x384xf32>
    %19 = vector.multi_reduction <add>, %16, %cst_13 [1] : vector<4x8x384xf32> to vector<4x384xf32>
    %20 = vector.shape_cast %19 : vector<4x384xf32> to vector<4x1x384xf32>
    %21 = arith.mulf %16, %16 : vector<4x8x384xf32>
    %cst_14 = arith.constant dense<0.000000e+00> : vector<4x384xf32>
    %22 = vector.multi_reduction <add>, %21, %cst_14 [1] : vector<4x8x384xf32> to vector<4x384xf32>
    %23 = vector.shape_cast %22 : vector<4x384xf32> to vector<4x1x384xf32>
    %cst_15 = arith.constant 1.250000e-01 : f32
    %24 = vector.broadcast %cst_15 : f32 to vector<4x1x384xf32>
    %25 = arith.mulf %20, %24 : vector<4x1x384xf32>
    %cst_16 = arith.constant 1.250000e-01 : f32
    %26 = vector.broadcast %cst_16 : f32 to vector<4x1x384xf32>
    %27 = arith.mulf %23, %26 : vector<4x1x384xf32>
    %28 = arith.mulf %25, %25 : vector<4x1x384xf32>
    %29 = arith.subf %27, %28 : vector<4x1x384xf32>
    %cst_17 = arith.constant 0.000000e+00 : f32
    %30 = vector.broadcast %cst_17 : f32 to vector<4x1x384xf32>
    %31 = arith.maximumf %29, %30 : vector<4x1x384xf32>
    %cst_18 = arith.constant 9.99999974E-6 : f32
    %32 = vector.broadcast %cst_18 : f32 to vector<4x1x384xf32>
    %33 = arith.addf %31, %32 : vector<4x1x384xf32>
    %34 = math.rsqrt %33 : vector<4x1x384xf32>
    %35 = vector.shape_cast %17 : vector<1x384xf32> to vector<1x1x384xf32>
    %36 = vector.broadcast %35 : vector<1x1x384xf32> to vector<4x1x384xf32>
    %37 = arith.mulf %36, %34 : vector<4x1x384xf32>
    %38 = arith.mulf %25, %37 : vector<4x1x384xf32>
    %39 = vector.shape_cast %18 : vector<1x384xf32> to vector<1x1x384xf32>
    %40 = vector.broadcast %39 : vector<1x1x384xf32> to vector<4x1x384xf32>
    %41 = arith.subf %40, %38 : vector<4x1x384xf32>
    %42 = vector.broadcast %37 : vector<4x1x384xf32> to vector<4x8x384xf32>
    %43 = arith.mulf %16, %42 : vector<4x8x384xf32>
    %44 = vector.broadcast %41 : vector<4x1x384xf32> to vector<4x8x384xf32>
    %45 = arith.addf %43, %44 : vector<4x8x384xf32>
    %46 = vector.shape_cast %45 : vector<4x8x384xf32> to vector<32x384xf32>
    %47 = arith.truncf %46 : vector<32x384xf32> to vector<32x384xbf16>
    %c0_19 = arith.constant 0 : index
    %c0_20 = arith.constant 0 : index
    %48 = vector.load %arg6[%c0_19, %c0_20] : memref<384x384xbf16, #tpu.memory_space<vmem>>, vector<384x384xbf16>
    %cst_21 = arith.constant dense<0.000000e+00> : vector<32x384xf32>
    %49 = tpu.matmul %47, %48, %cst_21 {dimension_numbers = #tpu.dot_dimension_numbers<[1], [0], [0], [1], [0, 0, 1, 1], [], []>} : vector<32x384xbf16>, vector<384x384xbf16>, vector<32x384xf32> -> vector<32x384xf32>
    %c0_22 = arith.constant 0 : index
    %c0_23 = arith.constant 0 : index
    %50 = vector.load %arg7[%c0_22, %c0_23] : memref<1x384xf32, #tpu.memory_space<vmem>>, vector<1x384xf32>
    %51 = vector.broadcast %50 : vector<1x384xf32> to vector<32x384xf32>
    %52 = arith.addf %49, %51 : vector<32x384xf32>
    %cst_24 = arith.constant 0.000000e+00 : f32
    %53 = vector.broadcast %cst_24 : f32 to vector<32x384xf32>
    %54 = arith.cmpf ogt, %52, %53 : vector<32x384xf32>
    %55 = math.exp %52 : vector<32x384xf32>
    %cst_25 = arith.constant 1.000000e+00 : f32
    %56 = vector.broadcast %cst_25 : f32 to vector<32x384xf32>
    %57 = arith.subf %55, %56 : vector<32x384xf32>
    %cst_26 = arith.constant 1.67326319 : f32
    %58 = vector.broadcast %cst_26 : f32 to vector<32x384xf32>
    %59 = arith.mulf %58, %57 : vector<32x384xf32>
    %60 = arith.select %54, %52, %59 : vector<32x384xi1>, vector<32x384xf32>
    %cst_27 = arith.constant 1.05070102 : f32
    %61 = vector.broadcast %cst_27 : f32 to vector<32x384xf32>
    %62 = arith.mulf %61, %60 : vector<32x384xf32>
    %63 = vector.shape_cast %62 : vector<32x384xf32> to vector<4x8x384xf32>
    %c0_28 = arith.constant 0 : index
    %c0_29 = arith.constant 0 : index
    %64 = vector.load %arg8[%c0_28, %c0_29] : memref<1x384xf32, #tpu.memory_space<vmem>>, vector<1x384xf32>
    %c0_30 = arith.constant 0 : index
    %c0_31 = arith.constant 0 : index
    %65 = vector.load %arg9[%c0_30, %c0_31] : memref<1x384xf32, #tpu.memory_space<vmem>>, vector<1x384xf32>
    %cst_32 = arith.constant dense<0.000000e+00> : vector<4x384xf32>
    %66 = vector.multi_reduction <add>, %63, %cst_32 [1] : vector<4x8x384xf32> to vector<4x384xf32>
    %67 = vector.shape_cast %66 : vector<4x384xf32> to vector<4x1x384xf32>
    %68 = arith.mulf %63, %63 : vector<4x8x384xf32>
    %cst_33 = arith.constant dense<0.000000e+00> : vector<4x384xf32>
    %69 = vector.multi_reduction <add>, %68, %cst_33 [1] : vector<4x8x384xf32> to vector<4x384xf32>
    %70 = vector.shape_cast %69 : vector<4x384xf32> to vector<4x1x384xf32>
    %cst_34 = arith.constant 1.250000e-01 : f32
    %71 = vector.broadcast %cst_34 : f32 to vector<4x1x384xf32>
    %72 = arith.mulf %67, %71 : vector<4x1x384xf32>
    %cst_35 = arith.constant 1.250000e-01 : f32
    %73 = vector.broadcast %cst_35 : f32 to vector<4x1x384xf32>
    %74 = arith.mulf %70, %73 : vector<4x1x384xf32>
    %75 = arith.mulf %72, %72 : vector<4x1x384xf32>
    %76 = arith.subf %74, %75 : vector<4x1x384xf32>
    %cst_36 = arith.constant 0.000000e+00 : f32
    %77 = vector.broadcast %cst_36 : f32 to vector<4x1x384xf32>
    %78 = arith.maximumf %76, %77 : vector<4x1x384xf32>
    %cst_37 = arith.constant 9.99999974E-6 : f32
    %79 = vector.broadcast %cst_37 : f32 to vector<4x1x384xf32>
    %80 = arith.addf %78, %79 : vector<4x1x384xf32>
    %81 = math.rsqrt %80 : vector<4x1x384xf32>
    %82 = vector.shape_cast %64 : vector<1x384xf32> to vector<1x1x384xf32>
    %83 = vector.broadcast %82 : vector<1x1x384xf32> to vector<4x1x384xf32>
    %84 = arith.mulf %83, %81 : vector<4x1x384xf32>
    %85 = arith.mulf %72, %84 : vector<4x1x384xf32>
    %86 = vector.shape_cast %65 : vector<1x384xf32> to vector<1x1x384xf32>
    %87 = vector.broadcast %86 : vector<1x1x384xf32> to vector<4x1x384xf32>
    %88 = arith.subf %87, %85 : vector<4x1x384xf32>
    %89 = vector.broadcast %84 : vector<4x1x384xf32> to vector<4x8x384xf32>
    %90 = arith.mulf %63, %89 : vector<4x8x384xf32>
    %91 = vector.broadcast %88 : vector<4x1x384xf32> to vector<4x8x384xf32>
    %92 = arith.addf %90, %91 : vector<4x8x384xf32>
    %93 = vector.shape_cast %92 : vector<4x8x384xf32> to vector<32x384xf32>
    %94 = arith.truncf %93 : vector<32x384xf32> to vector<32x384xbf16>
    %c0_38 = arith.constant 0 : index
    %c0_39 = arith.constant 0 : index
    %95 = vector.load %arg10[%c0_38, %c0_39] : memref<384x384xbf16, #tpu.memory_space<vmem>>, vector<384x384xbf16>
    %cst_40 = arith.constant dense<0.000000e+00> : vector<32x384xf32>
    %96 = tpu.matmul %94, %95, %cst_40 {dimension_numbers = #tpu.dot_dimension_numbers<[1], [0], [0], [1], [0, 0, 1, 1], [], []>} : vector<32x384xbf16>, vector<384x384xbf16>, vector<32x384xf32> -> vector<32x384xf32>
    %c0_41 = arith.constant 0 : index
    %c0_42 = arith.constant 0 : index
    %97 = vector.load %arg11[%c0_41, %c0_42] : memref<1x384xf32, #tpu.memory_space<vmem>>, vector<1x384xf32>
    %98 = vector.broadcast %97 : vector<1x384xf32> to vector<32x384xf32>
    %99 = arith.addf %96, %98 : vector<32x384xf32>
    %cst_43 = arith.constant 0.000000e+00 : f32
    %100 = vector.broadcast %cst_43 : f32 to vector<32x384xf32>
    %101 = arith.cmpf ogt, %99, %100 : vector<32x384xf32>
    %102 = math.exp %99 : vector<32x384xf32>
    %cst_44 = arith.constant 1.000000e+00 : f32
    %103 = vector.broadcast %cst_44 : f32 to vector<32x384xf32>
    %104 = arith.subf %102, %103 : vector<32x384xf32>
    %cst_45 = arith.constant 1.67326319 : f32
    %105 = vector.broadcast %cst_45 : f32 to vector<32x384xf32>
    %106 = arith.mulf %105, %104 : vector<32x384xf32>
    %107 = arith.select %101, %99, %106 : vector<32x384xi1>, vector<32x384xf32>
    %cst_46 = arith.constant 1.05070102 : f32
    %108 = vector.broadcast %cst_46 : f32 to vector<32x384xf32>
    %109 = arith.mulf %108, %107 : vector<32x384xf32>
    %110 = vector.shape_cast %109 : vector<32x384xf32> to vector<4x8x384xf32>
    %c0_47 = arith.constant 0 : index
    %c0_48 = arith.constant 0 : index
    %111 = vector.load %arg12[%c0_47, %c0_48] : memref<1x384xf32, #tpu.memory_space<vmem>>, vector<1x384xf32>
    %c0_49 = arith.constant 0 : index
    %c0_50 = arith.constant 0 : index
    %112 = vector.load %arg13[%c0_49, %c0_50] : memref<1x384xf32, #tpu.memory_space<vmem>>, vector<1x384xf32>
    %cst_51 = arith.constant dense<0.000000e+00> : vector<4x384xf32>
    %113 = vector.multi_reduction <add>, %110, %cst_51 [1] : vector<4x8x384xf32> to vector<4x384xf32>
    %114 = vector.shape_cast %113 : vector<4x384xf32> to vector<4x1x384xf32>
    %115 = arith.mulf %110, %110 : vector<4x8x384xf32>
    %cst_52 = arith.constant dense<0.000000e+00> : vector<4x384xf32>
    %116 = vector.multi_reduction <add>, %115, %cst_52 [1] : vector<4x8x384xf32> to vector<4x384xf32>
    %117 = vector.shape_cast %116 : vector<4x384xf32> to vector<4x1x384xf32>
    %cst_53 = arith.constant 1.250000e-01 : f32
    %118 = vector.broadcast %cst_53 : f32 to vector<4x1x384xf32>
    %119 = arith.mulf %114, %118 : vector<4x1x384xf32>
    %cst_54 = arith.constant 1.250000e-01 : f32
    %120 = vector.broadcast %cst_54 : f32 to vector<4x1x384xf32>
    %121 = arith.mulf %117, %120 : vector<4x1x384xf32>
    %122 = arith.mulf %119, %119 : vector<4x1x384xf32>
    %123 = arith.subf %121, %122 : vector<4x1x384xf32>
    %cst_55 = arith.constant 0.000000e+00 : f32
    %124 = vector.broadcast %cst_55 : f32 to vector<4x1x384xf32>
    %125 = arith.maximumf %123, %124 : vector<4x1x384xf32>
    %cst_56 = arith.constant 9.99999974E-6 : f32
    %126 = vector.broadcast %cst_56 : f32 to vector<4x1x384xf32>
    %127 = arith.addf %125, %126 : vector<4x1x384xf32>
    %128 = math.rsqrt %127 : vector<4x1x384xf32>
    %129 = vector.shape_cast %111 : vector<1x384xf32> to vector<1x1x384xf32>
    %130 = vector.broadcast %129 : vector<1x1x384xf32> to vector<4x1x384xf32>
    %131 = arith.mulf %130, %128 : vector<4x1x384xf32>
    %132 = arith.mulf %119, %131 : vector<4x1x384xf32>
    %133 = vector.shape_cast %112 : vector<1x384xf32> to vector<1x1x384xf32>
    %134 = vector.broadcast %133 : vector<1x1x384xf32> to vector<4x1x384xf32>
    %135 = arith.subf %134, %132 : vector<4x1x384xf32>
    %136 = vector.broadcast %131 : vector<4x1x384xf32> to vector<4x8x384xf32>
    %137 = arith.mulf %110, %136 : vector<4x8x384xf32>
    %138 = vector.broadcast %135 : vector<4x1x384xf32> to vector<4x8x384xf32>
    %139 = arith.addf %137, %138 : vector<4x8x384xf32>
    %140 = vector.shape_cast %139 : vector<4x8x384xf32> to vector<32x384xf32>
    %141 = arith.truncf %140 : vector<32x384xf32> to vector<32x384xbf16>
    %c0_57 = arith.constant 0 : index
    %c0_58 = arith.constant 0 : index
    %142 = vector.load %arg14[%c0_57, %c0_58] : memref<384x128xbf16, #tpu.memory_space<vmem>>, vector<384x128xbf16>
    %cst_59 = arith.constant dense<0.000000e+00> : vector<32x128xf32>
    %143 = tpu.matmul %141, %142, %cst_59 {dimension_numbers = #tpu.dot_dimension_numbers<[1], [0], [0], [1], [0, 0, 1, 1], [], []>} : vector<32x384xbf16>, vector<384x128xbf16>, vector<32x128xf32> -> vector<32x128xf32>
    %c0_60 = arith.constant 0 : index
    %c0_61 = arith.constant 0 : index
    %144 = vector.load %arg15[%c0_60, %c0_61] : memref<1x128xf32, #tpu.memory_space<vmem>>, vector<1x128xf32>
    %145 = vector.broadcast %144 : vector<1x128xf32> to vector<32x128xf32>
    %146 = arith.addf %143, %145 : vector<32x128xf32>
    %cst_62 = arith.constant 0.000000e+00 : f32
    %147 = vector.broadcast %cst_62 : f32 to vector<32x128xf32>
    %148 = arith.cmpf ogt, %146, %147 : vector<32x128xf32>
    %149 = math.exp %146 : vector<32x128xf32>
    %cst_63 = arith.constant 1.000000e+00 : f32
    %150 = vector.broadcast %cst_63 : f32 to vector<32x128xf32>
    %151 = arith.subf %149, %150 : vector<32x128xf32>
    %cst_64 = arith.constant 1.67326319 : f32
    %152 = vector.broadcast %cst_64 : f32 to vector<32x128xf32>
    %153 = arith.mulf %152, %151 : vector<32x128xf32>
    %154 = arith.select %148, %146, %153 : vector<32x128xi1>, vector<32x128xf32>
    %cst_65 = arith.constant 1.05070102 : f32
    %155 = vector.broadcast %cst_65 : f32 to vector<32x128xf32>
    %156 = arith.mulf %155, %154 : vector<32x128xf32>
    %157 = vector.shape_cast %156 : vector<32x128xf32> to vector<4x8x128xf32>
    %c0_66 = arith.constant 0 : index
    %c0_67 = arith.constant 0 : index
    %158 = vector.load %arg16[%c0_66, %c0_67] : memref<1x128xf32, #tpu.memory_space<vmem>>, vector<1x128xf32>
    %c0_68 = arith.constant 0 : index
    %c0_69 = arith.constant 0 : index
    %159 = vector.load %arg17[%c0_68, %c0_69] : memref<1x128xf32, #tpu.memory_space<vmem>>, vector<1x128xf32>
    %cst_70 = arith.constant dense<0.000000e+00> : vector<4x128xf32>
    %160 = vector.multi_reduction <add>, %157, %cst_70 [1] : vector<4x8x128xf32> to vector<4x128xf32>
    %161 = vector.shape_cast %160 : vector<4x128xf32> to vector<4x1x128xf32>
    %162 = arith.mulf %157, %157 : vector<4x8x128xf32>
    %cst_71 = arith.constant dense<0.000000e+00> : vector<4x128xf32>
    %163 = vector.multi_reduction <add>, %162, %cst_71 [1] : vector<4x8x128xf32> to vector<4x128xf32>
    %164 = vector.shape_cast %163 : vector<4x128xf32> to vector<4x1x128xf32>
    %cst_72 = arith.constant 1.250000e-01 : f32
    %165 = vector.broadcast %cst_72 : f32 to vector<4x1x128xf32>
    %166 = arith.mulf %161, %165 : vector<4x1x128xf32>
    %cst_73 = arith.constant 1.250000e-01 : f32
    %167 = vector.broadcast %cst_73 : f32 to vector<4x1x128xf32>
    %168 = arith.mulf %164, %167 : vector<4x1x128xf32>
    %169 = arith.mulf %166, %166 : vector<4x1x128xf32>
    %170 = arith.subf %168, %169 : vector<4x1x128xf32>
    %cst_74 = arith.constant 0.000000e+00 : f32
    %171 = vector.broadcast %cst_74 : f32 to vector<4x1x128xf32>
    %172 = arith.maximumf %170, %171 : vector<4x1x128xf32>
    %cst_75 = arith.constant 9.99999974E-6 : f32
    %173 = vector.broadcast %cst_75 : f32 to vector<4x1x128xf32>
    %174 = arith.addf %172, %173 : vector<4x1x128xf32>
    %175 = math.rsqrt %174 : vector<4x1x128xf32>
    %176 = vector.shape_cast %158 : vector<1x128xf32> to vector<1x1x128xf32>
    %177 = vector.broadcast %176 : vector<1x1x128xf32> to vector<4x1x128xf32>
    %178 = arith.mulf %177, %175 : vector<4x1x128xf32>
    %179 = arith.mulf %166, %178 : vector<4x1x128xf32>
    %180 = vector.shape_cast %159 : vector<1x128xf32> to vector<1x1x128xf32>
    %181 = vector.broadcast %180 : vector<1x1x128xf32> to vector<4x1x128xf32>
    %182 = arith.subf %181, %179 : vector<4x1x128xf32>
    %183 = vector.broadcast %178 : vector<4x1x128xf32> to vector<4x8x128xf32>
    %184 = arith.mulf %157, %183 : vector<4x8x128xf32>
    %185 = vector.broadcast %182 : vector<4x1x128xf32> to vector<4x8x128xf32>
    %186 = arith.addf %184, %185 : vector<4x8x128xf32>
    %187 = vector.shape_cast %186 : vector<4x8x128xf32> to vector<32x128xf32>
    %188 = arith.truncf %187 : vector<32x128xf32> to vector<32x128xbf16>
    %c0_76 = arith.constant 0 : index
    %c0_77 = arith.constant 0 : index
    %189 = vector.load %arg18[%c0_76, %c0_77] : memref<128x128xbf16, #tpu.memory_space<vmem>>, vector<128x128xbf16>
    %cst_78 = arith.constant dense<0.000000e+00> : vector<32x128xf32>
    %190 = tpu.matmul %188, %189, %cst_78 {dimension_numbers = #tpu.dot_dimension_numbers<[1], [0], [0], [1], [0, 0, 1, 1], [], []>} : vector<32x128xbf16>, vector<128x128xbf16>, vector<32x128xf32> -> vector<32x128xf32>
    %c0_79 = arith.constant 0 : index
    %c0_80 = arith.constant 0 : index
    %191 = vector.load %arg19[%c0_79, %c0_80] : memref<1x128xf32, #tpu.memory_space<vmem>>, vector<1x128xf32>
    %192 = vector.broadcast %191 : vector<1x128xf32> to vector<32x128xf32>
    %193 = arith.addf %190, %192 : vector<32x128xf32>
    %cst_81 = arith.constant 0.000000e+00 : f32
    %194 = vector.broadcast %cst_81 : f32 to vector<32x128xf32>
    %195 = arith.cmpf ogt, %193, %194 : vector<32x128xf32>
    %196 = math.exp %193 : vector<32x128xf32>
    %cst_82 = arith.constant 1.000000e+00 : f32
    %197 = vector.broadcast %cst_82 : f32 to vector<32x128xf32>
    %198 = arith.subf %196, %197 : vector<32x128xf32>
    %cst_83 = arith.constant 1.67326319 : f32
    %199 = vector.broadcast %cst_83 : f32 to vector<32x128xf32>
    %200 = arith.mulf %199, %198 : vector<32x128xf32>
    %201 = arith.select %195, %193, %200 : vector<32x128xi1>, vector<32x128xf32>
    %cst_84 = arith.constant 1.05070102 : f32
    %202 = vector.broadcast %cst_84 : f32 to vector<32x128xf32>
    %203 = arith.mulf %202, %201 : vector<32x128xf32>
    %204 = vector.shape_cast %203 : vector<32x128xf32> to vector<4x8x128xf32>
    %c0_85 = arith.constant 0 : index
    %c0_86 = arith.constant 0 : index
    %205 = vector.load %arg20[%c0_85, %c0_86] : memref<1x128xf32, #tpu.memory_space<vmem>>, vector<1x128xf32>
    %c0_87 = arith.constant 0 : index
    %c0_88 = arith.constant 0 : index
    %206 = vector.load %arg21[%c0_87, %c0_88] : memref<1x128xf32, #tpu.memory_space<vmem>>, vector<1x128xf32>
    %cst_89 = arith.constant dense<0.000000e+00> : vector<4x128xf32>
    %207 = vector.multi_reduction <add>, %204, %cst_89 [1] : vector<4x8x128xf32> to vector<4x128xf32>
    %208 = vector.shape_cast %207 : vector<4x128xf32> to vector<4x1x128xf32>
    %209 = arith.mulf %204, %204 : vector<4x8x128xf32>
    %cst_90 = arith.constant dense<0.000000e+00> : vector<4x128xf32>
    %210 = vector.multi_reduction <add>, %209, %cst_90 [1] : vector<4x8x128xf32> to vector<4x128xf32>
    %211 = vector.shape_cast %210 : vector<4x128xf32> to vector<4x1x128xf32>
    %cst_91 = arith.constant 1.250000e-01 : f32
    %212 = vector.broadcast %cst_91 : f32 to vector<4x1x128xf32>
    %213 = arith.mulf %208, %212 : vector<4x1x128xf32>
    %cst_92 = arith.constant 1.250000e-01 : f32
    %214 = vector.broadcast %cst_92 : f32 to vector<4x1x128xf32>
    %215 = arith.mulf %211, %214 : vector<4x1x128xf32>
    %216 = arith.mulf %213, %213 : vector<4x1x128xf32>
    %217 = arith.subf %215, %216 : vector<4x1x128xf32>
    %cst_93 = arith.constant 0.000000e+00 : f32
    %218 = vector.broadcast %cst_93 : f32 to vector<4x1x128xf32>
    %219 = arith.maximumf %217, %218 : vector<4x1x128xf32>
    %cst_94 = arith.constant 9.99999974E-6 : f32
    %220 = vector.broadcast %cst_94 : f32 to vector<4x1x128xf32>
    %221 = arith.addf %219, %220 : vector<4x1x128xf32>
    %222 = math.rsqrt %221 : vector<4x1x128xf32>
    %223 = vector.shape_cast %205 : vector<1x128xf32> to vector<1x1x128xf32>
    %224 = vector.broadcast %223 : vector<1x1x128xf32> to vector<4x1x128xf32>
    %225 = arith.mulf %224, %222 : vector<4x1x128xf32>
    %226 = arith.mulf %213, %225 : vector<4x1x128xf32>
    %227 = vector.shape_cast %206 : vector<1x128xf32> to vector<1x1x128xf32>
    %228 = vector.broadcast %227 : vector<1x1x128xf32> to vector<4x1x128xf32>
    %229 = arith.subf %228, %226 : vector<4x1x128xf32>
    %230 = vector.broadcast %225 : vector<4x1x128xf32> to vector<4x8x128xf32>
    %231 = arith.mulf %204, %230 : vector<4x8x128xf32>
    %232 = vector.broadcast %229 : vector<4x1x128xf32> to vector<4x8x128xf32>
    %233 = arith.addf %231, %232 : vector<4x8x128xf32>
    %234 = vector.shape_cast %233 : vector<4x8x128xf32> to vector<32x128xf32>
    %c0_95 = arith.constant 0 : index
    %c0_96 = arith.constant 0 : index
    %235 = vector.load %arg22[%c0_95, %c0_96] : memref<1x128xf32, #tpu.memory_space<vmem>>, vector<1x128xf32>
    %236 = vector.broadcast %235 : vector<1x128xf32> to vector<32x128xf32>
    %237 = arith.mulf %234, %236 : vector<32x128xf32>
    %cst_97 = arith.constant dense<0.000000e+00> : vector<32xf32>
    %238 = vector.multi_reduction <add>, %237, %cst_97 [1] : vector<32x128xf32> to vector<32xf32>
    %239 = vector.shape_cast %238 : vector<32xf32> to vector<32x1xf32>
    %c0_98 = arith.constant 0 : index
    %c0_99 = arith.constant 0 : index
    %240 = vector.load %arg23[%c0_98, %c0_99] : memref<1x1xf32, #tpu.memory_space<vmem>>, vector<1x1xf32>
    %241 = vector.broadcast %240 : vector<1x1xf32> to vector<32x1xf32>
    %242 = arith.addf %239, %241 : vector<32x1xf32>
    %c0_100 = arith.constant 0 : index
    %c0_101 = arith.constant 0 : index
    %243 = vector.load %arg24[%c0_100, %c0_101] : memref<32x1xf32, #tpu.memory_space<vmem>>, vector<32x1xf32>
    tpu.vector_store %arg24[%c0_100, %c0_101], %242 {strides = array<i32>} : memref<32x1xf32, #tpu.memory_space<vmem>>, vector<32x1xf32>,
    return
  }
  func.func @transform_0(%arg0: i32) -> (i32, i32) {
    %c0_i32 = arith.constant 0 : i32
    %c0_i32_0 = arith.constant 0 : i32
    return %arg0, %c0_i32 : i32, i32
  }
  func.func @transform_1(%arg0: i32) -> (i32, i32) {
    %c0_i32 = arith.constant 0 : i32
    %c0_i32_0 = arith.constant 0 : i32
    %c0_i32_1 = arith.constant 0 : i32
    return %c0_i32, %c0_i32_0 : i32, i32
  }
  func.func @transform_2(%arg0: i32) -> (i32, i32) {
    %c0_i32 = arith.constant 0 : i32
    %c0_i32_0 = arith.constant 0 : i32
    %c0_i32_1 = arith.constant 0 : i32
    return %c0_i32, %c0_i32_0 : i32, i32
  }
  func.func @transform_3(%arg0: i32) -> (i32, i32) {
    %c0_i32 = arith.constant 0 : i32
    %c0_i32_0 = arith.constant 0 : i32
    %c0_i32_1 = arith.constant 0 : i32
    return %c0_i32, %c0_i32_0 : i32, i32
  }
  func.func @transform_4(%arg0: i32) -> (i32, i32) {
    %c0_i32 = arith.constant 0 : i32
    %c0_i32_0 = arith.constant 0 : i32
    %c0_i32_1 = arith.constant 0 : i32
    return %c0_i32, %c0_i32_0 : i32, i32
  }
  func.func @transform_5(%arg0: i32) -> (i32, i32) {
    %c0_i32 = arith.constant 0 : i32
    %c0_i32_0 = arith.constant 0 : i32
    %c0_i32_1 = arith.constant 0 : i32
    return %c0_i32, %c0_i32_0 : i32, i32
  }
  func.func @transform_6(%arg0: i32) -> (i32, i32) {
    %c0_i32 = arith.constant 0 : i32
    %c0_i32_0 = arith.constant 0 : i32
    %c0_i32_1 = arith.constant 0 : i32
    return %c0_i32, %c0_i32_0 : i32, i32
  }
  func.func @transform_7(%arg0: i32) -> (i32, i32) {
    %c0_i32 = arith.constant 0 : i32
    %c0_i32_0 = arith.constant 0 : i32
    %c0_i32_1 = arith.constant 0 : i32
    return %c0_i32, %c0_i32_0 : i32, i32
  }
  func.func @transform_8(%arg0: i32) -> (i32, i32) {
    %c0_i32 = arith.constant 0 : i32
    %c0_i32_0 = arith.constant 0 : i32
    %c0_i32_1 = arith.constant 0 : i32
    return %c0_i32, %c0_i32_0 : i32, i32
  }
  func.func @transform_9(%arg0: i32) -> (i32, i32) {
    %c0_i32 = arith.constant 0 : i32
    %c0_i32_0 = arith.constant 0 : i32
    %c0_i32_1 = arith.constant 0 : i32
    return %c0_i32, %c0_i32_0 : i32, i32
  }
  func.func @transform_10(%arg0: i32) -> (i32, i32) {
    %c0_i32 = arith.constant 0 : i32
    %c0_i32_0 = arith.constant 0 : i32
    %c0_i32_1 = arith.constant 0 : i32
    return %c0_i32, %c0_i32_0 : i32, i32
  }
  func.func @transform_11(%arg0: i32) -> (i32, i32) {
    %c0_i32 = arith.constant 0 : i32
    %c0_i32_0 = arith.constant 0 : i32
    %c0_i32_1 = arith.constant 0 : i32
    return %c0_i32, %c0_i32_0 : i32, i32
  }
  func.func @transform_12(%arg0: i32) -> (i32, i32) {
    %c0_i32 = arith.constant 0 : i32
    %c0_i32_0 = arith.constant 0 : i32
    %c0_i32_1 = arith.constant 0 : i32
    return %c0_i32, %c0_i32_0 : i32, i32
  }
  func.func @transform_13(%arg0: i32) -> (i32, i32) {
    %c0_i32 = arith.constant 0 : i32
    %c0_i32_0 = arith.constant 0 : i32
    %c0_i32_1 = arith.constant 0 : i32
    return %c0_i32, %c0_i32_0 : i32, i32
  }
  func.func @transform_14(%arg0: i32) -> (i32, i32) {
    %c0_i32 = arith.constant 0 : i32
    %c0_i32_0 = arith.constant 0 : i32
    %c0_i32_1 = arith.constant 0 : i32
    return %c0_i32, %c0_i32_0 : i32, i32
  }
  func.func @transform_15(%arg0: i32) -> (i32, i32) {
    %c0_i32 = arith.constant 0 : i32
    %c0_i32_0 = arith.constant 0 : i32
    %c0_i32_1 = arith.constant 0 : i32
    return %c0_i32, %c0_i32_0 : i32, i32
  }
  func.func @transform_16(%arg0: i32) -> (i32, i32) {
    %c0_i32 = arith.constant 0 : i32
    %c0_i32_0 = arith.constant 0 : i32
    %c0_i32_1 = arith.constant 0 : i32
    return %c0_i32, %c0_i32_0 : i32, i32
  }
  func.func @transform_17(%arg0: i32) -> (i32, i32) {
    %c0_i32 = arith.constant 0 : i32
    %c0_i32_0 = arith.constant 0 : i32
    %c0_i32_1 = arith.constant 0 : i32
    return %c0_i32, %c0_i32_0 : i32, i32
  }
  func.func @transform_18(%arg0: i32) -> (i32, i32) {
    %c0_i32 = arith.constant 0 : i32
    %c0_i32_0 = arith.constant 0 : i32
    %c0_i32_1 = arith.constant 0 : i32
    return %c0_i32, %c0_i32_0 : i32, i32
  }
  func.func @transform_19(%arg0: i32) -> (i32, i32) {
    %c0_i32 = arith.constant 0 : i32
    %c0_i32_0 = arith.constant 0 : i32
    %c0_i32_1 = arith.constant 0 : i32
    return %c0_i32, %c0_i32_0 : i32, i32
  }
  func.func @transform_20(%arg0: i32) -> (i32, i32) {
    %c0_i32 = arith.constant 0 : i32
    %c0_i32_0 = arith.constant 0 : i32
    %c0_i32_1 = arith.constant 0 : i32
    return %c0_i32, %c0_i32_0 : i32, i32
  }
  func.func @transform_21(%arg0: i32) -> (i32, i32) {
    %c0_i32 = arith.constant 0 : i32
    %c0_i32_0 = arith.constant 0 : i32
    %c0_i32_1 = arith.constant 0 : i32
    return %c0_i32, %c0_i32_0 : i32, i32
  }
  func.func @transform_22(%arg0: i32) -> (i32, i32) {
    %c0_i32 = arith.constant 0 : i32
    %c0_i32_0 = arith.constant 0 : i32
    %c0_i32_1 = arith.constant 0 : i32
    return %c0_i32, %c0_i32_0 : i32, i32
  }
  func.func @transform_23(%arg0: i32) -> (i32, i32) {
    %c0_i32 = arith.constant 0 : i32
    %c0_i32_0 = arith.constant 0 : i32
    return %arg0, %c0_i32 : i32, i32
  }
}

</mosaic_0001>

<bundles_post_ra>
// kernel: tpu_custom_call.1
= control target key start
LH: loop header
LB: loop body
LE: loop exit
PB: predicated region body
PF: predicated region fallthrough
CT: control target
= control target key end

     0   :  { %s9141_s0 = inlined_call_operand.hbm [shape: bf16[64,128], index: 0, kind: input, shape index: {}]   ;;  %s9142_s1 = inlined_call_operand.hbm [shape: bf16[128,384], index: 1, kind: input, shape index: {}]   ;;  %s9143_s2 = inlined_call_operand.vmem [shape: f32[1,384], index: 2, kind: input, shape index: {}]   ;;  %s9144_s3 = inlined_call_operand.hbm [shape: f32[1,384], index: 3, kind: input, shape index: {}]   ;;  %s9145_s4 = inlined_call_operand.hbm [shape: f32[1,384], index: 4, kind: input, shape index: {}]   ;;  %s9146_s5 = inlined_call_operand.hbm [shape: bf16[384,384], index: 5, kind: input, shape index: {}]   ;;  %s9147_s6 = inlined_call_operand.vmem [shape: f32[1,384], index: 6, kind: input, shape index: {}]   ;;  %s9148_s7 = inlined_call_operand.hbm [shape: f32[1,384], index: 7, kind: input, shape index: {}]   ;;  %s9149_s8 = inlined_call_operand.vmem [shape: f32[1,384], index: 8, kind: input, shape index: {}]   ;;  %s9150_s9 = inlined_call_operand.hbm [shape: bf16[384,384], index: 9, kind: input, shape index: {}]   ;;  %s9151_s10 = inlined_call_operand.hbm [shape: f32[1,384], index: 10, kind: input, shape index: {}]   ;;  %s9152_s11 = inlined_call_operand.vmem [shape: f32[1,384], index: 11, kind: input, shape index: {}]   ;;  %s9153_s12 = inlined_call_operand.hbm [shape: f32[1,384], index: 12, kind: input, shape index: {}]   ;;  %s9154_s13 = inlined_call_operand.hbm [shape: bf16[384,128], index: 13, kind: input, shape index: {}]   ;;  %s9155_s14 = inlined_call_operand.vmem [shape: f32[1,128], index: 14, kind: input, shape index: {}]   ;;  %s9156_s15 = inlined_call_operand.vmem [shape: f32[1,128], index: 15, kind: input, shape index: {}]   ;;  %s9157_s16 = inlined_call_operand.vmem [shape: f32[1,128], index: 16, kind: input, shape index: {}]   ;;  %s9158_s17 = inlined_call_operand.hbm [shape: bf16[128,128], index: 17, kind: input, shape index: {}]   ;;  %s9159_s18 = inlined_call_operand.vmem [shape: f32[1,128], index: 18, kind: input, shape index: {}]   ;;  %s9160_s19 = inlined_call_operand.vmem [shape: f32[1,128], index: 19, kind: input, shape index: {}]   ;;  %s9161_s20 = inlined_call_operand.vmem [shape: f32[1,128], index: 20, kind: input, shape index: {}]   ;;  %s9162_s21 = inlined_call_operand.vmem [shape: f32[1,128], index: 21, kind: input, shape index: {}]   ;;  %s9163_s22 = inlined_call_operand.<no memory space> [shape: f32[1,1], index: 22, kind: input, shape index: {}]   ;;  %s9164_s23 = inlined_call_operand.vmem [shape: f32[64,1], index: 23, kind: output, shape index: {}]  }
   0x1   :  { %9193 = sst [smem:[#allocation36_spill]] %s9141_s0  ;;  %v28_v0 = vstv %s9163_s22 }
   0x2   :  { %9194 = sst [smem:[#allocation37_spill]] %s9142_s1  ;;  %29 = vst [vmem:[#allocation2] sm:$0x1] %v28_v0 }
   0x3   :  { %9195 = sst [smem:[#allocation38_spill]] %s9143_s2 }
   0x4   :  { %9196 = sst [smem:[#allocation39_spill]] %s9144_s3 }
   0x5   :  { %9197 = sst [smem:[#allocation40_spill]] %s9145_s4 }
   0x6   :  { %9198 = sst [smem:[#allocation41_spill]] %s9146_s5 }
   0x7   :  { %9199 = sst [smem:[#allocation42_spill]] %s9147_s6 }
   0x8   :  { %9200 = sst [smem:[#allocation43_spill]] %s9148_s7 }
   0x9   :  { %9201 = sst [smem:[#allocation44_spill]] %s9156_s15 }
   0xa   :  { %9202 = sst [smem:[#allocation45_spill]] %s9157_s16 }
   0xb   :  { %9203 = sst [smem:[#allocation46_spill]] %s9159_s18 }
   0xc   :  { %9204 = sst [smem:[#allocation47_spill]] %s9160_s19 }
   0xd   :  { %9205 = sst [smem:[#allocation48_spill]] %s9161_s20 }
   0xe   :  { %9206 = sst [smem:[#allocation49_spill]] %s9162_s21 }
   0xf   :  { %9207 = sst [smem:[#allocation50_spill]] %s9164_s23 }
  0x10   :  { %30 = vsyncpa [#allocation4], 0 }
  0x11   :  { %32 = vsyncpa [#allocation4 + $0x1], 0 }
  0x12   :  { %33 = vsyncpa [#allocation6], 0 }
  0x13   :  { %34 = vsyncpa [#allocation9], 0 }
  0x14   :  { %35 = vsyncpa [#allocation12], 0 }
  0x15   :  { %36 = vsyncpa [#allocation15], 0 }
  0x16   :  { %37 = vsyncpa [#allocation18], 0  ;;  %s7121_s24 = smov 0   ;;  %s7123_s25 = smov 0  }
  0x17   :  { %s7125_s5 = smov 0   ;;  %s7127_s1 = smov 0  }
  0x18 LB: > { %s9208_s2 = sld [smem:[#allocation37_spill]]  ;;  %s9166_s27 = sadd.s32 4294967295, %s6982_s1   ;;  %s6982_s1 = sphi %s7127_s1, %s9341_s1   ;;  %s6978_s5 = sphi %s7125_s5, %s9340_s5   ;;  %s6974_s25 = sphi %s7123_s25, %s9339_s25   ;;  %s6970_s24 = sphi %s7121_s24, %s9338_s24  }
  0x19   : > { %p5180_p0 = scmp.ge.s32.totalorder %s6982_s1, 1  ;;  %p7148_p1 = scmp.eq.s32.totalorder %s9166_s27, 0 }
  0x1a   : > { %p562_p2 = scmp.lt.s32.totalorder %s6982_s1, 3  ;;  %s6984_s29 = smov [#allocation5]  }
  0x1b   : > { %s575_s3 = sshll.u32 %s6984_s29, 4  ;;  %s9211_s30 = sld [smem:[#allocation40_spill]]  ;;  %s576_s3 = int_to_ptr.vmem [resolvable:$true] %s575_s3 }
  0x1c   : > { %p7153_p3 = pnand %p5180_p0, %p562_p2  ;;  %s9213_s23 = sld [smem:[#allocation43_spill]] }
  0x1d   : > { %s6985_s21 = smov [#allocation8]   ;;  %s9167_s19 = smov 192  }
  0x1e   : > { %s573_s6 = sshll.u32 %s9208_s2, 4  ;;  %p6316_p4 = pneg %p7153_p3  ;;  %s574_s6 = int_to_ptr.hbm [resolvable:$true] %s573_s6 }
  0x1f   : > { %s605_s20 = sshll.u32 %s6985_s21, 4  ;;  %s9169_s18 = smov 12   ;;  %s606_s20 = int_to_ptr.vmem [resolvable:$true] %s605_s20 }
  0x20   : > { %p7164_p5 = pnand %p6316_p4, %p7148_p1  ;;  %s6988_s27 = smov [#allocation11]  }
  0x21   : > { %s603_s22 = sshll.u32 %s9211_s30, 4  ;;  %s661_s30 = sshll.u32 %s9151_s10, 4  ;;  %s604_s22 = int_to_ptr.hbm [resolvable:$true] %s603_s22  ;;  %s662_s30 = int_to_ptr.hbm [resolvable:$true] %s661_s30 }
  0x22   : > { %s632_s29 = sshll.u32 %s9213_s23, 4  ;;  %s634_s23 = sshll.u32 %s6988_s27, 4  ;;  %s633_s29 = int_to_ptr.hbm [resolvable:$true] %s632_s29  ;;  %s635_s23 = int_to_ptr.vmem [resolvable:$true] %s634_s23 }
  0x23   : > { %6319 = dma.hbm_to_vmem [thread:$0]  (!%p7164_p5), %s574_s6, 3072, %s576_s3, [#allocation6], %s9167_s19, %s9167_s19, %s9169_s18  }
  0x24   : > { %6325 = dma.hbm_to_vmem [thread:$0]  (!%p7164_p5), %s604_s22, 48, %s606_s20, [#allocation9]  }
  0x25   : > { %6331 = dma.hbm_to_vmem [thread:$0]  (!%p7164_p5), %s633_s29, 48, %s635_s23, [#allocation12]  }
  0x26   : > { %s6989_s21 = smov [#allocation14]   ;;  %s687_s6 = sshll.u32 %s9154_s13, 4  ;;  %s688_s6 = int_to_ptr.hbm [resolvable:$true] %s687_s6 }
  0x27   : > { %s663_s2 = sshll.u32 %s6989_s21, 4  ;;  %s6990_s20 = smov [#allocation17]   ;;  %s664_s2 = int_to_ptr.vmem [resolvable:$true] %s663_s2 }
  0x28   : > { %6337 = dma.hbm_to_vmem [thread:$0]  (!%p7164_p5), %s662_s30, 48, %s664_s2, [#allocation15]  }
  0x29   : > { %s689_s3 = sshll.u32 %s6990_s20, 4  ;;  %s9214_s4 = sld [smem:[#allocation39_spill]]  ;;  %s690_s3 = int_to_ptr.vmem [resolvable:$true] %s689_s3 }
  0x2a   : > { %s9171_s29 = smov 64   ;;  %s6992_s23 = smov 4  }
  0x2b   : > { %6343 = dma.hbm_to_vmem [thread:$0]  (!%p7164_p5), %s688_s6, 3072, %s690_s3, [#allocation18], %s9171_s29, %s9171_s29, %s6992_s23  }
  0x2c   : > { %s6993_s15 = smov [#allocation7]   ;;  %s9215_s2 = sld [smem:[#allocation41_spill]] }
  0x2d   : > { %s593_s16 = sshll.u32 %s6993_s15, 4  ;;  %s6994_s19 = smov [#allocation10]   ;;  %s594_s16 = int_to_ptr.vmem [resolvable:$true] %s593_s16 }
  0x2e   : > { %s616_s18 = sshll.u32 %s6994_s19, 4  ;;  %s9216_s6 = smov 12   ;;  %s617_s18 = int_to_ptr.vmem [resolvable:$true] %s616_s18 }
  0x2f   : > { %s591_s27 = sshll.u32 %s9214_s4, 4  ;;  %s646_s4 = sshll.u32 %s9150_s9, 4  ;;  %s592_s27 = int_to_ptr.hbm [resolvable:$true] %s591_s27  ;;  %s647_s4 = int_to_ptr.hbm [resolvable:$true] %s646_s4 }
  0x30   : > { %6322 = dma.hbm_to_vmem [thread:$0]  (!%p7164_p5), %s592_s27, 48, %s594_s16, [#allocation6]  }
  0x31   : > { %s9217_s3 = smov 192   ;;  %s6995_s15 = smov [#allocation13]  }
  0x32   : > { %s614_s20 = sshll.u32 %s9215_s2, 4  ;;  %s648_s21 = sshll.u32 %s6995_s15, 4  ;;  %s615_s20 = int_to_ptr.hbm [resolvable:$true] %s614_s20  ;;  %s649_s21 = int_to_ptr.vmem [resolvable:$true] %s648_s21 }
  0x33   : > { %6328 = dma.hbm_to_vmem [thread:$0]  (!%p7164_p5), %s615_s20, 9216, %s617_s18, [#allocation9], %s9217_s3, %s9217_s3, %s9216_s6  }
  0x34   : > { %s676_s16 = sshll.u32 %s9153_s12, 4  ;;  %s710_s2 = sshll.u32 %s9158_s17, 4  ;;  %s677_s16 = int_to_ptr.hbm [resolvable:$true] %s676_s16  ;;  %s711_s2 = int_to_ptr.hbm [resolvable:$true] %s710_s2 }
  0x35   : > { %6334 = dma.hbm_to_vmem [thread:$0]  (!%p7164_p5), %s647_s4, 9216, %s649_s21, [#allocation12], %s9217_s3, %s9217_s3, %s9216_s6  }
  0x36   : > { %s6996_s20 = smov [#allocation16]   ;;  %s6997_s0 = smov [#allocation19]  }
  0x37   : > { %s678_s22 = sshll.u32 %s6996_s20, 4  ;;  %s712_s4 = sshll.u32 %s6997_s0, 4  ;;  %s679_s22 = int_to_ptr.vmem [resolvable:$true] %s678_s22  ;;  %s713_s4 = int_to_ptr.vmem [resolvable:$true] %s712_s4 }
  0x38   : > { %6340 = dma.hbm_to_vmem [thread:$0]  (!%p7164_p5), %s677_s16, 48, %s679_s22, [#allocation15]  }
  0x39   : > { %6346 = dma.hbm_to_vmem [thread:$0]  (!%p7164_p5), %s711_s2, 1024, %s713_s4, [#allocation18], %s9171_s29, %s9171_s29, %s6992_s23  }
  0x3a   : > { %s7228_s6 = sadd.s32 1, %s6982_s1   ;;  %s50_s15 = sadd.s32 1, %s6978_s5 }
  0x3b   : > { %s47_s3 = ssub.s32 %s6982_s1, %s7228_s6  ;;  %p57_p7 = scmp.ne.s32.totalorder %s6978_s5, %s6974_s25 }
  0x3c   : > { %p48_p6 = scmp.eq.s32.totalorder %s47_s3, 0  ;;  %p58_p8 = scmp.eq.s32.totalorder %s6982_s1, 0 }
  0x3d   : > { %p63_p9 = scmp.ne.s32.totalorder %s6974_s25, %s6970_s24  ;;  %p6361_p11 = scmp.lt.s32.totalorder %s6982_s1, 2 }
  0x3e   : > { %s7239_s21 = scalar_select %p48_p6, %s6978_s5, %s50_s15  }
  0x3f   : > { %p7243_p10 = por %p7148_p1, %p63_p9  ;;  %s741_s26 = sand.u32 1, %s6978_s5  }
  0x40   : > { %s6063_s27 = sshll.u32 %s6982_s1, 4  ;;  %p59_p12 = por %p58_p8, %p57_p7 }
  0x41   : > { %s5192_s16 = sshll.u32 %s741_s26, 4  ;;  %s9219_s2 = sld [smem:[#allocation36_spill]] }
  0x42   : > { %s745_s0 = scalar_lea.vmem [#allocation3], %s5192_s16  ;;  %p7253_p13 = pnand %p6361_p11, %p59_p12 }
  0x43   : > { %s753_s4 = sshll.u32 %s745_s0, 4  ;;  %s742_s3 = scalar_lea.sflag [#allocation4], %s741_s26  ;;  %s754_s4 = int_to_ptr.vmem [resolvable:$true] %s753_s4 }
  0x44   : > { %p6902_p2 = pneg %p7253_p13 }
  0x47   : > { %s750_s20 = scalar_lea.hbm %s9219_s2, %s6063_s27  ;;  %s6905_s16 = scalar_lea.hbm %s9219_s2, 32 }
  0x48   : > { %s751_s22 = sshll.u32 %s750_s20, 4  ;;  %s752_s22 = int_to_ptr.hbm [resolvable:$true] %s751_s22 }
  0x49   : > { %s6898_s15 = sshra.s32 %s752_s22, 4  ;;  %s6899_s15 = int_to_ptr.hbm [resolvable:$true] %s6898_s15 }
  0x4a   : > { %s6900_s29 = scalar_lea.hbm %s6899_s15, 16  ;;  %p6906_p6 = scmp.lt.s32.totalorder %s6899_s15, %s9219_s2 }
  0x4b   : > { %p6901_p0 = scmp.ne.s32.totalorder %s6899_s15, %s6900_s29  ;;  %p6907_p7 = scmp.lt.s32.totalorder %s6905_s16, %s6900_s29 }
  0x4d   : > { %p6903_p4 = pnand %p6902_p2, %p6901_p0  ;;  %p6908_p8 = por %p6907_p7, %p6906_p6 }
  0x4f   : > { %p6904_p5 = pneg %p6903_p4 }
  0x51   : > { %p6909_p9 = pnand %p6908_p8, %p6904_p5 }
  0x53   : > { %6912 = shalt.err (!%p6909_p9)
}
  0x54   : > { %s9221_s26 = smov 64   ;;  %765 = sbr.rel (%p7153_p3) target bundleno = 1571 (0x623), region = 112 }
  0x55   : > { %6350 = dma.hbm_to_vmem [thread:$0]  (!%p7253_p13), %s752_s22, 256, %s754_s4, %s742_s3, %s9221_s26, %s9221_s26, %s6992_s23  }
  0x59   : > { %s767_s0 = sand.u32 1, %s6974_s25  }
  0x5a   : > { %s7273_s27 = sshll.u32 %s767_s0, 4  ;;  %s768_s15 = scalar_lea.sflag [#allocation4], %s767_s0 }
  0x5b   : > { %s771_s29 = scalar_lea.vmem [#allocation3], %s7273_s27 }
  0x5c   : > { %6945 = dma.done.wait (%p7243_p10), %s768_s15, 256  }
  0x5d   : > { %6947 = vsyncadd (%p7243_p10), %s768_s15, 4294967040 }
  0x5e   : > { %6949 = dma.done.wait (%p7148_p1), [#allocation6], 3120  }
  0x5f   : > { %6951 = vsyncadd (%p7148_p1), [#allocation6], 4294964176 }
  0x60   : > { %6953 = dma.done.wait (%p7148_p1), [#allocation9], 9264  }
  0x61   : > { %6955 = vsyncadd (%p7148_p1), [#allocation9], 4294958032 }
  0x62   : > { %6957 = dma.done.wait (%p7148_p1), [#allocation12], 9264  }
  0x63   : > { %6959 = vsyncadd (%p7148_p1), [#allocation12], 4294958032 }
  0x64   : > { %6961 = dma.done.wait (%p7148_p1), [#allocation15], 96  }
  0x65   : > { %6963 = vsyncadd (%p7148_p1), [#allocation15], 4294967200 }
  0x66   : > { %6965 = dma.done.wait (%p7148_p1), [#allocation18], 4096  }
  0x67   : > { %6967 = vsyncadd (%p7148_p1), [#allocation18], 4294963200  ;;  %v5303_v1 = vld [vmem:[#allocation5 + $0xa8] sm:$0xf]  ;;  %v6088_v2 = vld [vmem:[#allocation5 + $0xb0] sm:$0xf0] }
  0x68   : > { %v6087_v3 = vld [vmem:[#allocation5 + $0xac] sm:$0xf]  ;;  %v5304_v4 = vor.u32 %v6088_v2, %v5303_v1  ;;  %v5305_v5 = vld [vmem:[#allocation5 + $0xb4] sm:$0xf0]  ;;  %v5311_v6 = vld [vmem:[#allocation5 + $0xb0] sm:$0xf] }
  0x69   : > { %v6089_v7 = vld [vmem:[#allocation5 + $0xb8] sm:$0xf0]  ;;  %v5308_v8 = vor.u32 %v6087_v3, %v5305_v5  ;;  %v5291_v10 = vld [vmem:[#allocation5 + $0x90] sm:$0xf]  ;;  %v6084_v12 = vld [vmem:[#allocation5 + $0x94] sm:$0xf] }
  0x6a   : > { %v5312_v9 = vor.u32 %v6089_v7, %v5311_v6  ;;  %v6085_v11 = vld [vmem:[#allocation5 + $0x98] sm:$0xf0]  ;;  %1076 = vmatpush.bf16.msra.mxu0 %v5304_v4  ;;  %v5293_v14 = vld [vmem:[#allocation5 + $0x9c] sm:$0xf0]  ;;  %v5299_v15 = vld [vmem:[#allocation5 + $0x98] sm:$0xf] }
  0x6b   : > { %v5292_v13 = vor.u32 %v6085_v11, %v5291_v10  ;;  %v6086_v16 = vld [vmem:[#allocation5 + $0xa0] sm:$0xf0]  ;;  %1095 = vmatpush.bf16.msra.mxu1 %v5308_v8  ;;  %v5296_v17 = vor.u32 %v6084_v12, %v5293_v14  ;;  %v5279_v19 = vld [vmem:[#allocation5 + $0x78] sm:$0xf]  ;;  %v6081_v21 = vld [vmem:[#allocation5 + $0x7c] sm:$0xf] }
  0x6c   : > { %1114 = vmatpush.bf16.msra.mxu2 %v5312_v9  ;;  %v5300_v18 = vor.u32 %v6086_v16, %v5299_v15  ;;  %v6082_v20 = vld [vmem:[#allocation5 + $0x80] sm:$0xf0]  ;;  %v5281_v22 = vld [vmem:[#allocation5 + $0x84] sm:$0xf0]  ;;  %v5287_v23 = vld [vmem:[#allocation5 + $0x80] sm:$0xf] }
  0x6d   : > { %v6083_v24 = vld [vmem:[#allocation5 + $0x88] sm:$0xf0]  ;;  %v5280_v25 = vor.u32 %v6082_v20, %v5279_v19  ;;  %v5284_v26 = vor.u32 %v6081_v21, %v5281_v22  ;;  %v5267_v28 = vld [vmem:[#allocation5 + $0x60] sm:$0xf]  ;;  %v6078_v30 = vld [vmem:[#allocation5 + $0x64] sm:$0xf] }
  0x6e   : > { %1077 = vmatpush.bf16.msra.mxu0 %v5292_v13  ;;  %v5288_v27 = vor.u32 %v6083_v24, %v5287_v23  ;;  %v6079_v29 = vld [vmem:[#allocation5 + $0x68] sm:$0xf0]  ;;  %v5269_v31 = vld [vmem:[#allocation5 + $0x6c] sm:$0xf0]  ;;  %v5275_v32 = vld [vmem:[#allocation5 + $0x68] sm:$0xf] }
  0x6f   : > { %1096 = vmatpush.bf16.msra.mxu1 %v5296_v17  ;;  %v6080_v33 = vld [vmem:[#allocation5 + $0x70] sm:$0xf0]  ;;  %v5268_v34 = vor.u32 %v6079_v29, %v5267_v28  ;;  %v5272_v35 = vor.u32 %v6078_v30, %v5269_v31  ;;  %v5255_v37 = vld [vmem:[#allocation5 + $0x48] sm:$0xf]  ;;  %v6075_v39 = vld [vmem:[#allocation5 + $0x4c] sm:$0xf] }
  0x70   : > { %1115 = vmatpush.bf16.msra.mxu2 %v5300_v18  ;;  %v5276_v36 = vor.u32 %v6080_v33, %v5275_v32  ;;  %v6076_v38 = vld [vmem:[#allocation5 + $0x50] sm:$0xf0]  ;;  %v5257_v40 = vld [vmem:[#allocation5 + $0x54] sm:$0xf0]  ;;  %v5263_v41 = vld [vmem:[#allocation5 + $0x50] sm:$0xf] }
  0x71   : > { %v6077_v42 = vld [vmem:[#allocation5 + $0x58] sm:$0xf0]  ;;  %v5243_v43 = vld [vmem:[#allocation5 + $0x30] sm:$0xf]  ;;  %v5256_v44 = vor.u32 %v6076_v38, %v5255_v37  ;;  %v6072_v46 = vld [vmem:[#allocation5 + $0x34] sm:$0xf]  ;;  %v5260_v48 = vor.u32 %v6075_v39, %v5257_v40 }
  0x72   : > { %1078 = vmatpush.bf16.msra.mxu0 %v5280_v25  ;;  %v6073_v45 = vld [vmem:[#allocation5 + $0x38] sm:$0xf0]  ;;  %v5245_v47 = vld [vmem:[#allocation5 + $0x3c] sm:$0xf0]  ;;  %v5264_v49 = vor.u32 %v6077_v42, %v5263_v41  ;;  %v5251_v50 = vld [vmem:[#allocation5 + $0x38] sm:$0xf] }
  0x73   : > { %1097 = vmatpush.bf16.msra.mxu1 %v5284_v26  ;;  %v6074_v51 = vld [vmem:[#allocation5 + $0x40] sm:$0xf0]  ;;  %v5244_v52 = vor.u32 %v6073_v45, %v5243_v43  ;;  %v5248_v53 = vor.u32 %v6072_v46, %v5245_v47  ;;  %v5231_v55 = vld [vmem:[#allocation5 + $0x18] sm:$0xf]  ;;  %v6069_v57 = vld [vmem:[#allocation5 + $0x1c] sm:$0xf] }
  0x74   : > { %1116 = vmatpush.bf16.msra.mxu2 %v5288_v27  ;;  %v5252_v54 = vor.u32 %v6074_v51, %v5251_v50  ;;  %v6070_v56 = vld [vmem:[#allocation5 + $0x20] sm:$0xf0]  ;;  %v5233_v58 = vld [vmem:[#allocation5 + $0x24] sm:$0xf0]  ;;  %v5239_v59 = vld [vmem:[#allocation5 + $0x20] sm:$0xf] }
  0x75   : > { %v6071_v60 = vld [vmem:[#allocation5 + $0x28] sm:$0xf0]  ;;  %v5232_v61 = vor.u32 %v6070_v56, %v5231_v55  ;;  %v5236_v62 = vor.u32 %v6069_v57, %v5233_v58  ;;  %v5219_v0 = vld [vmem:[#allocation5] sm:$0xf]  ;;  %v6066_v2 = vld [vmem:[#allocation5 + $0x4] sm:$0xf] }
  0x76   : > { %1079 = vmatpush.bf16.msra.mxu0 %v5268_v34  ;;  %v5240_v63 = vor.u32 %v6071_v60, %v5239_v59  ;;  %v6067_v1 = vld [vmem:[#allocation5 + $0x8] sm:$0xf0]  ;;  %v5221_v3 = vld [vmem:[#allocation5 + $0xc] sm:$0xf0]  ;;  %v5227_v4 = vld [vmem:[#allocation5 + $0x8] sm:$0xf] }
  0x77   : > { %1098 = vmatpush.bf16.msra.mxu1 %v5272_v35  ;;  %v6068_v5 = vld [vmem:[#allocation5 + $0x10] sm:$0xf0]  ;;  %v5220_v6 = vor.u32 %v6067_v1, %v5219_v0  ;;  %v5224_v7 = vor.u32 %v6066_v2, %v5221_v3  ;;  %v6065_v10 = vld [vmem:[%s771_s29 + $0x8] sm:$0xff]  ;;  %s9222_s23 = sld [smem:[#allocation38_spill]]  ;;  %s9336_s0 = sadd.s32 4294967295, %s6982_s1  }
  0x78   : > { %1117 = vmatpush.bf16.msra.mxu2 %v5276_v36  ;;  %v5228_v8 = vor.u32 %v6068_v5, %v5227_v4  ;;  %v6064_v9 = vld [vmem:[%s771_s29] sm:$0xff]  ;;  %s9273_s4 = sld [smem:[#allocation42_spill]] }
  0x79   : > { %s9330_s27 = sld [smem:[#allocation44_spill]] }
  0x7a   : > { %1080 = vmatpush.bf16.msra.mxu0 %v5256_v44  ;;  %s9331_s7 = sld [smem:[#allocation45_spill]] }
  0x7b   : > { %1099 = vmatpush.bf16.msra.mxu1 %v5260_v48  ;;  %s9332_s30 = sld [smem:[#allocation46_spill]] }
  0x7c   : > { %1118 = vmatpush.bf16.msra.mxu2 %v5264_v49  ;;  %s9333_s24 = sld [smem:[#allocation47_spill]] }
  0x7d   : > { %v928_v11 = vld [vmem:[%s9222_s23] sm:$0x7]  ;;  %s9334_s16 = sld [smem:[#allocation48_spill]] }
  0x7e   : > { %1081 = vmatpush.bf16.msra.mxu0 %v5244_v52  ;;  %v7307_v12 = vperm.slane %v928_v11, 0  ;;  %v7309_v13 = vperm.slane %v928_v11, 1  ;;  %v7313_v20 = vperm.slane %v928_v11, 2  ;;  %s9335_s26 = sld [smem:[#allocation49_spill]] }
  0x7f   : > { %1100 = vmatpush.bf16.msra.mxu1 %v5248_v53  ;;  %s9337_s28 = sld [smem:[#allocation50_spill]] }
  0x80   : > { %1119 = vmatpush.bf16.msra.mxu2 %v5252_v54 }
  0x82   : > { %1082 = vmatpush.bf16.msra.mxu0 %v5232_v61 }
  0x83   : > { %1101 = vmatpush.bf16.msra.mxu1 %v5236_v62 }
  0x84   : > { %1120 = vmatpush.bf16.msra.mxu2 %v5240_v63 }
  0x86   : > { %1083 = vmatpush.bf16.msra.mxu0 %v5220_v6 }
  0x87   : > { %1102 = vmatpush.bf16.msra.mxu1 %v5224_v7 }
  0x88   : > { %1121 = vmatpush.bf16.msra.mxu2 %v5228_v8 }
  0x89   : > { %1084 = vmatmul.bf16.vlgmr.msra.gmra.mxu0 %v6064_v9 }
  0x8a   : > { %1103 = vmatmul.bf16.vlgmr.msra.gmra.mxu1 %v6064_v9 }
  0x8b   : > { %1122 = vmatmul.bf16.vlgmr.msra.gmra.mxu2 %v6064_v9 }
  0x99   : > { %1089 = vmatmul.bf16.gmra.mxu0 %v6065_v10 }
  0x9a   : > { %1108 = vmatmul.bf16.gmra.mxu1 %v6065_v10 }
  0x9b   : > { %1127 = vmatmul.bf16.gmra.mxu2 %v6065_v10 }
 0x106   : > { %v1085_v14 = vpop.f32.mrf.mxu0 }
 0x107   : > { %v1086_v15 = vadd.f32 %v1085_v14, %v7307_v12  ;;  %v1104_v16 = vpop.f32.mrf.mxu1 }
 0x108   : > { %v1105_v17 = vadd.f32 %v1104_v16, %v7309_v13 }
 0x109   : > { %v1145_v18 = vmul.f32 1.442695, %v1086_v15  ;;  %vm1133_vm0 = vcmp.gt.f32.partialorder %v1086_v15, 0.0 }
 0x10a   : > { %v1147_v19 = vmul.f32 1.442695, %v1105_v17  ;;  %vm1134_vm1 = vcmp.gt.f32.partialorder %v1105_v17, 0.0 }
 0x10b   : > { %6422 = vpow2.f32 %v1145_v18 }
 0x10c   : > { %6424 = vpow2.f32 %v1147_v19 }
 0x10e   : > { %v1123_v21 = vpop.f32.mrf.mxu2  ;;  %v1087_v23 = vpop.f32.mrf.mxu0 }
 0x10f   : > { %v1124_v22 = vadd.f32 %v1123_v21, %v7313_v20  ;;  %v1088_v24 = vadd.f32 %v1087_v23, %v7307_v12  ;;  %v1106_v25 = vpop.f32.mrf.mxu1 }
 0x110   : > { %v1107_v27 = vadd.f32 %v1106_v25, %v7309_v13 }
 0x111   : > { %v1149_v26 = vmul.f32 1.442695, %v1124_v22  ;;  %v6423_v28 = vpop.eup %6422  ;;  %v1151_v29 = vmul.f32 1.442695, %v1088_v24  ;;  %vm1135_vm2 = vcmp.gt.f32.partialorder %v1124_v22, 0.0  ;;  %vm1136_vm3 = vcmp.gt.f32.partialorder %v1088_v24, 0.0 }
 0x112   : > { %v6425_v30 = vpop.eup %6424  ;;  %v5313_v31 = vadd.f32 -1.0, %v6423_v28  ;;  %v1153_v32 = vmul.f32 1.442695, %v1107_v27  ;;  %vm1137_vm4 = vcmp.gt.f32.partialorder %v1107_v27, 0.0 }
 0x113   : > { %6426 = vpow2.f32 %v1149_v26  ;;  %v5314_v33 = vadd.f32 -1.0, %v6425_v30 }
 0x114   : > { %6428 = vpow2.f32 %v1151_v29  ;;  %v1181_v34 = vmul.f32 1.6732632, %v5313_v31 }
 0x115   : > { %6430 = vpow2.f32 %v1153_v32  ;;  %v1182_v35 = vmul.f32 1.6732632, %v5314_v33 }
 0x116   : > { %v1125_v36 = vpop.f32.mrf.mxu2  ;;  %v1193_v37 = vsel %vm1133_vm0, %v1086_v15, %v1181_v34  ;;  %v1090_v62 = vpop.f32.mrf.mxu0 }
 0x117   : > { %v7318_v38 = vmul.f32 1.050701, %v1193_v37  ;;  %v1194_v39 = vsel %vm1134_vm1, %v1105_v17, %v1182_v35  ;;  %v7321_v40 = vadd.f32 %v1125_v36, %v7313_v20  ;;  %v7342_v7 = vadd.f32 %v1090_v62, %v7307_v12  ;;  %v1109_v26 = vpop.f32.mrf.mxu1 }
 0x118   : > { %v7323_v42 = vmul.f32 1.050701, %v1194_v39  ;;  %v7356_v36 = vadd.f32 %v1109_v26, %v7309_v13 }
 0x119   : > { %v6427_v41 = vpop.eup %6426  ;;  %v1291_v49 = vmul.f32 %v7318_v38, %v7318_v38  ;;  %v1155_v52 = vmul.f32 1.442695, %v7321_v40  ;;  %v1157_v25 = vmul.f32 1.442695, %v7342_v7  ;;  %vm1138_vm5 = vcmp.gt.f32.partialorder %v7321_v40, 0.0 }
 0x11a   : > { %v6429_v43 = vpop.eup %6428  ;;  %v5315_v44 = vadd.f32 -1.0, %v6427_v41  ;;  %v1225_v46 = vrot.slane %v7323_v42, 4  ;;  %v1292_v47 = vmul.f32 %v7323_v42, %v7323_v42  ;;  %vm1139_vm6 = vcmp.gt.f32.partialorder %v7342_v7, 0.0 }
 0x11b   : > { %v6431_v45 = vpop.eup %6430  ;;  %v5316_v48 = vadd.f32 -1.0, %v6429_v43  ;;  %v1303_v63 = vrot.slane %v1291_v49, 4  ;;  %6432 = vpow2.f32 %v1155_v52  ;;  %vm1140_vm7 = vcmp.gt.f32.partialorder %v7356_v36, 0.0 }
 0x11c   : > { %v1183_v50 = vmul.f32 1.6732632, %v5315_v44  ;;  %v5317_v51 = vadd.f32 -1.0, %v6431_v45  ;;  %v1226_v53 = vadd.f32 %v1225_v46, %v7323_v42  ;;  %v1309_v54 = vrot.slane %v1292_v47, 4 }
 0x11d   : > { %v1184_v55 = vmul.f32 1.6732632, %v5316_v48  ;;  %v1304_v14 = vadd.f32 %v1303_v63, %v1291_v49  ;;  %6434 = vpow2.f32 %v1157_v25 }
 0x11e   : > { %v1195_v56 = vsel %vm1135_vm2, %v1124_v22, %v1183_v50  ;;  %v1185_v57 = vmul.f32 1.6732632, %v5317_v51  ;;  %v1227_v58 = vrot.slane %v1226_v53, 2  ;;  %v1310_v59 = vadd.f32 %v1309_v54, %v1292_v47 }
 0x11f   : > { %v7332_v60 = vmul.f32 1.050701, %v1195_v56  ;;  %v1196_v61 = vsel %vm1136_vm3, %v1088_v24, %v1184_v55  ;;  %v1219_v22 = vrot.slane %v7318_v38, 4  ;;  %v1305_v33 = vrot.slane %v1304_v14, 2 }
 0x120   : > { %v1197_v0 = vsel %vm1137_vm4, %v1107_v27, %v1185_v57  ;;  %v1228_v1 = vadd.f32 %v1227_v58, %v1226_v53  ;;  %v1311_v2 = vrot.slane %v1310_v59, 2  ;;  %v7337_v5 = vmul.f32 1.050701, %v1196_v61  ;;  %v1128_v53 = vpop.f32.mrf.mxu2 }
 0x121   : > { %v1231_v3 = vrot.slane %v7332_v60, 4  ;;  %v1293_v4 = vmul.f32 %v7332_v60, %v7332_v60  ;;  %v7339_v6 = vmul.f32 1.050701, %v1197_v0  ;;  %v6433_v21 = vpop.eup %6432  ;;  %v7359_v37 = vadd.f32 %v1219_v22, %v7318_v38 }
 0x122   : > { %v1229_v8 = vrot.slane %v1228_v1, 1  ;;  %v1312_v9 = vadd.f32 %v1311_v2, %v1310_v59  ;;  %v1294_v23 = vmul.f32 %v7337_v5, %v7337_v5  ;;  %v5318_v43 = vadd.f32 -1.0, %v6433_v21 }
 0x123   : > { %v1232_v10 = vadd.f32 %v1231_v3, %v7332_v60  ;;  %v1315_v11 = vrot.slane %v1293_v4, 4  ;;  %v1243_v15 = vrot.slane %v7339_v6, 4  ;;  %v1295_v32 = vmul.f32 %v7339_v6, %v7339_v6  ;;  %v6435_v2 = vpop.eup %6434 }
 0x124   : > { %v1230_v16 = vadd.f32 %v1229_v8, %v1228_v1  ;;  %v1313_v17 = vrot.slane %v1312_v9, 1  ;;  %v1321_v46 = vrot.slane %v1294_v23, 4  ;;  %v1186_v49 = vmul.f32 1.6732632, %v5318_v43 }
 0x125   : > { %v1233_v18 = vrot.slane %v1232_v10, 2  ;;  %v1316_v19 = vadd.f32 %v1315_v11, %v1293_v4  ;;  %v1244_v24 = vadd.f32 %v1243_v15, %v7339_v6  ;;  %v1327_v41 = vrot.slane %v1295_v32, 4 }
 0x126   : > { %v1314_v27 = vadd.f32 %v1313_v17, %v1312_v9  ;;  %v7351_v28 = vmul.f32 0.125, %v1230_v16  ;;  %v1306_v50 = vadd.f32 %v1305_v33, %v1304_v14  ;;  %v1237_v52 = vrot.slane %v7337_v5, 4  ;;  %v1092_v9 = vpop.f32.mrf.mxu0 }
 0x127   : > { %v1234_v29 = vadd.f32 %v1233_v18, %v1232_v10  ;;  %v1317_v30 = vrot.slane %v1316_v19, 2  ;;  %v1245_v31 = vrot.slane %v1244_v24, 2  ;;  %v1328_v48 = vadd.f32 %v1327_v41, %v1295_v32 }
 0x128   : > { %v1388_v44 = vmul.f32 0.125, %v1314_v27  ;;  %v1400_v45 = vmul.f32 %v7351_v28, %v7351_v28  ;;  %v1198_v56 = vsel %vm1138_vm5, %v7321_v40, %v1186_v49  ;;  %v1159_v57 = vmul.f32 1.442695, %v7356_v36 }
 0x129   : > { %v1235_v34 = vrot.slane %v1234_v29, 1  ;;  %v1318_v35 = vadd.f32 %v1317_v30, %v1316_v19  ;;  %v1246_v39 = vadd.f32 %v1245_v31, %v1244_v24  ;;  %v1329_v55 = vrot.slane %v1328_v48, 2 }
 0x12a   : > { %v1412_v59 = vsub.f32 %v1388_v44, %v1400_v45  ;;  %v1322_v61 = vadd.f32 %v1321_v46, %v1294_v23  ;;  %v7369_v62 = vmul.f32 1.050701, %v1198_v56  ;;  %6436 = vpow2.f32 %v1159_v57 }
 0x12b   : > { %v1319_v47 = vrot.slane %v1318_v35, 1  ;;  %v1236_v51 = vadd.f32 %v1235_v34, %v1234_v29  ;;  %v1247_v54 = vrot.slane %v1246_v39, 1  ;;  %v1330_v0 = vadd.f32 %v1329_v55, %v1328_v48  ;;  %v1111_v34 = vpop.f32.mrf.mxu1 }
 0x12c   : > { %9223 = vst [vmem:[#allocation26_spill] sm:$0xff] %v7369_v62  ;;  %v7372_v1 = vadd.f32 %v1128_v53, %v7313_v20  ;;  %v1307_v3 = vrot.slane %v1306_v50, 1  ;;  %v1249_v40 = vrot.slane %v7369_v62, 4  ;;  %v1296_v8 = vmul.f32 %v7369_v62, %v7369_v62 }
 0x12d   : > { %v1320_v63 = vadd.f32 %v1319_v47, %v1318_v35  ;;  %v7374_v4 = vmul.f32 0.125, %v1236_v51  ;;  %v7380_v10 = vadd.f32 %v1237_v52, %v7337_v5  ;;  %v1248_v11 = vadd.f32 %v1247_v54, %v1246_v39 }
 0x12e   : > { %v1331_v14 = vrot.slane %v1330_v0, 1  ;;  %v5319_v15 = vadd.f32 -1.0, %v6435_v2  ;;  %v1323_v16 = vrot.slane %v1322_v61, 2  ;;  %v1250_v17 = vadd.f32 %v1249_v40, %v7369_v62 }
 0x12f   : > { %v1333_v18 = vrot.slane %v1296_v8, 4  ;;  %v1161_v19 = vmul.f32 1.442695, %v7372_v1  ;;  %v1424_v21 = vmax.f32 %v1412_v59, 0.0  ;;  %v1389_v22 = vmul.f32 0.125, %v1320_v63 }
 0x130   : > { %v1187_v23 = vmul.f32 1.6732632, %v5319_v15  ;;  %v7385_v24 = vadd.f32 %v1092_v9, %v7307_v12  ;;  %v1401_v25 = vmul.f32 %v7374_v4, %v7374_v4  ;;  %v1251_v26 = vrot.slane %v1250_v17, 2  ;;  %v6437_v29 = vpop.eup %6436 }
 0x131   : > { %v1334_v27 = vadd.f32 %v1333_v18, %v1296_v8  ;;  %6438 = vpow2.f32 %v1161_v19  ;;  %v1332_v30 = vadd.f32 %v1331_v14, %v1330_v0  ;;  %v7389_v31 = vmul.f32 0.125, %v1248_v11 }
 0x132   : > { %v1199_v32 = vsel %vm1139_vm6, %v7342_v7, %v1187_v23  ;;  %v1163_v33 = vmul.f32 1.442695, %v7385_v24  ;;  %v1308_v35 = vadd.f32 %v1307_v3, %v1306_v50  ;;  %v1252_v12 = vadd.f32 %v1251_v26, %v1250_v17 }
 0x133   : > { %v1335_v39 = vrot.slane %v1334_v27, 2  ;;  %v7395_v41 = vmul.f32 1.050701, %v1199_v32  ;;  %v7398_v44 = vadd.f32 %v1323_v16, %v1322_v61  ;;  %v5320_v45 = vadd.f32 -1.0, %v6437_v29 }
 0x134   : > { %6440 = vpow2.f32 %v1163_v33  ;;  %v1413_v46 = vsub.f32 %v1389_v22, %v1401_v25  ;;  %v1253_v47 = vrot.slane %v1252_v12, 1  ;;  %v7401_v49 = vadd.f32 %v1111_v34, %v7309_v13 }
 0x135   : > { %9224 = vst [vmem:[#allocation27_spill] sm:$0xff] %v7395_v41  ;;  %v1336_v48 = vadd.f32 %v1335_v39, %v1334_v27  ;;  %v7403_v7 = vadd.f32 1e-05, %v1424_v21  ;;  %v1391_v51 = vmul.f32 0.125, %v1332_v30  ;;  %v1403_v50 = vmul.f32 %v7389_v31, %v7389_v31  ;;  %v1130_v21 = vpop.f32.mrf.mxu2 }
 0x136   : > { %v1188_v52 = vmul.f32 1.6732632, %v5320_v45  ;;  %v1254_v54 = vadd.f32 %v1253_v47, %v1252_v12  ;;  %v1297_v56 = vmul.f32 %v7395_v41, %v7395_v41  ;;  %v7410_v57 = vmul.f32 0.125, %v1308_v35 }
 0x137   : > { %v6439_v53 = vpop.eup %6438  ;;  %v1337_v55 = vrot.slane %v1336_v48, 1  ;;  %v1425_v63 = vmax.f32 %v1413_v46, 0.0  ;;  %v1165_v3 = vmul.f32 1.442695, %v7401_v49  ;;  %6442 = vrsqrt.f32 %v7403_v7 }
 0x138   : > { %v1200_v59 = vsel %vm1140_vm7, %v7356_v36, %v1188_v52  ;;  %v5321_v61 = vadd.f32 -1.0, %v6439_v53  ;;  %v7414_v2 = vmul.f32 0.125, %v1254_v54  ;;  %v1415_v8 = vsub.f32 %v1391_v51, %v1403_v50 }
 0x139   : > { %v1338_v0 = vadd.f32 %v1337_v55, %v1336_v48  ;;  %v7418_v9 = vmul.f32 1.050701, %v1200_v59  ;;  %v1339_v16 = vrot.slane %v1297_v56, 4  ;;  %vm1141_vm8 = vcmp.gt.f32.partialorder %v7372_v1, 0.0 }
 0x13a   : > { %v6441_v40 = vpop.eup %6440  ;;  %v1189_v11 = vmul.f32 1.6732632, %v5321_v61  ;;  %v1404_v15 = vmul.f32 %v7414_v2, %v7414_v2  ;;  %v7427_v22 = vadd.f32 1e-05, %v1425_v63  ;;  %vm1142_vm9 = vcmp.gt.f32.partialorder %v7385_v24, 0.0 }
 0x13b   : > { %9225 = vst [vmem:[#allocation28_spill] sm:$0xff] %v7418_v9  ;;  %v1392_v14 = vmul.f32 0.125, %v1338_v0  ;;  %v1261_v36 = vrot.slane %v7418_v9, 4  ;;  %v1298_v17 = vmul.f32 %v7418_v9, %v7418_v9  ;;  %v5322_v19 = vadd.f32 -1.0, %v6441_v40  ;;  %v5411_v0 = vld [vmem:[#allocation10 + $0xa8] sm:$0xf] }
 0x13c   : > { %v1201_v18 = vsel %vm1141_vm8, %v7372_v1, %v1189_v11  ;;  %6444 = vpow2.f32 %v1165_v3  ;;  %v1427_v25 = vmax.f32 %v1415_v8, 0.0  ;;  %v7433_v30 = vadd.f32 %v1339_v16, %v1297_v56  ;;  %v6112_v3 = vld [vmem:[#allocation10 + $0xb0] sm:$0xf0] }
 0x13d   : > { %v7429_v23 = vmul.f32 1.050701, %v1201_v18  ;;  %v1262_v26 = vadd.f32 %v1261_v36, %v7418_v9  ;;  %v1345_v27 = vrot.slane %v1298_v17, 4  ;;  %v1190_v29 = vmul.f32 1.6732632, %v5322_v19  ;;  %v7441_v34 = vpop.eup %6442 }
 0x13e   : > { %v7439_v33 = vadd.f32 %v1130_v21, %v7313_v20  ;;  %v1416_v35 = vsub.f32 %v1392_v14, %v1404_v15  ;;  %6446 = vrsqrt.f32 %v7427_v22  ;;  %v1255_v46 = vrot.slane %v7395_v41, 4  ;;  %v6136_v18 = vld [vmem:[#allocation10 + $0x170] sm:$0xf0] }
 0x13f   : > { %9226 = vst [vmem:[#allocation29_spill] sm:$0xff] %v7429_v23  ;;  %v1267_v32 = vrot.slane %v7429_v23, 4  ;;  %v1299_v1 = vmul.f32 %v7429_v23, %v7429_v23  ;;  %v1263_v12 = vrot.slane %v1262_v26, 2  ;;  %v1346_v39 = vadd.f32 %v1345_v27, %v1298_v17  ;;  %v5507_v17 = vld [vmem:[#allocation10 + $0x168] sm:$0xf] }
 0x140   : > { %v1202_v45 = vsel %vm1142_vm9, %v7385_v24, %v1190_v29  ;;  %vm1143_vm10 = vcmp.gt.f32.partialorder %v7401_v49, 0.0  ;;  %v7450_v53 = vadd.f32 1e-05, %v1427_v25  ;;  %v1341_v54 = vrot.slane %v7433_v30, 2 }
 0x141   : > { %v1268_v47 = vadd.f32 %v1267_v32, %v7429_v23  ;;  %v1264_v48 = vadd.f32 %v1263_v12, %v1262_v26  ;;  %v1347_v51 = vrot.slane %v1346_v39, 2  ;;  %v1351_v50 = vrot.slane %v1299_v1, 4  ;;  %v6127_v23 = vld [vmem:[#allocation10 + $0x128] sm:$0xf0] }
 0x142   : > { %v7448_v20 = vmul.f32 1.050701, %v1202_v45  ;;  %v6445_v52 = vpop.eup %6444  ;;  %v1167_v24 = vmul.f32 1.442695, %v7439_v33  ;;  %v1428_v56 = vmax.f32 %v1416_v35, 0.0  ;;  %v7457_v14 = vadd.f32 %v1255_v46, %v7395_v41 }
 0x143   : > { %v1269_v55 = vrot.slane %v1268_v47, 2  ;;  %v1265_v59 = vrot.slane %v1264_v48, 1  ;;  %v1348_v61 = vadd.f32 %v1347_v51, %v1346_v39  ;;  %v1352_v63 = vadd.f32 %v1351_v50, %v1299_v1  ;;  %v6111_v51 = vld [vmem:[#allocation10 + $0xac] sm:$0xf] }
 0x144   : > { %9227 = vst [vmem:[#allocation30_spill] sm:$0xff] %v7448_v20  ;;  %v1300_v8 = vmul.f32 %v7448_v20, %v7448_v20  ;;  %v5323_v11 = vadd.f32 -1.0, %v6445_v52  ;;  %6448 = vpow2.f32 %v1167_v24  ;;  %v7459_v19 = vpop.eup %6446  ;;  %v5412_v27 = vor.u32 %v6112_v3, %v5411_v0 }
 0x145   : > { %v1270_v40 = vadd.f32 %v1269_v55, %v1268_v47  ;;  %v1266_v15 = vadd.f32 %v1265_v59, %v1264_v48  ;;  %v1349_v16 = vrot.slane %v1348_v61, 1  ;;  %v1353_v36 = vrot.slane %v1352_v63, 2  ;;  %v5603_v47 = vld [vmem:[#allocation10 + $0x228] sm:$0xf]  ;;  %v6160_v48 = vld [vmem:[#allocation10 + $0x230] sm:$0xf0] }
 0x146   : > { %v1357_v25 = vrot.slane %v1300_v8, 4  ;;  %v1191_v26 = vmul.f32 1.6732632, %v5323_v11  ;;  %v7461_v29 = vadd.f32 1e-05, %v1428_v56  ;;  %v7467_v12 = vmul.f32 %v7441_v34, %v7403_v7  ;;  %2227 = vmatpush.bf16.msra.mxu3 %v5412_v27 }
 0x147   : > { %v1271_v21 = vrot.slane %v1270_v40, 1  ;;  %v1350_v32 = vadd.f32 %v1349_v16, %v1348_v61  ;;  %v7463_v1 = vmul.f32 0.125, %v1266_v15  ;;  %v1354_v35 = vadd.f32 %v1353_v36, %v1352_v63  ;;  %v5413_v56 = vld [vmem:[#allocation10 + $0xb4] sm:$0xf0]  ;;  %v5399_v59 = vld [vmem:[#allocation10 + $0x90] sm:$0xf] }
 0x148   : > { %v1203_v45 = vsel %vm1143_vm10, %v7401_v49, %v1191_v26  ;;  %v5508_v46 = vor.u32 %v6136_v18, %v5507_v17  ;;  %v1358_v24 = vadd.f32 %v1357_v25, %v1300_v8  ;;  %v7476_v0 = vadd.f32 %v1341_v54, %v7433_v30  ;;  %v5495_v17 = vld [vmem:[#allocation10 + $0x150] sm:$0xf]  ;;  %v6133_v8 = vld [vmem:[#allocation10 + $0x158] sm:$0xf0]  ;;  %v6108_v25 = vld [vmem:[#allocation10 + $0x94] sm:$0xf] }
 0x149   : > { %9228 = vst [vmem:[#allocation31_spill] sm:$0xff] %v7463_v1  ;;  %v1272_v39 = vadd.f32 %v1271_v21, %v1270_v40  ;;  %v1394_v50 = vmul.f32 0.125, %v1350_v32  ;;  %v1406_v52 = vmul.f32 %v7463_v1, %v7463_v1  ;;  %v1355_v55 = vrot.slane %v1354_v35, 1  ;;  %v6109_v40 = vld [vmem:[#allocation10 + $0x98] sm:$0xf0] }
 0x14a   : > { %v6449_v61 = vpop.eup %6448  ;;  %v7480_v3 = vmul.f32 1.050701, %v1203_v45  ;;  %2246 = vmatpush.bf16.msrb.mxu0 %v5508_v46  ;;  %v5604_v36 = vor.u32 %v6160_v48, %v5603_v47  ;;  %6450 = vrsqrt.f32 %v7450_v53  ;;  %vm1144_vm11 = vcmp.gt.f32.partialorder %v7439_v33, 0.0  ;;  %v5591_v54 = vld [vmem:[#allocation10 + $0x210] sm:$0xf] }
 0x14b   : > { %v7478_v49 = vmul.f32 0.125, %v1272_v39  ;;  %v1418_v11 = vsub.f32 %v1394_v50, %v1406_v52  ;;  %v1356_v15 = vadd.f32 %v1355_v55, %v1354_v35  ;;  %v5324_v16 = vadd.f32 -1.0, %v6449_v61  ;;  %v6157_v21 = vld [vmem:[#allocation10 + $0x218] sm:$0xf0]  ;;  %v5401_v39 = vld [vmem:[#allocation10 + $0x9c] sm:$0xf0] }
 0x14c   : > { %9230 = vst [vmem:[#allocation33_spill] sm:$0xff] %v7480_v3  ;;  %v1279_v18 = vrot.slane %v7480_v3, 4  ;;  %v1301_v30 = vmul.f32 %v7480_v3, %v7480_v3  ;;  %v1359_v27 = vrot.slane %v1358_v24, 2  ;;  %2265 = vmatpush.bf16.msrb.mxu1 %v5604_v36  ;;  %v5416_v35 = vor.u32 %v6111_v51, %v5413_v56  ;;  %v5387_v50 = vld [vmem:[#allocation10 + $0x78] sm:$0xf] }
 0x14d   : > { %9229 = vst [vmem:[#allocation32_spill] sm:$0xff] %v7478_v49  ;;  %v7489_v26 = vmul.f32 %v7478_v49, %v7478_v49  ;;  %v1192_v32 = vmul.f32 1.6732632, %v5324_v16  ;;  %v7491_v45 = vmul.f32 0.125, %v1356_v15  ;;  %v5400_v48 = vor.u32 %v6109_v40, %v5399_v59  ;;  %v6106_v52 = vld [vmem:[#allocation10 + $0x80] sm:$0xf0] }
 0x14e   : > { %v1280_v46 = vadd.f32 %v1279_v18, %v7480_v3  ;;  %v1363_v47 = vrot.slane %v1301_v30, 4  ;;  %v5483_v55 = vld [vmem:[#allocation10 + $0x138] sm:$0xf]  ;;  %v6130_v61 = vld [vmem:[#allocation10 + $0x140] sm:$0xf0]  ;;  %v1430_v13 = vmax.f32 %v1418_v11, 0.0  ;;  %2284 = vmatpush.bf16.msrb.mxu2 %v5416_v35  ;;  %v5496_v51 = vor.u32 %v6133_v8, %v5495_v17 }
 0x14f   : > { %v1204_v16 = vsel %vm1144_vm11, %v7439_v33, %v1192_v32  ;;  %v5579_v56 = vld [vmem:[#allocation10 + $0x1f8] sm:$0xf]  ;;  %v6154_v15 = vld [vmem:[#allocation10 + $0x200] sm:$0xf0]  ;;  %v1273_v36 = vrot.slane %v7448_v20, 4  ;;  %2228 = vmatpush.bf16.msra.mxu3 %v5400_v48  ;;  %6452 = vrsqrt.f32 %v7461_v29  ;;  %v7502_v63 = vadd.f32 %v1359_v27, %v1358_v24 }
 0x150   : > { %v1281_v18 = vrot.slane %v1280_v46, 2  ;;  %v1364_v43 = vadd.f32 %v1363_v47, %v1301_v30  ;;  %v7499_v59 = vmul.f32 1.050701, %v1204_v16  ;;  %v6105_v40 = vld [vmem:[#allocation10 + $0x7c] sm:$0xf]  ;;  %2247 = vmatpush.bf16.msrb.mxu0 %v5496_v51  ;;  %v5592_v11 = vor.u32 %v6157_v21, %v5591_v54  ;;  %v7504_v8 = vpop.eup %6450 }
 0x151   : > { %v5404_v58 = vor.u32 %v6108_v25, %v5401_v39  ;;  %v5389_v33 = vld [vmem:[#allocation10 + $0x84] sm:$0xf0]  ;;  %v5375_v32 = vld [vmem:[#allocation10 + $0x60] sm:$0xf]  ;;  %v6103_v17 = vld [vmem:[#allocation10 + $0x68] sm:$0xf0]  ;;  %v1419_v35 = vsub.f32 %v7491_v45, %v7489_v26  ;;  %v5388_v54 = vor.u32 %v6106_v52, %v5387_v50  ;;  %v5484_v21 = vor.u32 %v6130_v61, %v5483_v55 }
 0x152   : > { %9231 = vst [vmem:[#allocation34_spill] sm:$0xff] %v7499_v59  ;;  %v1282_v30 = vadd.f32 %v1281_v18, %v1280_v46  ;;  %v1365_v47 = vrot.slane %v1364_v43, 2  ;;  %v1285_v48 = vrot.slane %v7499_v59, 4  ;;  %v5471_v16 = vld [vmem:[#allocation10 + $0x120] sm:$0xf]  ;;  %v1302_v24 = vmul.f32 %v7499_v59, %v7499_v59  ;;  %2266 = vmatpush.bf16.msrb.mxu1 %v5592_v11 }
 0x153   : > { %v7509_v3 = vadd.f32 1e-05, %v1430_v13  ;;  %2285 = vmatpush.bf16.msrb.mxu2 %v5404_v58  ;;  %v5567_v25 = vld [vmem:[#allocation10 + $0x1e0] sm:$0xf]  ;;  %v6151_v27 = vld [vmem:[#allocation10 + $0x1e8] sm:$0xf0]  ;;  %v5580_v45 = vor.u32 %v6154_v15, %v5579_v56  ;;  %v7515_v9 = vadd.f32 %v1273_v36, %v7448_v20  ;;  %2229 = vmatpush.bf16.msra.mxu3 %v5388_v54  ;;  %v5392_v41 = vor.u32 %v6105_v40, %v5389_v33 }
 0x154   : > { %v1283_v39 = vrot.slane %v1282_v30, 1  ;;  %v1366_v51 = vadd.f32 %v1365_v47, %v1364_v43  ;;  %v1286_v26 = vadd.f32 %v1285_v48, %v7499_v59  ;;  %v6102_v46 = vld [vmem:[#allocation10 + $0x64] sm:$0xf]  ;;  %v5377_v18 = vld [vmem:[#allocation10 + $0x6c] sm:$0xf0]  ;;  %v1369_v13 = vrot.slane %v1302_v24, 4  ;;  %2248 = vmatpush.bf16.msrb.mxu0 %v5484_v21 }
 0x155   : > { %v5376_v11 = vor.u32 %v6103_v17, %v5375_v32  ;;  %v5363_v58 = vld [vmem:[#allocation10 + $0x48] sm:$0xf]  ;;  %v6100_v50 = vld [vmem:[#allocation10 + $0x50] sm:$0xf0]  ;;  %v5472_v49 = vor.u32 %v6127_v23, %v5471_v16  ;;  %v7517_v48 = vpop.eup %6452  ;;  %v1431_v56 = vmax.f32 %v1419_v35, 0.0  ;;  %v5568_v36 = vor.u32 %v6151_v27, %v5567_v25 }
 0x156   : > { %v1284_v52 = vadd.f32 %v1283_v39, %v1282_v30  ;;  %v1367_v55 = vrot.slane %v1366_v51, 1  ;;  %v1287_v61 = vrot.slane %v1286_v26, 2  ;;  %v5459_v43 = vld [vmem:[#allocation10 + $0x108] sm:$0xf]  ;;  %v6124_v47 = vld [vmem:[#allocation10 + $0x110] sm:$0xf0]  ;;  %v1370_v15 = vadd.f32 %v1369_v13, %v1302_v24  ;;  %2267 = vmatpush.bf16.msrb.mxu1 %v5580_v45 }
 0x157   : > { %2286 = vmatpush.bf16.msrb.mxu2 %v5392_v41  ;;  %v5380_v59 = vor.u32 %v6102_v46, %v5377_v18  ;;  %v5555_v54 = vld [vmem:[#allocation10 + $0x1c8] sm:$0xf]  ;;  %v6148_v21 = vld [vmem:[#allocation10 + $0x1d0] sm:$0xf0]  ;;  %v1361_v40 = vrot.slane %v7502_v63, 1  ;;  %6454 = vrsqrt.f32 %v7509_v3  ;;  %2230 = vmatpush.bf16.msra.mxu3 %v5376_v11  ;;  %v5364_v35 = vor.u32 %v6100_v50, %v5363_v58 }
 0x158   : > { %v1368_v33 = vadd.f32 %v1367_v55, %v1366_v51  ;;  %v7520_v32 = vmul.f32 0.125, %v1284_v52  ;;  %v1288_v17 = vadd.f32 %v1287_v61, %v1286_v26  ;;  %v6099_v30 = vld [vmem:[#allocation10 + $0x4c] sm:$0xf]  ;;  %v5365_v23 = vld [vmem:[#allocation10 + $0x54] sm:$0xf0]  ;;  %v1371_v16 = vrot.slane %v1370_v15, 2  ;;  %2249 = vmatpush.bf16.msrb.mxu0 %v5472_v49 }
 0x159   : > { %v5460_v24 = vor.u32 %v6124_v47, %v5459_v43  ;;  %v5351_v41 = vld [vmem:[#allocation10 + $0x30] sm:$0xf]  ;;  %v6097_v25 = vld [vmem:[#allocation10 + $0x38] sm:$0xf0]  ;;  %v7525_v18 = vadd.f32 1e-05, %v1431_v56  ;;  %v5556_v13 = vor.u32 %v6148_v21, %v5555_v54  ;;  %v5368_v52 = vor.u32 %v6099_v30, %v5365_v23 }
 0x15a   : > { %9232 = vst [vmem:[#allocation35_spill] sm:$0xff] %v7520_v32  ;;  %v1397_v27 = vmul.f32 0.125, %v1368_v33  ;;  %v1409_v39 = vmul.f32 %v7520_v32, %v7520_v32  ;;  %v1289_v45 = vrot.slane %v1288_v17, 1  ;;  %v5447_v51 = vld [vmem:[#allocation10 + $0xf0] sm:$0xf]  ;;  %v1372_v26 = vadd.f32 %v1371_v16, %v1370_v15  ;;  %2268 = vmatpush.bf16.msrb.mxu1 %v5568_v36 }
 0x15b   : > { %v6121_v46 = vld [vmem:[#allocation10 + $0xf8] sm:$0xf0]  ;;  %2287 = vmatpush.bf16.msrb.mxu2 %v5380_v59  ;;  %v5543_v11 = vld [vmem:[#allocation10 + $0x1b0] sm:$0xf]  ;;  %v9233_v49 = vrot.slane %v7359_v37, 2  ;;  %v7532_v50 = vmul.f32 %v7441_v34, %v7467_v12  ;;  %2231 = vmatpush.bf16.msra.mxu3 %v5364_v35  ;;  %v5352_v59 = vor.u32 %v6097_v25, %v5351_v41  ;;  %v1488_v12 = vmul.f32 %v7504_v8, %v7450_v53 }
 0x15c   : > { %v1421_v55 = vsub.f32 %v1397_v27, %v1409_v39  ;;  %v1290_v61 = vadd.f32 %v1289_v45, %v1288_v17  ;;  %v6145_v43 = vld [vmem:[#allocation10 + $0x1b8] sm:$0xf0]  ;;  %v6096_v47 = vld [vmem:[#allocation10 + $0x34] sm:$0xf]  ;;  %v5353_v56 = vld [vmem:[#allocation10 + $0x3c] sm:$0xf0]  ;;  %2250 = vmatpush.bf16.msrb.mxu0 %v5460_v24  ;;  %v5448_v54 = vor.u32 %v6121_v46, %v5447_v51  ;;  %v1498_v17 = vmul.f32 %v7517_v48, %v7461_v29 }
 0x15d   : > { %v1222_v58 = vadd.f32 %v9233_v49, %v7359_v37  ;;  %v1373_v36 = vrot.slane %v1372_v26, 1  ;;  %v5339_v21 = vld [vmem:[#allocation10 + $0x18] sm:$0xf]  ;;  %v6094_v33 = vld [vmem:[#allocation10 + $0x20] sm:$0xf0]  ;;  %v1468_v37 = vmul.f32 %v7459_v19, %v7427_v22  ;;  %v9234_v30 = vrot.slane %v7476_v0, 1  ;;  %v7546_v41 = vpop.eup %6454 }
 0x15e   : > { %v5435_v16 = vld [vmem:[#allocation10 + $0xd8] sm:$0xf]  ;;  %v6118_v35 = vld [vmem:[#allocation10 + $0xe0] sm:$0xf0]  ;;  %v1362_v25 = vadd.f32 %v1361_v40, %v7502_v63  ;;  %2269 = vmatpush.bf16.msrb.mxu1 %v5556_v13  ;;  %v5544_v27 = vor.u32 %v6145_v43, %v5543_v11  ;;  %v5356_v39 = vor.u32 %v6096_v47, %v5353_v56  ;;  %v6093_v51 = vld [vmem:[#allocation10 + $0x1c] sm:$0xf]  ;;  %6456 = vrsqrt.f32 %v7525_v18 }
 0x15f   : > { %v7544_v23 = vadd.f32 %v9234_v30, %v7476_v0  ;;  %v5531_v24 = vld [vmem:[#allocation10 + $0x198] sm:$0xf]  ;;  %2288 = vmatpush.bf16.msrb.mxu2 %v5368_v52  ;;  %v6142_v45 = vld [vmem:[#allocation10 + $0x1a0] sm:$0xf0]  ;;  %v5341_v46 = vld [vmem:[#allocation10 + $0x24] sm:$0xf0]  ;;  %v5340_v0 = vor.u32 %v6094_v33, %v5339_v21  ;;  %v1374_v32 = vadd.f32 %v1373_v36, %v1372_v26  ;;  %2232 = vmatpush.bf16.msra.mxu3 %v5352_v59  ;;  %vm1463_vm12 = vweird.f32 %v7403_v7 }
 0x160   : > { %v1433_v49 = vmax.f32 %v1421_v55, 0.0  ;;  %v7550_v15 = vmul.f32 0.125, %v1290_v61  ;;  %v5327_v30 = vld [vmem:[#allocation10] sm:$0xf]  ;;  %v6091_v20 = vld [vmem:[#allocation10 + $0x8] sm:$0xf0]  ;;  %2251 = vmatpush.bf16.msrb.mxu0 %v5448_v54  ;;  %v5436_v1 = vor.u32 %v6118_v35, %v5435_v16  ;;  %v1518_v43 = vmul.f32 %v7546_v41, %v7509_v3 }
 0x161   : > { %v5423_v63 = vld [vmem:[#allocation10 + $0xc0] sm:$0xf]  ;;  %v6115_v40 = vld [vmem:[#allocation10 + $0xc8] sm:$0xf0]  ;;  %v1223_v13 = vrot.slane %v1222_v58, 1  ;;  %v9235_v52 = vrot.slane %v7380_v10, 2  ;;  %v5532_v55 = vor.u32 %v6142_v45, %v5531_v24  ;;  %v1469_v36 = vmul.f32 %v7459_v19, %v1468_v37 }
 0x162   : > { %v5519_v61 = vld [vmem:[#allocation10 + $0x180] sm:$0xf]  ;;  %v6139_v47 = vld [vmem:[#allocation10 + $0x188] sm:$0xf0]  ;;  %v9236_v56 = vrot.slane %v7398_v44, 1  ;;  %2270 = vmatpush.bf16.msrb.mxu1 %v5544_v27  ;;  %v5344_v59 = vor.u32 %v6093_v51, %v5341_v46  ;;  %v5328_v54 = vor.u32 %v6091_v20, %v5327_v30  ;;  %v1410_v24 = vmul.f32 %v7550_v15, %v7550_v15 }
 0x163   : > { %v1240_v11 = vadd.f32 %v9235_v52, %v7380_v10  ;;  %2289 = vmatpush.bf16.msrb.mxu2 %v5356_v39  ;;  %v6090_v21 = vld [vmem:[#allocation10 + $0x4] sm:$0xf]  ;;  %v5329_v33 = vld [vmem:[#allocation10 + $0xc] sm:$0xf0]  ;;  %v1224_v16 = vadd.f32 %v1223_v13, %v1222_v58  ;;  %v7561_v35 = vadd.f32 1e-05, %v1433_v49  ;;  %v5424_v45 = vor.u32 %v6115_v40, %v5423_v63  ;;  %2233 = vmatpush.bf16.msra.mxu3 %v5340_v0 }
 0x164   : > { %v1326_v26 = vadd.f32 %v9236_v56, %v7398_v44  ;;  %v1489_v52 = vmul.f32 %v7504_v8, %v1488_v12  ;;  %v1398_v62 = vmul.f32 0.125, %v1374_v32  ;;  %2252 = vmatpush.bf16.msrb.mxu0 %v5436_v1  ;;  %v1460_v20 = vmul.f32 0.5, %v7532_v50  ;;  %v7569_v27 = vpop.eup %6456  ;;  %v6137_v7 = vld [vmem:[#allocation10 + $0x178] sm:$0xf0] }
 0x165   : > { %v1241_v10 = vrot.slane %v1240_v11, 1  ;;  %v7566_v37 = vmul.f32 0.125, %v1224_v16  ;;  %v5520_v58 = vor.u32 %v6139_v47, %v5519_v61  ;;  %v5332_v39 = vor.u32 %v6090_v21, %v5329_v33 }
 0x166   : > { %v1390_v51 = vmul.f32 0.125, %v1326_v26  ;;  %v1470_v46 = vmul.f32 0.5, %v1469_v36  ;;  %2271 = vmatpush.bf16.msrb.mxu1 %v5532_v55  ;;  %v1490_v12 = vmul.f32 0.5, %v1489_v52  ;;  %v1499_v1 = vmul.f32 %v7517_v48, %v1498_v17 }
 0x167   : > { %v1242_v44 = vadd.f32 %v1241_v10, %v1240_v11  ;;  %2290 = vmatpush.bf16.msrb.mxu2 %v5344_v59  ;;  %v1399_v32 = vmul.f32 %v7566_v37, %v7566_v37  ;;  %v9237_v0 = vrot.slane %v7457_v14, 2  ;;  %v7580_v30 = vmul.f32 0.125, %v7544_v23  ;;  %2234 = vmatpush.bf16.msra.mxu3 %v5328_v54 }
 0x168   : > { %v9238_v63 = vrot.slane %v7515_v9, 2  ;;  %v7585_v13 = vmul.f32 0.125, %v1362_v25  ;;  %v1422_v11 = vsub.f32 %v1398_v62, %v1410_v24  ;;  %2253 = vmatpush.bf16.msrb.mxu0 %v5424_v45  ;;  %v1461_v61 = vsub.f32 1.5, %v1460_v20  ;;  %v6113_v24 = vld [vmem:[#allocation10 + $0xb8] sm:$0xf0] }
 0x169   : > { %v7571_v49 = vmul.f32 0.125, %v1242_v44  ;;  %v1258_v50 = vadd.f32 %v9237_v0, %v7457_v14  ;;  %v1411_v17 = vsub.f32 %v7410_v57, %v1399_v32  ;;  %v1519_v14 = vmul.f32 %v7546_v41, %v1518_v43 }
 0x16a   : > { %v1276_v40 = vadd.f32 %v9238_v63, %v7515_v9  ;;  %v1471_v23 = vsub.f32 1.5, %v1470_v46  ;;  %v1500_v47 = vmul.f32 0.5, %v1499_v1  ;;  %6458 = vrsqrt.f32 %v7561_v35  ;;  %2272 = vmatpush.bf16.msrb.mxu1 %v5520_v58  ;;  %v5497_v46 = vld [vmem:[#allocation10 + $0x15c] sm:$0xf0] }
 0x16b   : > { %v1402_v55 = vmul.f32 %v7571_v49, %v7571_v49  ;;  %2291 = vmatpush.bf16.msrb.mxu2 %v5332_v39  ;;  %v1423_v62 = vmax.f32 %v1411_v17, 0.0  ;;  %v1491_v25 = vsub.f32 1.5, %v1490_v12  ;;  %v1528_v56 = vmul.f32 %v7569_v27, %v7525_v18 }
 0x16c   : > { %vm1464_vm13 = vweird.f32 %v7441_v34  ;;  %vm1473_vm14 = vweird.f32 %v7427_v22  ;;  %v1501_v57 = vsub.f32 1.5, %v1500_v47  ;;  %v1434_v43 = vmax.f32 %v1422_v11, 0.0 }
 0x16d   : > { %v1414_v9 = vsub.f32 %v1390_v51, %v1402_v55  ;;  %v7597_v36 = vadd.f32 1e-05, %v1423_v62  ;;  %v1462_v59 = vmul.f32 %v7441_v34, %v1461_v61  ;;  %v1472_v54 = vmul.f32 %v7459_v19, %v1471_v23  ;;  %vm7611_vm1 = vmor %vm1463_vm12, %vm1464_vm13 }
 0x16e   : > { %vm1474_vm15 = vweird.f32 %v7459_v19  ;;  %v1259_v21 = vrot.slane %v1258_v50, 1  ;;  %v1277_v33 = vrot.slane %v1276_v40, 1  ;;  %v1492_v10 = vmul.f32 %v7504_v8, %v1491_v25  ;;  %v6135_v25 = vld [vmem:[#allocation10 + $0x16c] sm:$0xf] }
 0x16f   : > { %v1426_v26 = vmax.f32 %v1414_v9, 0.0  ;;  %6460 = vrsqrt.f32 %v7597_v36  ;;  %vm1494_vm0 = vweird.f32 %v7504_v8  ;;  %v1502_v45 = vmul.f32 %v7517_v48, %v1501_v57  ;;  %vm7628_vm3 = vmor %vm1473_vm14, %vm1474_vm15 }
 0x170   : > { %vm1504_vm2 = vweird.f32 %v7517_v48  ;;  %v1260_v52 = vadd.f32 %v1259_v21, %v1258_v50  ;;  %v1278_v44 = vadd.f32 %v1277_v33, %v1276_v40  ;;  %v7617_v20 = vpop.eup %6458  ;;  %v7619_v58 = vadd.f32 1e-05, %v1434_v43  ;;  %v5605_v43 = vld [vmem:[#allocation10 + $0x234] sm:$0xf0] }
 0x171   : > { %v7602_v16 = vadd.f32 1e-05, %v1426_v26  ;;  %v1466_v39 = vsel %vm7611_vm1, %v7441_v34, %v1462_v59  ;;  %vm1493_vm4 = vweird.f32 %v7450_v53  ;;  %v1476_v51 = vsel %vm7628_vm3, %v7459_v19, %v1472_v54  ;;  %v5419_v26 = vld [vmem:[#allocation10 + $0xb0] sm:$0xf] }
 0x172   : > { %vm7637_vm5 = vmor %vm1493_vm4, %vm1494_vm0  ;;  %vm1503_vm6 = vweird.f32 %v7461_v29  ;;  %v7642_v34 = vmul.f32 0.125, %v1260_v52  ;;  %v7644_v22 = vmul.f32 0.125, %v1278_v44  ;;  %v7655_v19 = vmul.f32 0.5, %v1519_v14 }
 0x173   : > { %6462 = vrsqrt.f32 %v7602_v16  ;;  %v1496_v32 = vsel %vm7637_vm5, %v7504_v8, %v1492_v10  ;;  %vm7651_vm7 = vmor %vm1503_vm6, %vm1504_vm2  ;;  %v1548_v12 = vmul.f32 %v7617_v20, %v7561_v35  ;;  %v7669_v50 = vrot.slane %v1466_v39, 7 }
 0x174   : > { %v1506_v29 = vsel %vm7651_vm7, %v7517_v48, %v1502_v45  ;;  %v1405_v1 = vmul.f32 %v7642_v34, %v7642_v34  ;;  %v1408_v8 = vmul.f32 %v7644_v22, %v7644_v22  ;;  %6464 = vrsqrt.f32 %v7619_v58  ;;  %v5515_v45 = vld [vmem:[#allocation10 + $0x170] sm:$0xf] }
 0x175   : > { %v7666_v0 = vpop.eup %6460  ;;  %v7671_v63 = vrot.slane %v1476_v51, 6  ;;  %v1529_v40 = vmul.f32 %v7569_v27, %v1528_v56  ;;  %v7676_v48 = vrot.slane %v1496_v32, 7  ;;  %vm1587_vm8 = vcmask 1040384   ;;  %v6159_v56 = vld [vmem:[#allocation10 + $0x22c] sm:$0xf] }
 0x176   : > { %v1448_v11 = vmul.f32 %v7666_v0, %v7597_v36  ;;  %v1417_v55 = vsub.f32 %v7580_v30, %v1405_v1  ;;  %v1420_v17 = vsub.f32 %v7585_v13, %v1408_v8  ;;  %v7682_v14 = vrot.slane %v1506_v29, 6  ;;  %v5509_v13 = vld [vmem:[#allocation10 + $0x174] sm:$0xf0]  ;;  %v6132_v51 = vld [vmem:[#allocation10 + $0x154] sm:$0xf] }
 0x177   : > { %vm1589_vm9 = vcmask 1041408   ;;  %v1521_v23 = vsub.f32 1.5, %v7655_v19  ;;  %vm1524_vm10 = vweird.f32 %v7546_v41  ;;  %v7686_v47 = vmul.f32 0.5, %v1529_v40  ;;  %v6156_v1 = vld [vmem:[#allocation10 + $0x214] sm:$0xf] }
 0x178   : > { %v1549_v9 = vmul.f32 %v7617_v20, %v1548_v12  ;;  %v1449_v62 = vmul.f32 %v7666_v0, %v1448_v11  ;;  %vm1523_vm11 = vweird.f32 %v7509_v3  ;;  %vm1454_vm12 = vweird.f32 %v7666_v0  ;;  %v5407_v40 = vld [vmem:[#allocation10 + $0x98] sm:$0xf]  ;;  %v6110_v11 = vld [vmem:[#allocation10 + $0xa0] sm:$0xf0] }
 0x179   : > { %v7680_v61 = vpop.eup %6462  ;;  %v5512_v57 = vor.u32 %v6135_v25, %v5509_v13  ;;  %v7694_v59 = vmax.f32 %v1417_v55, 0.0  ;;  %v7696_v54 = vmax.f32 %v1420_v17, 0.0  ;;  %v5608_v10 = vor.u32 %v6159_v56, %v5605_v43  ;;  %vm7701_vm13 = vmor %vm1523_vm11, %vm1524_vm10  ;;  %v5503_v55 = vld [vmem:[#allocation10 + $0x158] sm:$0xf]  ;;  %v6134_v13 = vld [vmem:[#allocation10 + $0x160] sm:$0xf0] }
 0x17a   : > { %v1478_v30 = vmul.f32 %v7680_v61, %v7602_v16  ;;  %v1450_v21 = vmul.f32 0.5, %v1449_v62  ;;  %v1531_v3 = vsub.f32 1.5, %v7686_v47  ;;  %v7706_v44 = vpop.eup %6464  ;;  %vm1453_vm14 = vweird.f32 %v7597_v36  ;;  %v5593_v36 = vld [vmem:[#allocation10 + $0x21c] sm:$0xf0]  ;;  %v7717_v17 = vld [vmem:[#allocation7] sm:$0x7] }
 0x17b   : > { %vm1484_vm15 = vweird.f32 %v7680_v61  ;;  %2303 = vmatpush.bf16.msrb.mxu3 %v5512_v57  ;;  %v5420_v39 = vor.u32 %v6113_v24, %v5419_v26  ;;  %vm7712_vm0 = vmor %vm1453_vm14, %vm1454_vm12  ;;  %2322 = vmatpush.bf16.msra.mxu0 %v5608_v10  ;;  %v5516_v12 = vor.u32 %v6137_v7, %v5515_v45  ;;  %v5500_v29 = vor.u32 %v6132_v51, %v5497_v46  ;;  %v5485_v26 = vld [vmem:[#allocation10 + $0x144] sm:$0xf0]  ;;  %v5395_v7 = vld [vmem:[#allocation10 + $0x80] sm:$0xf] }
 0x17c   : > { %v1479_v33 = vmul.f32 %v7680_v61, %v1478_v30  ;;  %v1451_v32 = vsub.f32 1.5, %v1450_v21  ;;  %vm1483_vm1 = vweird.f32 %v7602_v16  ;;  %v5596_v8 = vor.u32 %v6156_v1, %v5593_v36  ;;  %v6129_v16 = vld [vmem:[#allocation10 + $0x13c] sm:$0xf]  ;;  %v6107_v51 = vld [vmem:[#allocation10 + $0x88] sm:$0xf0] }
 0x17d   : > { %2341 = vmatpush.bf16.msra.mxu1 %v5420_v39  ;;  %vm7722_vm2 = vmor %vm1483_vm1, %vm1484_vm15  ;;  %2360 = vmatpush.bf16.msra.mxu2 %v5516_v12  ;;  %v5408_v25 = vor.u32 %v6110_v11, %v5407_v40  ;;  %v7726_v56 = vmul.f32 0.5, %v1549_v9  ;;  %v1558_v57 = vmul.f32 %v7706_v44, %v7619_v58  ;;  %v5504_v43 = vor.u32 %v6134_v13, %v5503_v55  ;;  %v6153_v21 = vld [vmem:[#allocation10 + $0x1fc] sm:$0xf]  ;;  %v5491_v46 = vld [vmem:[#allocation10 + $0x140] sm:$0xf] }
 0x17e   : > { %v1480_v19 = vmul.f32 0.5, %v1479_v33  ;;  %v1452_v47 = vmul.f32 %v7666_v0, %v1451_v32  ;;  %v5581_v33 = vld [vmem:[#allocation10 + $0x204] sm:$0xf0]  ;;  %v7731_v10 = vmul.f32 %v7546_v41, %v1521_v23  ;;  %v5488_v9 = vor.u32 %v6129_v16, %v5485_v26  ;;  %v6131_v12 = vld [vmem:[#allocation10 + $0x148] sm:$0xf0] }
 0x17f   : > { %2304 = vmatpush.bf16.msrb.mxu3 %v5500_v29  ;;  %2323 = vmatpush.bf16.msra.mxu0 %v5596_v8  ;;  %v5584_v39 = vor.u32 %v6153_v21, %v5581_v33  ;;  %v6126_v23 = vld [vmem:[#allocation10 + $0x124] sm:$0xf]  ;;  %v5473_v29 = vld [vmem:[#allocation10 + $0x12c] sm:$0xf0]  ;;  %vm1533_vm3 = vweird.f32 %v7525_v18  ;;  %vm1534_vm4 = vweird.f32 %v7569_v27  ;;  %v5492_v1 = vor.u32 %v6131_v12, %v5491_v46  ;;  %v5383_v8 = vld [vmem:[#allocation10 + $0x68] sm:$0xf] }
 0x180   : > { %v1481_v62 = vsub.f32 1.5, %v1480_v19  ;;  %v1456_v24 = vsel %vm7712_vm0, %v7666_v0, %v1452_v47  ;;  %v5396_v19 = vor.u32 %v6107_v51, %v5395_v7  ;;  %v6150_v36 = vld [vmem:[#allocation10 + $0x1e4] sm:$0xf]  ;;  %v7747_v40 = vmul.f32 %v7569_v27, %v1531_v3  ;;  %v6128_v30 = vld [vmem:[#allocation10 + $0x130] sm:$0xf0]  ;;  %vm7766_vm5 = vmor %vm1533_vm3, %vm1534_vm4 }
 0x181   : > { %v1588_v32 = vsel %vm1587_vm8, %v1456_v24, %v7669_v50  ;;  %2342 = vmatpush.bf16.msra.mxu1 %v5408_v25  ;;  %2361 = vmatpush.bf16.msra.mxu2 %v5504_v43  ;;  %v5569_v50 = vld [vmem:[#allocation10 + $0x1ec] sm:$0xf0]  ;;  %v5476_v47 = vor.u32 %v6126_v23, %v5473_v29  ;;  %v1559_v52 = vmul.f32 %v7706_v44, %v1558_v57  ;;  %v7777_v18 = vadd.f32 1e-05, %v7696_v54 }
 0x182   : > { %v1482_v45 = vmul.f32 %v7680_v61, %v1481_v62  ;;  %v1590_v53 = vsel %vm1589_vm9, %v1588_v32, %v7671_v63  ;;  %v6104_v62 = vld [vmem:[#allocation10 + $0x70] sm:$0xf0]  ;;  %v1526_v63 = vsel %vm7701_vm13, %v7546_v41, %v7731_v10  ;;  %v5572_v3 = vor.u32 %v6150_v36, %v5569_v50  ;;  %v5461_v41 = vld [vmem:[#allocation10 + $0x114] sm:$0xf0] }
 0x183   : > { %v1601_v55 = vmul.f32 %v1590_v53, %v7717_v17  ;;  %2305 = vmatpush.bf16.msrb.mxu3 %v5488_v9  ;;  %2324 = vmatpush.bf16.msra.mxu0 %v5584_v39  ;;  %v5384_v13 = vor.u32 %v6104_v62, %v5383_v8  ;;  %v1551_v7 = vsub.f32 1.5, %v7726_v56  ;;  %vm1554_vm6 = vweird.f32 %v7617_v20  ;;  %v7792_v56 = vld [vmem:[#allocation8] sm:$0x7] }
 0x184   : > { %v1486_v0 = vsel %vm7722_vm2, %v7680_v61, %v1482_v45  ;;  %v5479_v61 = vld [vmem:[#allocation10 + $0x128] sm:$0xf]  ;;  %vm1553_vm7 = vweird.f32 %v7561_v35  ;;  %vm1564_vm10 = vweird.f32 %v7706_v44  ;;  %v1560_v12 = vmul.f32 0.5, %v1559_v52  ;;  %v5467_v35 = vld [vmem:[#allocation10 + $0x110] sm:$0xf] }
 0x185   : > { %v1591_v11 = vsel %vm1587_vm8, %v1486_v0, %v7676_v48  ;;  %v7759_v48 = vadd.f32 1e-05, %v7694_v59  ;;  %v1609_v43 = vperm.slane %v1601_v55, 0  ;;  %v1610_v26 = vperm.slane %v1601_v55, 1  ;;  %2343 = vmatpush.bf16.msra.mxu1 %v5396_v19  ;;  %2362 = vmatpush.bf16.msra.mxu2 %v5492_v1  ;;  %vm7825_vm13 = vmor %vm1553_vm7, %vm1554_vm6 }
 0x186   : > { %v1592_v25 = vsel %vm1589_vm9, %v1591_v11, %v7682_v14  ;;  %v1611_v21 = vperm.slane %v1601_v55, 2  ;;  %v5480_v14 = vor.u32 %v6128_v30, %v5479_v61  ;;  %v1536_v59 = vsel %vm7766_vm5, %v7569_v27, %v7747_v40 }
 0x187   : > { %v1602_v16 = vmul.f32 %v1592_v25, %v7717_v17  ;;  %6466 = vrsqrt.f32 %v7759_v48  ;;  %2306 = vmatpush.bf16.msrb.mxu3 %v5476_v47  ;;  %v1633_v45 = vmul.f32 %v1609_v43, %v7566_v37  ;;  %v1634_v9 = vmul.f32 %v1610_v26, %v7351_v28  ;;  %2325 = vmatpush.bf16.msra.mxu0 %v5572_v3 }
 0x188   : > { %v1635_v39 = vmul.f32 %v1611_v21, %v7374_v4  ;;  %v1681_v51 = vmul.f32 %v1609_v43, %v7318_v38  ;;  %v1682_v54 = vmul.f32 %v1610_v26, %v7323_v42  ;;  %6468 = vrsqrt.f32 %v7777_v18 }
 0x189   : > { %v1612_v33 = vperm.slane %v1602_v16, 0  ;;  %v1613_v10 = vperm.slane %v1602_v16, 1  ;;  %v1614_v24 = vperm.slane %v1602_v16, 2  ;;  %2344 = vmatpush.bf16.msra.mxu1 %v5384_v13  ;;  %v1657_v46 = vrot.slane %v1634_v9, 7  ;;  %2363 = vmatpush.bf16.msra.mxu2 %v5480_v14 }
 0x18a   : > { %v1658_v28 = vrot.slane %v1635_v39, 6  ;;  %v1683_v32 = vmul.f32 %v1611_v21, %v7332_v60  ;;  %vm1563_vm11 = vweird.f32 %v7619_v58  ;;  %v7807_v0 = vmul.f32 %v7617_v20, %v1551_v7  ;;  %v5371_v7 = vld [vmem:[#allocation10 + $0x50] sm:$0xf]  ;;  %v5449_v58 = vld [vmem:[#allocation10 + $0xfc] sm:$0xf0] }
 0x18b   : > { %v1637_v27 = vmul.f32 %v1613_v10, %v7389_v31  ;;  %v1638_v57 = vmul.f32 %v1614_v24, %v7414_v2  ;;  %v1636_v37 = vmul.f32 %v1612_v33, %v7571_v49  ;;  %v1684_v4 = vmul.f32 %v1612_v33, %v7337_v5  ;;  %v9255_v5 = vld [vmem:[#allocation26_spill] sm:$0xff]  ;;  %vm7847_vm0 = vmor %vm1563_vm11, %vm1564_vm10 }
 0x18c   : > { %v1685_v38 = vmul.f32 %v1613_v10, %v7339_v6  ;;  %v1665_v49 = vsel %vm1587_vm8, %v1633_v45, %v1657_v46  ;;  %v1686_v19 = vmul.f32 %v1614_v24, %v9255_v5  ;;  %v1561_v60 = vsub.f32 1.5, %v1560_v12  ;;  %v6147_v24 = vld [vmem:[#allocation10 + $0x1cc] sm:$0xf]  ;;  %v5557_v45 = vld [vmem:[#allocation10 + $0x1d4] sm:$0xf0] }
 0x18d   : > { %v1659_v31 = vrot.slane %v1637_v27, 7  ;;  %v1660_v2 = vrot.slane %v1638_v57, 6  ;;  %v7796_v42 = vpop.eup %6466  ;;  %v1666_v23 = vsel %vm1589_vm9, %v1665_v49, %v1658_v28  ;;  %v1583_v8 = vrot.slane %v1526_v63, 7  ;;  %v6123_v63 = vld [vmem:[#allocation10 + $0x10c] sm:$0xf] }
 0x18e   : > { %v1508_v6 = vmul.f32 %v7796_v42, %v7759_v48  ;;  %v1677_v1 = vsub.f32 %v7792_v56, %v1666_v23  ;;  %vm1514_vm12 = vweird.f32 %v7796_v42  ;;  %v7814_v40 = vrot.slane %v1536_v59, 6  ;;  %v7817_v61 = vpop.eup %6468  ;;  %v6101_v27 = vld [vmem:[#allocation10 + $0x58] sm:$0xf0]  ;;  %v6120_v46 = vld [vmem:[#allocation10 + $0xf4] sm:$0xf] }
 0x18f   : > { %v1667_v29 = vsel %vm1587_vm8, %v1636_v37, %v1659_v31  ;;  %v1562_v62 = vmul.f32 %v7706_v44, %v1561_v60  ;;  %v1538_v21 = vmul.f32 %v7817_v61, %v7777_v18  ;;  %vm1513_vm14 = vweird.f32 %v7759_v48  ;;  %v6144_v49 = vld [vmem:[#allocation10 + $0x1b4] sm:$0xf]  ;;  %v5545_v12 = vld [vmem:[#allocation10 + $0x1bc] sm:$0xf0]  ;;  %v5359_v23 = vld [vmem:[#allocation10 + $0x38] sm:$0xf] }
 0x190   : > { %v1668_v53 = vsel %vm1589_vm9, %v1667_v29, %v1660_v2  ;;  %v1509_v50 = vmul.f32 %v7796_v42, %v1508_v6  ;;  %v1697_v11 = vperm.slane %v1677_v1, 0  ;;  %v1698_v55 = vperm.slane %v1677_v1, 1  ;;  %vm7853_vm1 = vmor %vm1513_vm14, %vm1514_vm12  ;;  %v6098_v29 = vld [vmem:[#allocation10 + $0x40] sm:$0xf0]  ;;  %v5425_v10 = vld [vmem:[#allocation10 + $0xcc] sm:$0xf0] }
 0x191   : > { %v1678_v36 = vsub.f32 %v7792_v56, %v1668_v53  ;;  %v1699_v47 = vperm.slane %v1677_v1, 2  ;;  %v1539_v9 = vmul.f32 %v7817_v61, %v1538_v21  ;;  %vm1544_vm15 = vweird.f32 %v7817_v61  ;;  %v5455_v53 = vld [vmem:[#allocation10 + $0xf8] sm:$0xf]  ;;  %v6122_v1 = vld [vmem:[#allocation10 + $0x100] sm:$0xf0] }
 0x192   : > { %v1510_v13 = vmul.f32 0.5, %v1509_v50  ;;  %v1721_v16 = vadd.f32 %v1697_v11, %v1681_v51  ;;  %v1722_v43 = vadd.f32 %v1698_v55, %v1682_v54  ;;  %v1556_v39 = vsel %vm7825_vm13, %v7617_v20, %v7807_v0  ;;  %v6125_v20 = vld [vmem:[#allocation10 + $0x118] sm:$0xf0] }
 0x193   : > { %v1700_v30 = vperm.slane %v1678_v36, 0  ;;  %v1701_v25 = vperm.slane %v1678_v36, 1  ;;  %v1702_v3 = vperm.slane %v1678_v36, 2  ;;  %v1723_v26 = vadd.f32 %v1699_v47, %v1683_v32 }
 0x194   : > { %v1511_v33 = vsub.f32 1.5, %v1510_v13  ;;  %v1566_v31 = vsel %vm7847_vm0, %v7706_v44, %v1562_v62  ;;  %v5464_v2 = vor.u32 %v6123_v63, %v5461_v41  ;;  %v5372_v5 = vor.u32 %v6101_v27, %v5371_v7  ;;  %v5437_v62 = vld [vmem:[#allocation10 + $0xe4] sm:$0xf0]  ;;  %v5347_v13 = vld [vmem:[#allocation10 + $0x20] sm:$0xf] }
 0x195   : > { %v1724_v14 = vadd.f32 %v1700_v30, %v1684_v4  ;;  %v1725_v59 = vadd.f32 %v1701_v25, %v1685_v38  ;;  %v1726_v52 = vadd.f32 %v1702_v3, %v1686_v19  ;;  %v1540_v4 = vmul.f32 0.5, %v1539_v9  ;;  %v6141_v30 = vld [vmem:[#allocation10 + $0x19c] sm:$0xf]  ;;  %v5533_v25 = vld [vmem:[#allocation10 + $0x1a4] sm:$0xf0] }
 0x196   : > { %v1512_v48 = vmul.f32 %v7796_v42, %v1511_v33  ;;  %v5560_v38 = vor.u32 %v6147_v24, %v5557_v45  ;;  %v5468_v19 = vor.u32 %v6125_v20, %v5467_v35  ;;  %vm1543_vm2 = vweird.f32 %v7777_v18  ;;  %2307 = vmatpush.bf16.msrb.mxu3 %v5464_v2  ;;  %v6117_v18 = vld [vmem:[#allocation10 + $0xdc] sm:$0xf]  ;;  %2345 = vmatpush.bf16.msra.mxu1 %v5372_v5  ;;  %v6119_v41 = vld [vmem:[#allocation10 + $0xe8] sm:$0xf0]  ;;  %v6114_v33 = vld [vmem:[#allocation10 + $0xc4] sm:$0xf] }
 0x197   : > { %v7836_v57 = vpack.c.bf16 %v1724_v14, %v1721_v16  ;;  %v7838_v51 = vpack.c.bf16 %v1725_v59, %v1722_v43  ;;  %v7840_v54 = vpack.c.bf16 %v1726_v52, %v1723_v26  ;;  %v1541_v44 = vsub.f32 1.5, %v1540_v4  ;;  %vm7871_vm3 = vmor %vm1543_vm2, %vm1544_vm15  ;;  %v6095_v16 = vld [vmem:[#allocation10 + $0x28] sm:$0xf0]  ;;  %v9264_v45 = vld [vmem:[#allocation31_spill] sm:$0xff] }
 0x198   : > { %v1516_v32 = vsel %vm7853_vm1, %v7796_v42, %v1512_v48  ;;  %v1585_v6 = vrot.slane %v1556_v39, 7  ;;  %v1586_v60 = vrot.slane %v1566_v31, 6  ;;  %2326 = vmatpush.bf16.msra.mxu0 %v5560_v38  ;;  %v5452_v50 = vor.u32 %v6120_v46, %v5449_v58  ;;  %2364 = vmatpush.bf16.msra.mxu2 %v5468_v19  ;;  %v9265_v9 = vld [vmem:[#allocation32_spill] sm:$0xff]  ;;  %v6138_v27 = vld [vmem:[#allocation10 + $0x184] sm:$0xf] }
 0x199   : > { %2235 = vmatmul.bf16.vlgmr.msra.gmra.mxu3 %v7836_v57  ;;  %2254 = vmatmul.bf16.vlgmr.msrb.gmra.mxu0 %v7838_v51  ;;  %v1593_v0 = vsel %vm1587_vm8, %v1516_v32, %v1583_v8  ;;  %v5548_v11 = vor.u32 %v6144_v49, %v5545_v12  ;;  %v1542_v55 = vmul.f32 %v7817_v61, %v1541_v44  ;;  %v5521_v35 = vld [vmem:[#allocation10 + $0x18c] sm:$0xf0]  ;;  %v5335_v20 = vld [vmem:[#allocation10 + $0x8] sm:$0xf]  ;;  %v6092_v46 = vld [vmem:[#allocation10 + $0x10] sm:$0xf0] }
 0x19a   : > { %2273 = vmatmul.bf16.vlgmr.msrb.gmra.mxu1 %v7840_v54  ;;  %2292 = vmatmul.bf16.vlgmr.msrb.gmra.mxu2 %v7836_v57  ;;  %v1594_v36 = vsel %vm1589_vm9, %v1593_v0, %v7814_v40  ;;  %v5360_v47 = vor.u32 %v6098_v29, %v5359_v23  ;;  %v5456_v3 = vor.u32 %v6122_v1, %v5455_v53  ;;  %v5443_v40 = vld [vmem:[#allocation10 + $0xe0] sm:$0xf]  ;;  %v5431_v38 = vld [vmem:[#allocation10 + $0xc8] sm:$0xf]  ;;  %v6116_v58 = vld [vmem:[#allocation10 + $0xd0] sm:$0xf0] }
 0x19b   : > { %v7879_v8 = vmul.f32 %v1594_v36, %v7717_v17  ;;  %v1546_v43 = vsel %vm7871_vm3, %v7817_v61, %v1542_v55  ;;  %2308 = vmatpush.bf16.msrb.mxu3 %v5452_v50  ;;  %v5440_v59 = vor.u32 %v6117_v18, %v5437_v62  ;;  %v5536_v52 = vor.u32 %v6141_v30, %v5533_v25  ;;  %v5611_v23 = vld [vmem:[#allocation10 + $0x230] sm:$0xf]  ;;  %v6161_v29 = vld [vmem:[#allocation10 + $0x238] sm:$0xf0]  ;;  %v9266_v44 = vld [vmem:[#allocation35_spill] sm:$0xff] }
 0x19c   : > { %v1595_v14 = vsel %vm1587_vm8, %v1546_v43, %v1585_v6  ;;  %2327 = vmatpush.bf16.msra.mxu0 %v5548_v11  ;;  %2346 = vmatpush.bf16.msra.mxu1 %v5360_v47  ;;  %v5348_v7 = vor.u32 %v6095_v16, %v5347_v13  ;;  %v5444_v37 = vor.u32 %v6119_v41, %v5443_v40  ;;  %v5599_v42 = vld [vmem:[#allocation10 + $0x218] sm:$0xf]  ;;  %v5587_v25 = vld [vmem:[#allocation10 + $0x200] sm:$0xf] }
 0x19d   : > { %v1615_v26 = vperm.slane %v7879_v8, 0  ;;  %v1616_v21 = vperm.slane %v7879_v8, 1  ;;  %v1617_v63 = vperm.slane %v7879_v8, 2  ;;  %v1596_v24 = vsel %vm1589_vm9, %v1595_v14, %v1586_v60  ;;  %2365 = vmatpush.bf16.msra.mxu2 %v5456_v3  ;;  %v6158_v60 = vld [vmem:[#allocation10 + $0x220] sm:$0xf0]  ;;  %v9268_v40 = vld [vmem:[#allocation28_spill] sm:$0xff] }
 0x19e   : > { %v1604_v48 = vmul.f32 %v1596_v24, %v7717_v17  ;;  %v5428_v2 = vor.u32 %v6114_v33, %v5425_v10  ;;  %v5524_v19 = vor.u32 %v6138_v27, %v5521_v35  ;;  %v5336_v12 = vor.u32 %v6092_v46, %v5335_v20  ;;  %v6155_v3 = vld [vmem:[#allocation10 + $0x208] sm:$0xf0]  ;;  %v9271_v10 = vld [vmem:[#allocation29_spill] sm:$0xff] }
 0x19f   : > { %v1640_v61 = vmul.f32 %v1616_v21, %v9264_v45  ;;  %v1641_v39 = vmul.f32 %v1617_v63, %v9265_v9  ;;  %v1639_v28 = vmul.f32 %v1615_v26, %v7642_v34  ;;  %2309 = vmatpush.bf16.msrb.mxu3 %v5440_v59  ;;  %v5432_v53 = vor.u32 %v6116_v58, %v5431_v38  ;;  %v9269_v14 = vld [vmem:[#allocation30_spill] sm:$0xff]  ;;  %v5575_v35 = vld [vmem:[#allocation10 + $0x1e8] sm:$0xf]  ;;  %v5551_v58 = vld [vmem:[#allocation10 + $0x1b8] sm:$0xf] }
 0x1a0   : > { %v1618_v49 = vperm.slane %v1604_v48, 0  ;;  %v1619_v32 = vperm.slane %v1604_v48, 1  ;;  %v1620_v5 = vperm.slane %v1604_v48, 2  ;;  %2328 = vmatpush.bf16.msra.mxu0 %v5536_v52  ;;  %2347 = vmatpush.bf16.msra.mxu1 %v5348_v7  ;;  %v5612_v18 = vor.u32 %v6161_v29, %v5611_v23  ;;  %v9270_v52 = vld [vmem:[#allocation33_spill] sm:$0xff]  ;;  %v9272_v45 = vld [vmem:[#allocation34_spill] sm:$0xff] }
 0x1a1   : > { %v1661_v4 = vrot.slane %v1640_v61, 7  ;;  %v1662_v31 = vrot.slane %v1641_v39, 6  ;;  %2366 = vmatpush.bf16.msra.mxu2 %v5444_v37  ;;  %v1688_v43 = vmul.f32 %v1616_v21, %v9268_v40  ;;  %v1689_v24 = vmul.f32 %v1617_v63, %v9271_v10  ;;  %v6152_v21 = vld [vmem:[#allocation10 + $0x1f0] sm:$0xf0]  ;;  %v5563_v63 = vld [vmem:[#allocation10 + $0x1d0] sm:$0xf] }
 0x1a2   : > { %v1643_v6 = vmul.f32 %v1619_v32, %v9266_v44  ;;  %v1644_v34 = vmul.f32 %v1620_v5, %v7550_v15  ;;  %v1642_v36 = vmul.f32 %v1618_v49, %v7644_v22  ;;  %v5600_v15 = vor.u32 %v6158_v60, %v5599_v42  ;;  %v9267_v22 = vld [vmem:[#allocation27_spill] sm:$0xff] }
 0x1a3   : > { %v1669_v17 = vsel %vm1587_vm8, %v1639_v28, %v1661_v4  ;;  %2310 = vmatpush.bf16.msrb.mxu3 %v5428_v2  ;;  %v1687_v16 = vmul.f32 %v1615_v26, %v9267_v22  ;;  %v1690_v59 = vmul.f32 %v1618_v49, %v9269_v14  ;;  %v1691_v33 = vmul.f32 %v1619_v32, %v9270_v52  ;;  %v6149_v2 = vld [vmem:[#allocation10 + $0x1d8] sm:$0xf0]  ;;  %v6146_v49 = vld [vmem:[#allocation10 + $0x1c0] sm:$0xf0]  ;;  %v6140_v23 = vld [vmem:[#allocation10 + $0x190] sm:$0xf0] }
 0x1a4   : > { %v1670_v0 = vsel %vm1589_vm9, %v1669_v17, %v1662_v31  ;;  %v1663_v50 = vrot.slane %v1643_v6, 7  ;;  %v1664_v11 = vrot.slane %v1644_v34, 6  ;;  %2329 = vmatpush.bf16.msra.mxu0 %v5524_v19  ;;  %2348 = vmatpush.bf16.msra.mxu1 %v5336_v12  ;;  %v1692_v61 = vmul.f32 %v1620_v5, %v9272_v45  ;;  %v5539_v5 = vld [vmem:[#allocation10 + $0x1a0] sm:$0xf]  ;;  %v6143_v19 = vld [vmem:[#allocation10 + $0x1a8] sm:$0xf0] }
 0x1a5   : > { %v1679_v1 = vsub.f32 %v7792_v56, %v1670_v0  ;;  %2367 = vmatpush.bf16.msra.mxu2 %v5432_v53  ;;  %v5588_v26 = vor.u32 %v6155_v3, %v5587_v25  ;;  %v5576_v8 = vor.u32 %v6152_v21, %v5575_v35  ;;  %v5564_v38 = vor.u32 %v6149_v2, %v5563_v63  ;;  %v5527_v12 = vld [vmem:[#allocation10 + $0x188] sm:$0xf]  ;;  %v7928_v44 = vld [vmem:[%s9273_s4] sm:$0x7] }
 0x1a6   : > { %v1671_v55 = vsel %vm1587_vm8, %v1642_v36, %v1663_v50  ;;  %v5552_v32 = vor.u32 %v6146_v49, %v5551_v58  ;;  %v5540_v17 = vor.u32 %v6143_v19, %v5539_v5  ;;  %v5528_v29 = vor.u32 %v6140_v23, %v5527_v12 }
 0x1a7   : > { %2379 = vmatpush.bf16.msra.mxu3 %v5612_v18  ;;  %v1672_v47 = vsel %vm1589_vm9, %v1671_v55, %v1664_v11  ;;  %v1703_v62 = vperm.slane %v1679_v1, 0  ;;  %v1704_v30 = vperm.slane %v1679_v1, 1  ;;  %v1705_v41 = vperm.slane %v1679_v1, 2 }
 0x1a8   : > { %v1680_v13 = vsub.f32 %v7792_v56, %v1672_v47  ;;  %v1837_v6 = vperm.slane %v7928_v44, 0 }
 0x1a9   : > { %v1727_v7 = vadd.f32 %v1703_v62, %v1687_v16  ;;  %v1728_v27 = vadd.f32 %v1704_v30, %v1688_v43  ;;  %v1729_v20 = vadd.f32 %v1705_v41, %v1689_v24 }
 0x1aa   : > { %v1706_v56 = vperm.slane %v1680_v13, 0  ;;  %v1707_v9 = vperm.slane %v1680_v13, 1  ;;  %v1708_v39 = vperm.slane %v1680_v13, 2 }
 0x1ab   : > { %2380 = vmatpush.bf16.msra.mxu3 %v5600_v15 }
 0x1ac   : > { %v1730_v48 = vadd.f32 %v1706_v56, %v1690_v59  ;;  %v1731_v37 = vadd.f32 %v1707_v9, %v1691_v33  ;;  %v1732_v46 = vadd.f32 %v1708_v39, %v1692_v61 }
 0x1ae   : > { %v1736_v28 = vpack.c.bf16 %v1730_v48, %v1727_v7  ;;  %v1737_v4 = vpack.c.bf16 %v1731_v37, %v1728_v27  ;;  %v1738_v31 = vpack.c.bf16 %v1732_v46, %v1729_v20 }
 0x1af   : > { %2381 = vmatpush.bf16.msra.mxu3 %v5588_v26 }
 0x1b0   : > { %2240 = vmatmul.bf16.gmra.mxu3 %v1736_v28  ;;  %2259 = vmatmul.bf16.gmra.mxu0 %v1737_v4 }
 0x1b1   : > { %2278 = vmatmul.bf16.gmra.mxu1 %v1738_v31  ;;  %2297 = vmatmul.bf16.gmra.mxu2 %v1736_v28 }
 0x1b3   : > { %2382 = vmatpush.bf16.msra.mxu3 %v5576_v8 }
 0x1b7   : > { %2383 = vmatpush.bf16.msra.mxu3 %v5564_v38 }
 0x1bb   : > { %2384 = vmatpush.bf16.msra.mxu3 %v5552_v32 }
 0x1bf   : > { %2385 = vmatpush.bf16.msra.mxu3 %v5540_v17  ;;  %v7952_v17 = vperm.slane %v7928_v44, 1 }
 0x1c0   : > { %2311 = vmatmul.bf16.vlgmr.msrb.gmra.mxu3 %v7838_v51  ;;  %2330 = vmatmul.bf16.vlgmr.msra.gmra.mxu0 %v7840_v54 }
 0x1c1   : > { %2349 = vmatmul.bf16.vlgmr.msra.gmra.mxu1 %v7836_v57  ;;  %2368 = vmatmul.bf16.vlgmr.msra.gmra.mxu2 %v7838_v51 }
 0x1c3   : > { %2386 = vmatpush.bf16.msra.mxu3 %v5528_v29 }
 0x1d0   : > { %2316 = vmatmul.bf16.gmra.mxu3 %v1737_v4  ;;  %2335 = vmatmul.bf16.gmra.mxu0 %v1738_v31 }
 0x1d1   : > { %2354 = vmatmul.bf16.gmra.mxu1 %v1736_v28  ;;  %2373 = vmatmul.bf16.gmra.mxu2 %v1737_v4 }
 0x1e0   : > { %2387 = vmatmul.bf16.vlgmr.msra.gmra.mxu3 %v7840_v54 }
 0x1f0   : > { %2392 = vmatmul.bf16.gmra.mxu3 %v1738_v31 }
 0x216   : > { %v2255_v34 = vpop.f32.mrf.mxu0 }
 0x217   : > { %v2274_v57 = vpop.f32.mrf.mxu1 }
 0x21c   : > { %v2236_v0 = vpop.f32.mrf.mxu3 }
 0x21d   : > { %v2237_v53 = vadd.f32 %v2236_v0, %v1837_v6  ;;  %v7931_v60 = vpop.f32.mrf.mxu2 }
 0x21e   : > { %v2257_v50 = vpop.f32.mrf.mxu0 }
 0x21f   : > { %v2256_v51 = vadd.f32 %v2255_v34, %v2237_v53  ;;  %v2276_v11 = vpop.f32.mrf.mxu1 }
 0x221   : > { %v2275_v1 = vadd.f32 %v2274_v57, %v2256_v51 }
 0x223   : > { %v2410_v42 = vmul.f32 1.442695, %v2275_v1  ;;  %vm2398_vm4 = vcmp.gt.f32.partialorder %v2275_v1, 0.0 }
 0x224   : > { %v2238_v36 = vpop.f32.mrf.mxu3 }
 0x225   : > { %6470 = vpow2.f32 %v2410_v42  ;;  %v2239_v54 = vadd.f32 %v2238_v36, %v1837_v6  ;;  %v7933_v30 = vpop.f32.mrf.mxu2 }
 0x227   : > { %v2258_v18 = vadd.f32 %v2257_v50, %v2239_v54  ;;  %v2294_v54 = vadd.f32 %v7931_v60, %v7952_v17 }
 0x229   : > { %v2277_v55 = vadd.f32 %v2276_v11, %v2258_v18 }
 0x22b   : > { %v6471_v15 = vpop.eup %6470  ;;  %v2416_v47 = vmul.f32 1.442695, %v2277_v55  ;;  %vm2401_vm5 = vcmp.gt.f32.partialorder %v2277_v55, 0.0 }
 0x22c   : > { %v5613_v62 = vadd.f32 -1.0, %v6471_v15 }
 0x22d   : > { %6472 = vpow2.f32 %v2416_v47  ;;  %v2260_v13 = vpop.f32.mrf.mxu0 }
 0x22e   : > { %v2446_v25 = vmul.f32 1.6732632, %v5613_v62  ;;  %v2279_v16 = vpop.f32.mrf.mxu1 }
 0x230   : > { %v2458_v3 = vsel %vm2398_vm4, %v2275_v1, %v2446_v25 }
 0x231   : > { %v7935_v22 = vmul.f32 1.050701, %v2458_v3 }
 0x233   : > { %v6473_v40 = vpop.eup %6472  ;;  %v2484_v43 = vrot.slane %v7935_v22, 4  ;;  %v2556_v41 = vmul.f32 %v7935_v22, %v7935_v22  ;;  %v2241_v10 = vpop.f32.mrf.mxu3 }
 0x234   : > { %v5616_v14 = vadd.f32 -1.0, %v6473_v40  ;;  %v2242_v61 = vadd.f32 %v2241_v10, %v1837_v6  ;;  %v7941_v56 = vpop.f32.mrf.mxu2 }
 0x235   : > { %v2485_v59 = vadd.f32 %v2484_v43, %v7935_v22  ;;  %v2568_v52 = vrot.slane %v2556_v41, 4  ;;  %v2262_v39 = vpop.f32.mrf.mxu0 }
 0x236   : > { %v2449_v33 = vmul.f32 1.6732632, %v5616_v14  ;;  %v2261_v35 = vadd.f32 %v2260_v13, %v2242_v61  ;;  %v2281_v21 = vpop.f32.mrf.mxu1 }
 0x237   : > { %v2486_v24 = vrot.slane %v2485_v59, 2  ;;  %v2569_v45 = vadd.f32 %v2568_v52, %v2556_v41 }
 0x238   : > { %v2461_v9 = vsel %vm2401_vm5, %v2277_v55, %v2449_v33  ;;  %v2280_v46 = vadd.f32 %v2279_v16, %v2261_v35 }
 0x239   : > { %v2487_v26 = vadd.f32 %v2486_v24, %v2485_v59  ;;  %v2570_v7 = vrot.slane %v2569_v45, 2  ;;  %v7943_v27 = vmul.f32 1.050701, %v2461_v9  ;;  %v2296_v9 = vadd.f32 %v7933_v30, %v7952_v17 }
 0x23a   : > { %v2422_v63 = vmul.f32 1.442695, %v2280_v46  ;;  %vm2404_vm6 = vcmp.gt.f32.partialorder %v2280_v46, 0.0 }
 0x23b   : > { %v2571_v48 = vadd.f32 %v2570_v7, %v2569_v45  ;;  %v2502_v37 = vrot.slane %v7943_v27, 4  ;;  %v2559_v20 = vmul.f32 %v7943_v27, %v7943_v27  ;;  %v2488_v28 = vrot.slane %v2487_v26, 1  ;;  %v2243_v2 = vpop.f32.mrf.mxu3 }
 0x23c   : > { %v2244_v5 = vadd.f32 %v2243_v2, %v1837_v6  ;;  %v7949_v19 = vpop.f32.mrf.mxu2  ;;  %6474 = vpow2.f32 %v2422_v63 }
 0x23d   : > { %v2572_v4 = vrot.slane %v2571_v48, 1  ;;  %v2503_v31 = vadd.f32 %v2502_v37, %v7943_v27  ;;  %v2586_v8 = vrot.slane %v2559_v20, 4  ;;  %v2489_v38 = vadd.f32 %v2488_v28, %v2487_v26  ;;  %v2331_v53 = vpop.f32.mrf.mxu0 }
 0x23e   : > { %v2263_v34 = vadd.f32 %v2262_v39, %v2244_v5  ;;  %v7956_v0 = vpop.f32.mrf.mxu1  ;;  %v7979_v28 = vperm.slane %v7928_v44, 2  ;;  %v2299_v5 = vadd.f32 %v7941_v56, %v7952_v17 }
 0x23f   : > { %v2573_v58 = vadd.f32 %v2572_v4, %v2571_v48  ;;  %v2504_v49 = vrot.slane %v2503_v31, 2  ;;  %v2587_v32 = vadd.f32 %v2586_v8, %v2559_v20  ;;  %v7954_v12 = vmul.f32 0.125, %v2489_v38 }
 0x240   : > { %v2282_v6 = vadd.f32 %v2281_v21, %v2263_v34 }
 0x241   : > { %v2505_v23 = vadd.f32 %v2504_v49, %v2503_v31  ;;  %v2588_v29 = vrot.slane %v2587_v32, 2  ;;  %v2652_v57 = vmul.f32 0.125, %v2573_v58  ;;  %v2664_v51 = vmul.f32 %v7954_v12, %v7954_v12 }
 0x242   : > { %v2428_v11 = vmul.f32 1.442695, %v2282_v6  ;;  %v6475_v55 = vpop.eup %6474  ;;  %vm2407_vm7 = vcmp.gt.f32.partialorder %v2282_v6, 0.0 }
 0x243   : > { %v2589_v1 = vadd.f32 %v2588_v29, %v2587_v32  ;;  %v2506_v42 = vrot.slane %v2505_v23, 1  ;;  %v2676_v36 = vsub.f32 %v2652_v57, %v2664_v51  ;;  %v2312_v15 = vpop.f32.mrf.mxu3  ;;  %v5619_v25 = vadd.f32 -1.0, %v6475_v55 }
 0x244   : > { %6476 = vpow2.f32 %v2428_v11  ;;  %v2313_v3 = vadd.f32 %v2312_v15, %v2294_v54  ;;  %v2369_v13 = vpop.f32.mrf.mxu2  ;;  %v2351_v57 = vadd.f32 %v7956_v0, %v7979_v28 }
 0x245   : > { %v2590_v50 = vrot.slane %v2589_v1, 1  ;;  %v2507_v18 = vadd.f32 %v2506_v42, %v2505_v23  ;;  %v2688_v47 = vmax.f32 %v2676_v36, 0.0  ;;  %v2452_v43 = vmul.f32 1.6732632, %v5619_v25  ;;  %v2333_v24 = vpop.f32.mrf.mxu0 }
 0x246   : > { %v2332_v41 = vadd.f32 %v2331_v53, %v2313_v3  ;;  %v2352_v14 = vpop.f32.mrf.mxu1  ;;  %v2301_v53 = vadd.f32 %v7949_v19, %v7952_v17  ;;  %v8001_v56 = vadd.f32 %v2369_v13, %v2351_v57 }
 0x247   : > { %v2591_v62 = vadd.f32 %v2590_v50, %v2589_v1  ;;  %v7962_v16 = vmul.f32 0.125, %v2507_v18  ;;  %v7964_v40 = vadd.f32 1e-05, %v2688_v47  ;;  %v2464_v52 = vsel %vm2404_vm6, %v2280_v46, %v2452_v43 }
 0x248   : > { %v2412_v33 = vmul.f32 1.442695, %v2332_v41  ;;  %v7969_v10 = vmul.f32 1.050701, %v2464_v52  ;;  %vm2399_vm10 = vcmp.gt.f32.partialorder %v2332_v41, 0.0  ;;  %v2353_v11 = vadd.f32 %v2352_v14, %v7979_v28 }
 0x249   : > { %v2655_v59 = vmul.f32 0.125, %v2591_v62  ;;  %v2667_v60 = vmul.f32 %v7962_v16, %v7962_v16  ;;  %6478 = vrsqrt.f32 %v7964_v40  ;;  %vm2718_vm11 = vweird.f32 %v7964_v40 }
 0x24a   : > { %9274 = vst [vmem:[#allocation26_spill] sm:$0xff] %v7969_v10  ;;  %v6477_v61 = vpop.eup %6476  ;;  %6480 = vpow2.f32 %v2412_v33  ;;  %v2562_v39 = vmul.f32 %v7969_v10, %v7969_v10  ;;  %v2520_v20 = vrot.slane %v7969_v10, 4 }
 0x24b   : > { %v2679_v45 = vsub.f32 %v2655_v59, %v2667_v60  ;;  %v5622_v26 = vadd.f32 -1.0, %v6477_v61  ;;  %v2314_v7 = vpop.f32.mrf.mxu3 }
 0x24c   : > { %v2315_v21 = vadd.f32 %v2314_v7, %v2296_v9  ;;  %v2371_v48 = vpop.f32.mrf.mxu2  ;;  %v2604_v4 = vrot.slane %v2562_v39, 4  ;;  %v2521_v44 = vadd.f32 %v2520_v20, %v7969_v10  ;;  %v5843_v10 = vld [vmem:[#allocation13 + $0x1b0] sm:$0xf] }
 0x24d   : > { %v2691_v35 = vmax.f32 %v2679_v45, 0.0  ;;  %v2455_v46 = vmul.f32 1.6732632, %v5622_v26  ;;  %v2336_v1 = vpop.f32.mrf.mxu0  ;;  %v8012_v25 = vadd.f32 %v2371_v48, %v2353_v11 }
 0x24e   : > { %v7981_v30 = vadd.f32 %v2333_v24, %v2315_v21  ;;  %v2355_v49 = vpop.f32.mrf.mxu1  ;;  %v2605_v29 = vadd.f32 %v2604_v4, %v2562_v39  ;;  %v2522_v18 = vrot.slane %v2521_v44, 2 }
 0x24f   : > { %v7975_v37 = vpop.eup %6478  ;;  %v7983_v31 = vadd.f32 1e-05, %v2691_v35  ;;  %v2467_v63 = vsel %vm2407_vm7, %v2282_v6, %v2455_v46  ;;  %v2356_v14 = vadd.f32 %v2355_v49, %v7979_v28 }
 0x250   : > { %v2713_v8 = vmul.f32 %v7975_v37, %v7964_v40  ;;  %v6481_v2 = vpop.eup %6480  ;;  %v7987_v38 = vmul.f32 1.050701, %v2467_v63  ;;  %v2418_v58 = vmul.f32 1.442695, %v7981_v30  ;;  %v2606_v0 = vrot.slane %v2605_v29, 2 }
 0x251   : > { %v5614_v23 = vadd.f32 -1.0, %v6481_v2  ;;  %6482 = vrsqrt.f32 %v7983_v31  ;;  %vm2719_vm12 = vweird.f32 %v7975_v37  ;;  %vm2402_vm13 = vcmp.gt.f32.partialorder %v7981_v30, 0.0 }
 0x252   : > { %9275 = vst [vmem:[#allocation31_spill] sm:$0xff] %v7987_v38  ;;  %v2714_v32 = vmul.f32 %v7975_v37, %v2713_v8  ;;  %v2565_v34 = vmul.f32 %v7987_v38, %v7987_v38  ;;  %6484 = vpow2.f32 %v2418_v58  ;;  %v2538_v55 = vrot.slane %v7987_v38, 4  ;;  %vm8043_vm14 = vmor %vm2718_vm11, %vm2719_vm12 }
 0x253   : > { %v2447_v51 = vmul.f32 1.6732632, %v5614_v23  ;;  %v2317_v6 = vpop.f32.mrf.mxu3  ;;  %v2523_v33 = vadd.f32 %v2522_v18, %v2521_v44  ;;  %v2607_v24 = vadd.f32 %v2606_v0, %v2605_v29  ;;  %vm2748_vm1 = vweird.f32 %v7983_v31 }
 0x254   : > { %v2715_v42 = vmul.f32 0.5, %v2714_v32  ;;  %v2622_v36 = vrot.slane %v2565_v34, 4  ;;  %v2318_v54 = vadd.f32 %v2317_v6, %v2299_v5  ;;  %v2374_v17 = vpop.f32.mrf.mxu2  ;;  %v2539_v45 = vadd.f32 %v2538_v55, %v7987_v38 }
 0x255   : > { %v2459_v50 = vsel %vm2399_vm10, %v2332_v41, %v2447_v51  ;;  %v8028_v46 = vadd.f32 %v2374_v17, %v2356_v14  ;;  %v2338_v63 = vpop.f32.mrf.mxu0  ;;  %v2524_v49 = vrot.slane %v2523_v33, 1 }
 0x256   : > { %v8006_v15 = vmul.f32 1.050701, %v2459_v50  ;;  %v8008_v19 = vadd.f32 %v2336_v1, %v2318_v54  ;;  %v2623_v62 = vadd.f32 %v2622_v36, %v2565_v34  ;;  %v2716_v3 = vsub.f32 1.5, %v2715_v42  ;;  %v2357_v39 = vpop.f32.mrf.mxu1 }
 0x257   : > { %v8010_v47 = vpop.eup %6482  ;;  %v2358_v2 = vadd.f32 %v2357_v39, %v7979_v28  ;;  %v2540_v34 = vrot.slane %v2539_v45, 2  ;;  %v2525_v54 = vadd.f32 %v2524_v49, %v2523_v33  ;;  %v2608_v50 = vrot.slane %v2607_v24, 1  ;;  %v5689_v28 = vld [vmem:[#allocation13 + $0x84] sm:$0xf0] }
 0x258   : > { %v6485_v13 = vpop.eup %6484  ;;  %v2490_v43 = vrot.slane %v8006_v15, 4  ;;  %v2557_v41 = vmul.f32 %v8006_v15, %v8006_v15  ;;  %v2424_v60 = vmul.f32 1.442695, %v8008_v19  ;;  %v2743_v52 = vmul.f32 %v8010_v47, %v7983_v31 }
 0x259   : > { %v5617_v59 = vadd.f32 -1.0, %v6485_v13  ;;  %v2624_v26 = vrot.slane %v2623_v62, 2  ;;  %v8026_v21 = vmul.f32 %v7975_v37, %v2716_v3  ;;  %vm2405_vm15 = vcmp.gt.f32.partialorder %v8008_v19, 0.0 }
 0x25a   : > { %v2491_v61 = vadd.f32 %v2490_v43, %v8006_v15  ;;  %v2574_v9 = vrot.slane %v2557_v41, 4  ;;  %6486 = vpow2.f32 %v2424_v60  ;;  %v2744_v58 = vmul.f32 %v8010_v47, %v2743_v52 }
 0x25b   : > { %v2450_v7 = vmul.f32 1.6732632, %v5617_v59  ;;  %v2319_v35 = vpop.f32.mrf.mxu3  ;;  %v2541_v13 = vadd.f32 %v2540_v34, %v2539_v45  ;;  %vm2749_vm0 = vweird.f32 %v8010_v47 }
 0x25c   : > { %v2492_v48 = vrot.slane %v2491_v61, 2  ;;  %v2575_v20 = vadd.f32 %v2574_v9, %v2557_v41  ;;  %v2320_v4 = vadd.f32 %v2319_v35, %v2301_v53  ;;  %v2376_v1 = vpop.f32.mrf.mxu2  ;;  %v2745_v36 = vmul.f32 0.5, %v2744_v58  ;;  %vm8106_vm3 = vmor %vm2748_vm1, %vm2749_vm0 }
 0x25d   : > { %v2462_v8 = vsel %vm2402_vm13, %v7981_v30, %v2450_v7  ;;  %v2625_v30 = vadd.f32 %v2624_v26, %v2623_v62  ;;  %v8057_v62 = vadd.f32 %v2376_v1, %v2358_v2  ;;  %v8078_v58 = vmul.f32 0.125, %v2525_v54 }
 0x25e   : > { %v2493_v32 = vadd.f32 %v2492_v48, %v2491_v61  ;;  %v2576_v44 = vrot.slane %v2575_v20, 2  ;;  %v8035_v5 = vmul.f32 1.050701, %v2462_v8  ;;  %v8037_v23 = vadd.f32 %v2338_v63, %v2320_v4 }
 0x25f   : > { %v2746_v33 = vsub.f32 1.5, %v2745_v36  ;;  %v2609_v61 = vadd.f32 %v2608_v50, %v2607_v24  ;;  %v2626_v48 = vrot.slane %v2625_v30, 1 }
 0x260   : > { %v2494_v57 = vrot.slane %v2493_v32, 1  ;;  %v2577_v53 = vadd.f32 %v2576_v44, %v2575_v20  ;;  %v2508_v51 = vrot.slane %v8035_v5, 4  ;;  %v2560_v40 = vmul.f32 %v8035_v5, %v8035_v5  ;;  %v6487_v6 = vpop.eup %6486 }
 0x261   : > { %v2430_v42 = vmul.f32 1.442695, %v8037_v23  ;;  %v5620_v17 = vadd.f32 -1.0, %v6487_v6  ;;  %vm2408_vm2 = vcmp.gt.f32.partialorder %v8037_v23, 0.0  ;;  %v8076_v2 = vmul.f32 %v8010_v47, %v2746_v33 }
 0x262   : > { %v2495_v11 = vadd.f32 %v2494_v57, %v2493_v32  ;;  %v2578_v18 = vrot.slane %v2577_v53, 1  ;;  %v2509_v0 = vadd.f32 %v2508_v51, %v8035_v5  ;;  %v2592_v55 = vrot.slane %v2560_v40, 4 }
 0x263   : > { %6488 = vpow2.f32 %v2430_v42  ;;  %v2388_v3 = vpop.f32.mrf.mxu3  ;;  %v2453_v60 = vmul.f32 1.6732632, %v5620_v17 }
 0x264   : > { %v2579_v43 = vadd.f32 %v2578_v18, %v2577_v53  ;;  %v8059_v41 = vmul.f32 0.125, %v2495_v11  ;;  %v2510_v14 = vrot.slane %v2509_v0, 2  ;;  %v2593_v59 = vadd.f32 %v2592_v55, %v2560_v40 }
 0x265   : > { %v8062_v52 = vadd.f32 %v2388_v3, %v8001_v56  ;;  %v2465_v45 = vsel %vm2405_vm15, %v8008_v19, %v2453_v60  ;;  %v2542_v56 = vrot.slane %v2541_v13, 1  ;;  %v2627_v40 = vadd.f32 %v2626_v48, %v2625_v30 }
 0x266   : > { %v2653_v9 = vmul.f32 0.125, %v2579_v43  ;;  %v2665_v39 = vmul.f32 %v8059_v41, %v8059_v41  ;;  %v2511_v26 = vadd.f32 %v2510_v14, %v2509_v0  ;;  %v2594_v7 = vrot.slane %v2593_v59, 2 }
 0x267   : > { %v2414_v35 = vmul.f32 1.442695, %v8062_v52  ;;  %v8072_v24 = vmul.f32 1.050701, %v2465_v45  ;;  %v2543_v51 = vadd.f32 %v2542_v56, %v2541_v13  ;;  %v2658_v18 = vmul.f32 0.125, %v2609_v61 }
 0x268   : > { %v2677_v20 = vsub.f32 %v2653_v9, %v2665_v39  ;;  %v2512_v4 = vrot.slane %v2511_v26, 1  ;;  %v2595_v8 = vadd.f32 %v2594_v7, %v2593_v59  ;;  %vm2400_vm4 = vcmp.gt.f32.partialorder %v8062_v52, 0.0 }
 0x269   : > { %9278 = vst [vmem:[#allocation32_spill] sm:$0xff] %v8072_v24  ;;  %v6489_v63 = vpop.eup %6488  ;;  %6490 = vpow2.f32 %v2414_v35  ;;  %v2526_v44 = vrot.slane %v8072_v24, 4  ;;  %v2563_v34 = vmul.f32 %v8072_v24, %v8072_v24  ;;  %v8114_v39 = vmul.f32 0.125, %v2543_v51 }
 0x26a   : > { %v2689_v19 = vmax.f32 %v2677_v20, 0.0  ;;  %v2513_v49 = vadd.f32 %v2512_v4, %v2511_v26  ;;  %v2596_v32 = vrot.slane %v2595_v8, 1  ;;  %v5623_v57 = vadd.f32 -1.0, %v6489_v63 }
 0x26b   : > { %v2390_v53 = vpop.f32.mrf.mxu3  ;;  %v2527_v36 = vadd.f32 %v2526_v44, %v8072_v24  ;;  %v2610_v54 = vrot.slane %v2563_v34, 4  ;;  %9282 = vst [vmem:[#allocation27_spill] sm:$0xff] %v8114_v39 }
 0x26c   : > { %v8083_v1 = vadd.f32 1e-05, %v2689_v19  ;;  %v2597_v6 = vadd.f32 %v2596_v32, %v2595_v8  ;;  %v8085_v42 = vmul.f32 0.125, %v2513_v49  ;;  %v2456_v50 = vmul.f32 1.6732632, %v5623_v57 }
 0x26d   : > { %v8089_v11 = vadd.f32 %v2390_v53, %v8012_v25  ;;  %v2528_v30 = vrot.slane %v2527_v36, 2  ;;  %v2611_v3 = vadd.f32 %v2610_v54, %v2563_v34  ;;  %v2670_v25 = vmul.f32 %v8078_v58, %v8078_v58 }
 0x26e   : > { %6492 = vrsqrt.f32 %v8083_v1  ;;  %v2656_v0 = vmul.f32 0.125, %v2597_v6  ;;  %v2668_v55 = vmul.f32 %v8085_v42, %v8085_v42  ;;  %v2468_v13 = vsel %vm2408_vm2, %v8037_v23, %v2456_v50 }
 0x26f   : > { %v6491_v17 = vpop.eup %6490  ;;  %v2420_v43 = vmul.f32 1.442695, %v8089_v11  ;;  %v2529_v59 = vadd.f32 %v2528_v30, %v2527_v36  ;;  %v8100_v60 = vmul.f32 1.050701, %v2468_v13  ;;  %v2612_v9 = vrot.slane %v2611_v3, 2 }
 0x270   : > { %v2680_v14 = vsub.f32 %v2656_v0, %v2668_v55  ;;  %v5615_v33 = vadd.f32 -1.0, %v6491_v17  ;;  %v2682_v20 = vsub.f32 %v2658_v18, %v2670_v25  ;;  %v8123_v49 = vmul.f32 0.125, %v2627_v40 }
 0x271   : > { %9279 = vst [vmem:[#allocation35_spill] sm:$0xff] %v8100_v60  ;;  %6494 = vpow2.f32 %v2420_v43  ;;  %v2530_v7 = vrot.slane %v2529_v59, 1  ;;  %v2544_v45 = vrot.slane %v8100_v60, 4  ;;  %v2566_v31 = vmul.f32 %v8100_v60, %v8100_v60 }
 0x272   : > { %v2692_v26 = vmax.f32 %v2680_v14, 0.0  ;;  %v2613_v35 = vadd.f32 %v2612_v9, %v2611_v3  ;;  %v2448_v56 = vmul.f32 1.6732632, %v5615_v33  ;;  %v8130_v57 = vmul.f32 %v8114_v39, %v8114_v39  ;;  %v6217_v39 = vld [vmem:[#allocation13 + $0x1b8] sm:$0xf0] }
 0x273   : > { %v2393_v48 = vpop.f32.mrf.mxu3  ;;  %v2531_v8 = vadd.f32 %v2530_v7, %v2529_v59  ;;  %v2545_v63 = vadd.f32 %v2544_v45, %v8100_v60  ;;  %v2628_v19 = vrot.slane %v2566_v31, 4  ;;  %v2694_v0 = vmax.f32 %v2682_v20, 0.0 }
 0x274   : > { %v8120_v4 = vpop.eup %6492  ;;  %v8125_v32 = vadd.f32 1e-05, %v2692_v26  ;;  %v2614_v44 = vrot.slane %v2613_v35, 1  ;;  %v2460_v34 = vsel %vm2400_vm4, %v8062_v52, %v2448_v56  ;;  %v8135_v36 = vadd.f32 %v2393_v48, %v8028_v46 }
 0x275   : > { %v8132_v53 = vmul.f32 0.125, %v2531_v8  ;;  %v2546_v51 = vrot.slane %v2545_v63, 2  ;;  %v2629_v6 = vadd.f32 %v2628_v19, %v2566_v31  ;;  %v2723_v40 = vmul.f32 %v8120_v4, %v8083_v1 }
 0x276   : > { %v2615_v50 = vadd.f32 %v2614_v44, %v2613_v35  ;;  %v8139_v18 = vmul.f32 1.050701, %v2460_v34  ;;  %6496 = vrsqrt.f32 %v8125_v32  ;;  %v2426_v59 = vmul.f32 1.442695, %v8135_v36 }
 0x277   : > { %v6495_v54 = vpop.eup %6494  ;;  %v2671_v52 = vmul.f32 %v8132_v53, %v8132_v53  ;;  %v2547_v55 = vadd.f32 %v2546_v51, %v2545_v63  ;;  %v2630_v30 = vrot.slane %v2629_v6, 2  ;;  %vm2403_vm5 = vcmp.gt.f32.partialorder %v8089_v11, 0.0 }
 0x278   : > { %v5618_v17 = vadd.f32 -1.0, %v6495_v54  ;;  %v2659_v3 = vmul.f32 0.125, %v2615_v50  ;;  %v2496_v46 = vrot.slane %v8139_v18, 4  ;;  %v2558_v13 = vmul.f32 %v8139_v18, %v8139_v18 }
 0x279   : > { %v2548_v43 = vrot.slane %v2547_v55, 1  ;;  %v2631_v25 = vadd.f32 %v2630_v30, %v2629_v6  ;;  %6498 = vpow2.f32 %v2426_v59  ;;  %v2724_v56 = vmul.f32 %v8120_v4, %v2723_v40 }
 0x27a   : > { %v2451_v14 = vmul.f32 1.6732632, %v5618_v17  ;;  %v2683_v33 = vsub.f32 %v2659_v3, %v2671_v52  ;;  %v2497_v9 = vadd.f32 %v2496_v46, %v8139_v18  ;;  %v2580_v26 = vrot.slane %v2558_v13, 4 }
 0x27b   : > { %v2549_v7 = vadd.f32 %v2548_v43, %v2547_v55  ;;  %v2632_v45 = vrot.slane %v2631_v25, 1  ;;  %v2395_v35 = vpop.f32.mrf.mxu3  ;;  %v2685_v8 = vsub.f32 %v8123_v49, %v8130_v57  ;;  %v8158_v34 = vadd.f32 1e-05, %v2694_v0 }
 0x27c   : > { %v2463_v31 = vsel %vm2403_vm5, %v8089_v11, %v2451_v14  ;;  %v2498_v48 = vrot.slane %v2497_v9, 2  ;;  %v2581_v20 = vadd.f32 %v2580_v26, %v2558_v13  ;;  %v8160_v51 = vpop.eup %6496  ;;  %v2695_v6 = vmax.f32 %v2683_v33, 0.0  ;;  %v5711_v33 = vld [vmem:[#allocation13 + $0xa8] sm:$0xf] }
 0x27d   : > { %v2633_v63 = vadd.f32 %v2632_v45, %v2631_v25  ;;  %v8154_v19 = vmul.f32 0.125, %v2549_v7  ;;  %v8156_v44 = vmul.f32 1.050701, %v2463_v31  ;;  %v8163_v50 = vadd.f32 %v2395_v35, %v8057_v62  ;;  %v6184_v31 = vld [vmem:[#allocation13 + $0xb0] sm:$0xf0] }
 0x27e   : > { %v2499_v11 = vadd.f32 %v2498_v48, %v2497_v9  ;;  %v2582_v54 = vrot.slane %v2581_v20, 2  ;;  %v8170_v55 = vmul.f32 0.5, %v2724_v56  ;;  %vm2406_vm6 = vcmp.gt.f32.partialorder %v8135_v36, 0.0 }
 0x27f   : > { %9283 = vst [vmem:[#allocation28_spill] sm:$0xff] %v8154_v19  ;;  %v2662_v40 = vmul.f32 0.125, %v2633_v63  ;;  %v2674_v52 = vmul.f32 %v8154_v19, %v8154_v19  ;;  %v2514_v49 = vrot.slane %v8156_v44, 4  ;;  %v2561_v57 = vmul.f32 %v8156_v44, %v8156_v44  ;;  %v6499_v17 = vpop.eup %6498  ;;  %v5807_v63 = vld [vmem:[#allocation13 + $0x168] sm:$0xf] }
 0x280   : > { %v2500_v0 = vrot.slane %v2499_v11, 1  ;;  %v2583_v30 = vadd.f32 %v2582_v54, %v2581_v20  ;;  %v2753_v62 = vmul.f32 %v8160_v51, %v8125_v32  ;;  %v8176_v43 = vadd.f32 1e-05, %v2695_v6  ;;  %v5653_v19 = vld [vmem:[#allocation13 + $0x3c] sm:$0xf0] }
 0x281   : > { %v2686_v3 = vsub.f32 %v2662_v40, %v2674_v52  ;;  %v2515_v46 = vadd.f32 %v2514_v49, %v8156_v44  ;;  %v2598_v13 = vrot.slane %v2561_v57, 4  ;;  %v5621_v59 = vadd.f32 -1.0, %v6499_v17  ;;  %v6232_v17 = vld [vmem:[#allocation13 + $0x230] sm:$0xf0] }
 0x282   : > { %v2501_v25 = vadd.f32 %v2500_v0, %v2499_v11  ;;  %v2584_v14 = vrot.slane %v2583_v30, 1  ;;  %v2432_v45 = vmul.f32 1.442695, %v8163_v50  ;;  %v5712_v20 = vor.u32 %v6184_v31, %v5711_v33  ;;  %v6208_v11 = vld [vmem:[#allocation13 + $0x170] sm:$0xf0] }
 0x283   : > { %v2698_v9 = vmax.f32 %v2686_v3, 0.0  ;;  %v2516_v26 = vrot.slane %v2515_v46, 2  ;;  %v2599_v7 = vadd.f32 %v2598_v13, %v2561_v57  ;;  %v2454_v48 = vmul.f32 1.6732632, %v5621_v59  ;;  %v5699_v31 = vld [vmem:[#allocation13 + $0x90] sm:$0xf] }
 0x284   : > { %v2585_v35 = vadd.f32 %v2584_v14, %v2583_v30  ;;  %v8179_v56 = vmul.f32 0.125, %v2501_v25  ;;  %6500 = vpow2.f32 %v2432_v45  ;;  %3490 = vmatpush.bf16.msrb.mxu0 %v5712_v20  ;;  %v5808_v0 = vor.u32 %v6208_v11, %v5807_v63  ;;  %v5903_v30 = vld [vmem:[#allocation13 + $0x228] sm:$0xf]  ;;  %v5713_v14 = vld [vmem:[#allocation13 + $0xb4] sm:$0xf0] }
 0x285   : > { %v8181_v54 = vadd.f32 1e-05, %v2698_v9  ;;  %v2517_v6 = vadd.f32 %v2516_v26, %v2515_v46  ;;  %v2600_v40 = vrot.slane %v2599_v7, 2  ;;  %v2466_v57 = vsel %vm2406_vm6, %v8135_v36, %v2454_v48  ;;  %v6183_v46 = vld [vmem:[#allocation13 + $0xac] sm:$0xf] }
 0x286   : > { %v2654_v52 = vmul.f32 0.125, %v2585_v35  ;;  %v2666_v49 = vmul.f32 %v8179_v56, %v8179_v56  ;;  %v2754_v3 = vmul.f32 %v8160_v51, %v2753_v62  ;;  %v8189_v59 = vmax.f32 %v2685_v8, 0.0  ;;  %3509 = vmatpush.bf16.msrb.mxu1 %v5808_v0  ;;  %v6181_v36 = vld [vmem:[#allocation13 + $0x98] sm:$0xf0]  ;;  %v5795_v62 = vld [vmem:[#allocation13 + $0x150] sm:$0xf] }
 0x287   : > { %v2518_v13 = vrot.slane %v2517_v6, 1  ;;  %v2601_v25 = vadd.f32 %v2600_v40, %v2599_v7  ;;  %v8191_v9 = vmul.f32 1.050701, %v2466_v57  ;;  %v5904_v26 = vor.u32 %v6232_v17, %v5903_v30  ;;  %v6205_v11 = vld [vmem:[#allocation13 + $0x158] sm:$0xf0] }
 0x288   : > { %v2678_v33 = vsub.f32 %v2654_v52, %v2666_v49  ;;  %v5716_v45 = vor.u32 %v6183_v46, %v5713_v14  ;;  %v2726_v35 = vsub.f32 1.5, %v8170_v55  ;;  %v5700_v63 = vor.u32 %v6181_v36, %v5699_v31  ;;  %v5891_v49 = vld [vmem:[#allocation13 + $0x210] sm:$0xf]  ;;  %v6229_v57 = vld [vmem:[#allocation13 + $0x218] sm:$0xf0] }
 0x289   : > { %9284 = vst [vmem:[#allocation30_spill] sm:$0xff] %v8191_v9  ;;  %v2519_v48 = vadd.f32 %v2518_v13, %v2517_v6  ;;  %v2602_v20 = vrot.slane %v2601_v25, 1  ;;  %vm2728_vm7 = vweird.f32 %v8083_v1  ;;  %v2532_v8 = vrot.slane %v8191_v9, 4  ;;  %3528 = vmatpush.bf16.msrb.mxu2 %v5904_v26  ;;  %v6180_v13 = vld [vmem:[#allocation13 + $0x94] sm:$0xf] }
 0x28a   : > { %v2690_v7 = vmax.f32 %v2678_v33, 0.0  ;;  %v2564_v40 = vmul.f32 %v8191_v9, %v8191_v9  ;;  %3547 = vmatpush.bf16.msrb.mxu3 %v5716_v45  ;;  %v5796_v52 = vor.u32 %v6205_v11, %v5795_v62  ;;  %v6501_v0 = vpop.eup %6500  ;;  %v8198_v55 = vmul.f32 0.5, %v2754_v3  ;;  %3491 = vmatpush.bf16.msrb.mxu0 %v5700_v63  ;;  %v5701_v46 = vld [vmem:[#allocation13 + $0x9c] sm:$0xf0]  ;;  %v5687_v45 = vld [vmem:[#allocation13 + $0x78] sm:$0xf] }
 0x28b   : > { %v2603_v6 = vadd.f32 %v2602_v20, %v2601_v25  ;;  %v8200_v30 = vmul.f32 0.125, %v2519_v48  ;;  %v5892_v17 = vor.u32 %v6229_v57, %v5891_v49  ;;  %v2533_v33 = vadd.f32 %v2532_v8, %v8191_v9  ;;  %v6178_v25 = vld [vmem:[#allocation13 + $0x80] sm:$0xf0]  ;;  %v5783_v48 = vld [vmem:[#allocation13 + $0x138] sm:$0xf] }
 0x28c   : > { %v8202_v14 = vadd.f32 1e-05, %v2690_v7  ;;  %v2616_v31 = vrot.slane %v2564_v40, 4  ;;  %v5624_v26 = vadd.f32 -1.0, %v6501_v0  ;;  %3510 = vmatpush.bf16.msrb.mxu1 %v5796_v52  ;;  %v5704_v62 = vor.u32 %v6180_v13, %v5701_v46  ;;  %v6202_v7 = vld [vmem:[#allocation13 + $0x140] sm:$0xf0] }
 0x28d   : > { %v2657_v36 = vmul.f32 0.125, %v2603_v6  ;;  %v2669_v3 = vmul.f32 %v8200_v30, %v8200_v30  ;;  %v8208_v20 = vmul.f32 %v8120_v4, %v2726_v35  ;;  %v2534_v63 = vrot.slane %v2533_v33, 2  ;;  %3529 = vmatpush.bf16.msrb.mxu2 %v5892_v17  ;;  %v5879_v8 = vld [vmem:[#allocation13 + $0x1f8] sm:$0xf]  ;;  %v6226_v6 = vld [vmem:[#allocation13 + $0x200] sm:$0xf0] }
 0x28e   : > { %6502 = vrsqrt.f32 %v8202_v14  ;;  %v2617_v11 = vadd.f32 %v2616_v31, %v2564_v40  ;;  %vm2729_vm10 = vweird.f32 %v8120_v4  ;;  %v2457_v49 = vmul.f32 1.6732632, %v5624_v26  ;;  %3548 = vmatpush.bf16.msrb.mxu3 %v5704_v62  ;;  %v6177_v13 = vld [vmem:[#allocation13 + $0x7c] sm:$0xf]  ;;  %v5675_v9 = vld [vmem:[#allocation13 + $0x60] sm:$0xf] }
 0x28f   : > { %v2681_v52 = vsub.f32 %v2657_v36, %v2669_v3  ;;  %v5688_v57 = vor.u32 %v6178_v25, %v5687_v45  ;;  %v5784_v0 = vor.u32 %v6202_v7, %v5783_v48  ;;  %v2535_v46 = vadd.f32 %v2534_v63, %v2533_v33  ;;  %v6175_v36 = vld [vmem:[#allocation13 + $0x68] sm:$0xf0]  ;;  %v5771_v45 = vld [vmem:[#allocation13 + $0x120] sm:$0xf]  ;;  %vm8221_vm12 = vmor %vm2728_vm7, %vm2729_vm10 }
 0x290   : > { %v2618_v23 = vrot.slane %v2617_v11, 2  ;;  %vm2409_vm11 = vcmp.gt.f32.partialorder %v8163_v50, 0.0  ;;  %v5880_v35 = vor.u32 %v6226_v6, %v5879_v8  ;;  %v5692_v26 = vor.u32 %v6177_v13, %v5689_v28  ;;  %v6199_v48 = vld [vmem:[#allocation13 + $0x128] sm:$0xf0]  ;;  %v8306_v63 = vld [vmem:[#allocation11] sm:$0x7] }
 0x291   : > { %v2693_v17 = vmax.f32 %v2681_v52, 0.0  ;;  %v2469_v31 = vsel %vm2409_vm11, %v8163_v50, %v2457_v49  ;;  %3492 = vmatpush.bf16.msrb.mxu0 %v5688_v57  ;;  %3511 = vmatpush.bf16.msrb.mxu1 %v5784_v0  ;;  %v2536_v3 = vrot.slane %v2535_v46, 1  ;;  %v5676_v33 = vor.u32 %v6175_v36, %v5675_v9  ;;  %v6174_v57 = vld [vmem:[#allocation13 + $0x64] sm:$0xf]  ;;  %v5677_v0 = vld [vmem:[#allocation13 + $0x6c] sm:$0xf0] }
 0x292   : > { %v2619_v62 = vadd.f32 %v2618_v23, %v2617_v11  ;;  %v8215_v25 = vmul.f32 1.050701, %v2469_v31  ;;  %3530 = vmatpush.bf16.msrb.mxu2 %v5880_v35  ;;  %6504 = vrsqrt.f32 %v8176_v43  ;;  %3549 = vmatpush.bf16.msrb.mxu3 %v5692_v26  ;;  %v5772_v50 = vor.u32 %v6199_v48, %v5771_v45  ;;  %v5867_v23 = vld [vmem:[#allocation13 + $0x1e0] sm:$0xf]  ;;  %v6223_v11 = vld [vmem:[#allocation13 + $0x1e8] sm:$0xf0] }
 0x293   : > { %v8226_v28 = vadd.f32 1e-05, %v2693_v17  ;;  %v2537_v1 = vadd.f32 %v2536_v3, %v2535_v46  ;;  %v5868_v13 = vor.u32 %v6223_v11, %v5867_v23  ;;  %v5680_v35 = vor.u32 %v6174_v57, %v5677_v0  ;;  %v5663_v17 = vld [vmem:[#allocation13 + $0x48] sm:$0xf]  ;;  %v6172_v31 = vld [vmem:[#allocation13 + $0x50] sm:$0xf0] }
 0x294   : > { %9285 = vst [vmem:[#allocation33_spill] sm:$0xff] %v8215_v25  ;;  %v8232_v7 = vpop.eup %6502  ;;  %v2620_v8 = vrot.slane %v2619_v62, 1  ;;  %v2550_v52 = vrot.slane %v8215_v25, 4  ;;  %v2567_v49 = vmul.f32 %v8215_v25, %v8215_v25  ;;  %v5759_v46 = vld [vmem:[#allocation13 + $0x108] sm:$0xf]  ;;  %vm2759_vm13 = vweird.f32 %v8160_v51 }
 0x295   : > { %v2733_v6 = vmul.f32 %v8232_v7, %v8202_v14  ;;  %6506 = vrsqrt.f32 %v8226_v28  ;;  %3493 = vmatpush.bf16.msrb.mxu0 %v5676_v33  ;;  %3512 = vmatpush.bf16.msrb.mxu1 %v5772_v50  ;;  %v8240_v36 = vmul.f32 0.125, %v2537_v1  ;;  %v6196_v48 = vld [vmem:[#allocation13 + $0x110] sm:$0xf0]  ;;  %v5855_v9 = vld [vmem:[#allocation13 + $0x1c8] sm:$0xf]  ;;  %v5664_v33 = vor.u32 %v6172_v31, %v5663_v17 }
 0x296   : > { %v2621_v26 = vadd.f32 %v2620_v8, %v2619_v62  ;;  %v2551_v45 = vadd.f32 %v2550_v52, %v8215_v25  ;;  %v2634_v3 = vrot.slane %v2567_v49, 4  ;;  %6508 = vrsqrt.f32 %v8181_v54  ;;  %3531 = vmatpush.bf16.msrb.mxu2 %v5868_v13  ;;  %3550 = vmatpush.bf16.msrb.mxu3 %v5680_v35  ;;  %v6220_v23 = vld [vmem:[#allocation13 + $0x1d0] sm:$0xf0]  ;;  %v6171_v11 = vld [vmem:[#allocation13 + $0x4c] sm:$0xf] }
 0x297   : > { %v2734_v40 = vmul.f32 %v8232_v7, %v2733_v6  ;;  %v5760_v50 = vor.u32 %v6196_v48, %v5759_v46  ;;  %v5665_v57 = vld [vmem:[#allocation13 + $0x54] sm:$0xf0]  ;;  %v2672_v62 = vmul.f32 %v8240_v36, %v8240_v36  ;;  %v5651_v52 = vld [vmem:[#allocation13 + $0x30] sm:$0xf]  ;;  %v6169_v25 = vld [vmem:[#allocation13 + $0x38] sm:$0xf0]  ;;  %v5856_v6 = vor.u32 %v6220_v23, %v5855_v9 }
 0x298   : > { %v2660_v0 = vmul.f32 0.125, %v2621_v26  ;;  %v2552_v1 = vrot.slane %v2551_v45, 2  ;;  %v2635_v8 = vadd.f32 %v2634_v3, %v2567_v49  ;;  %v8247_v60 = vpop.eup %6504  ;;  %v5668_v13 = vor.u32 %v6171_v11, %v5665_v57  ;;  %v5747_v17 = vld [vmem:[#allocation13 + $0xf0] sm:$0xf]  ;;  %v6193_v31 = vld [vmem:[#allocation13 + $0xf8] sm:$0xf0] }
 0x299   : > { %v8249_v38 = vmul.f32 0.5, %v2734_v40  ;;  %3494 = vmatpush.bf16.msrb.mxu0 %v5664_v33  ;;  %3513 = vmatpush.bf16.msrb.mxu1 %v5760_v50  ;;  %v5652_v35 = vor.u32 %v6169_v25, %v5651_v52  ;;  %v5748_v24 = vor.u32 %v6193_v31, %v5747_v17  ;;  %v5844_v3 = vor.u32 %v6217_v39, %v5843_v10  ;;  %v6168_v40 = vld [vmem:[#allocation13 + $0x34] sm:$0xf]  ;;  %v5639_v33 = vld [vmem:[#allocation13 + $0x18] sm:$0xf] }
 0x29a   : > { %v2684_v46 = vsub.f32 %v2660_v0, %v2672_v62  ;;  %v2553_v26 = vadd.f32 %v2552_v1, %v2551_v45  ;;  %v2636_v48 = vrot.slane %v2635_v8, 2  ;;  %3532 = vmatpush.bf16.msrb.mxu2 %v5856_v6  ;;  %3551 = vmatpush.bf16.msrb.mxu3 %v5668_v13  ;;  %v9288_v9 = vsub.f32 1.5, %v8198_v55  ;;  %v6166_v57 = vld [vmem:[#allocation13 + $0x20] sm:$0xf0]  ;;  %v5735_v0 = vld [vmem:[#allocation13 + $0xd8] sm:$0xf] }
 0x29b   : > { %v8251_v49 = vpop.eup %6506  ;;  %6510 = vrsqrt.f32 %v8158_v34  ;;  %v5656_v39 = vor.u32 %v6168_v40, %v5653_v19  ;;  %v5640_v55 = vor.u32 %v6166_v57, %v5639_v33  ;;  %v6190_v62 = vld [vmem:[#allocation13 + $0xe0] sm:$0xf0]  ;;  %v5831_v1 = vld [vmem:[#allocation13 + $0x198] sm:$0xf]  ;;  %vm2738_vm15 = vweird.f32 %v8202_v14  ;;  %v6165_v31 = vld [vmem:[#allocation13 + $0x1c] sm:$0xf] }
 0x29c   : > { %v2757_v25 = vmul.f32 %v8160_v51, %v9288_v9  ;;  %v2763_v45 = vmul.f32 %v8251_v49, %v8226_v28  ;;  %v2696_v50 = vmax.f32 %v2684_v46, 0.0  ;;  %v2554_v23 = vrot.slane %v2553_v26, 1  ;;  %v8260_v10 = vpop.eup %6508  ;;  %v6214_v52 = vld [vmem:[#allocation13 + $0x1a0] sm:$0xf0]  ;;  %v5641_v46 = vld [vmem:[#allocation13 + $0x24] sm:$0xf0] }
 0x29d   : > { %v2637_v11 = vadd.f32 %v2636_v48, %v2635_v8  ;;  %3495 = vmatpush.bf16.msrb.mxu0 %v5652_v35  ;;  %3514 = vmatpush.bf16.msrb.mxu1 %v5748_v24  ;;  %vm2758_vm0 = vweird.f32 %v8125_v32  ;;  %v5736_v19 = vor.u32 %v6190_v62, %v5735_v0  ;;  %v5832_v35 = vor.u32 %v6214_v52, %v5831_v1  ;;  %v5627_v48 = vld [vmem:[#allocation13] sm:$0xf]  ;;  %v6163_v32 = vld [vmem:[#allocation13 + $0x8] sm:$0xf0]  ;;  %v6162_v1 = vld [vmem:[#allocation13 + $0x4] sm:$0xf] }
 0x29e   : > { %v2764_v6 = vmul.f32 %v8251_v49, %v2763_v45  ;;  %v8265_v13 = vadd.f32 1e-05, %v2696_v50  ;;  %v2555_v8 = vadd.f32 %v2554_v23, %v2553_v26  ;;  %vm8269_vm1 = vmor %vm2758_vm0, %vm2759_vm13  ;;  %3533 = vmatpush.bf16.msrb.mxu2 %v5844_v3  ;;  %3552 = vmatpush.bf16.msrb.mxu3 %v5656_v39  ;;  %vm2739_vm2 = vweird.f32 %v8232_v7  ;;  %v5723_v45 = vld [vmem:[#allocation13 + $0xc0] sm:$0xf]  ;;  %v6187_v3 = vld [vmem:[#allocation13 + $0xc8] sm:$0xf0] }
 0x29f   : > { %v2638_v17 = vrot.slane %v2637_v11, 1  ;;  %v2761_v26 = vsel %vm8269_vm1, %v8160_v51, %v2757_v25  ;;  %v5644_v23 = vor.u32 %v6165_v31, %v5641_v46  ;;  %v5628_v57 = vor.u32 %v6163_v32, %v5627_v48  ;;  %v5819_v39 = vld [vmem:[#allocation13 + $0x180] sm:$0xf]  ;;  %v6211_v62 = vld [vmem:[#allocation13 + $0x188] sm:$0xf0]  ;;  %vm8290_vm5 = vmor %vm2738_vm15, %vm2739_vm2 }
 0x2a0   : > { %v2765_v40 = vmul.f32 0.5, %v2764_v6  ;;  %6512 = vrsqrt.f32 %v8265_v13  ;;  %v8278_v9 = vmul.f32 0.125, %v2555_v8  ;;  %v5724_v0 = vor.u32 %v6187_v3, %v5723_v45  ;;  %v5629_v52 = vld [vmem:[#allocation13 + $0xc] sm:$0xf0]  ;;  %v6207_v48 = vld [vmem:[#allocation13 + $0x16c] sm:$0xf] }
 0x2a1   : > { %v2639_v33 = vadd.f32 %v2638_v17, %v2637_v11  ;;  %v8280_v50 = vpop.eup %6510  ;;  %3496 = vmatpush.bf16.msrb.mxu0 %v5640_v55  ;;  %3515 = vmatpush.bf16.msrb.mxu1 %v5736_v19  ;;  %vm2769_vm4 = vweird.f32 %v8251_v49  ;;  %v5820_v11 = vor.u32 %v6211_v62, %v5819_v39  ;;  %v2736_v6 = vsub.f32 1.5, %v8249_v38  ;;  %v5809_v32 = vld [vmem:[#allocation13 + $0x174] sm:$0xf0]  ;;  %v5719_v45 = vld [vmem:[#allocation13 + $0xb0] sm:$0xf] }
 0x2a2   : > { %v2675_v25 = vmul.f32 %v8278_v9, %v8278_v9  ;;  %3534 = vmatpush.bf16.msrb.mxu2 %v5832_v35  ;;  %3553 = vmatpush.bf16.msrb.mxu3 %v5644_v23  ;;  %v5632_v55 = vor.u32 %v6162_v1, %v5629_v52  ;;  %v2766_v17 = vsub.f32 1.5, %v2765_v40  ;;  %v9293_v31 = vsel %vm8221_vm12, %v8120_v4, %v8208_v20  ;;  %v6231_v40 = vld [vmem:[#allocation13 + $0x22c] sm:$0xf]  ;;  %v6185_v3 = vld [vmem:[#allocation13 + $0xb8] sm:$0xf0] }
 0x2a3   : > { %v2663_v51 = vmul.f32 0.125, %v2639_v33  ;;  %v2844_v24 = vrot.slane %v9293_v31, 7  ;;  %v2846_v19 = vrot.slane %v2761_v26, 7  ;;  %v2783_v38 = vmul.f32 %v8247_v60, %v8176_v43  ;;  %v5905_v33 = vld [vmem:[#allocation13 + $0x234] sm:$0xf0] }
 0x2a4   : > { %v8303_v35 = vmul.f32 %v8260_v10, %v8181_v54  ;;  %v2737_v46 = vmul.f32 %v8232_v7, %v2736_v6  ;;  %v2767_v4 = vmul.f32 %v8251_v49, %v2766_v17  ;;  %vm2768_vm6 = vweird.f32 %v8226_v28  ;;  %v6209_v39 = vld [vmem:[#allocation13 + $0x178] sm:$0xf0]  ;;  %v6204_v52 = vld [vmem:[#allocation13 + $0x154] sm:$0xf]  ;;  %v5797_v6 = vld [vmem:[#allocation13 + $0x15c] sm:$0xf0] }
 0x2a5   : > { %v2687_v14 = vsub.f32 %v2663_v51, %v2675_v25  ;;  %3497 = vmatpush.bf16.msrb.mxu0 %v5628_v57  ;;  %3516 = vmatpush.bf16.msrb.mxu1 %v5724_v0  ;;  %v9294_v20 = vsel %vm8043_vm14, %v7975_v37, %v8026_v21  ;;  %v2773_v23 = vmul.f32 %v8280_v50, %v8158_v34  ;;  %vm2770_vm7 = vmor %vm2768_vm6, %vm2769_vm4  ;;  %v5815_v21 = vld [vmem:[#allocation13 + $0x170] sm:$0xf]  ;;  %vm2789_vm14 = vweird.f32 %v8247_v60 }
 0x2a6   : > { %v2852_v26 = vsel %vm1587_vm8, %v9294_v20, %v2844_v24  ;;  %v8318_v57 = vpop.eup %6512  ;;  %v2741_v28 = vsel %vm8290_vm5, %v8232_v7, %v2737_v46  ;;  %v5812_v29 = vor.u32 %v6207_v48, %v5809_v32  ;;  %v5908_v37 = vor.u32 %v6231_v40, %v5905_v33  ;;  %3535 = vmatpush.bf16.msrb.mxu2 %v5820_v11  ;;  %v6228_v24 = vld [vmem:[#allocation13 + $0x214] sm:$0xf]  ;;  %v5707_v46 = vld [vmem:[#allocation13 + $0x98] sm:$0xf]  ;;  %v6182_v48 = vld [vmem:[#allocation13 + $0xa0] sm:$0xf0] }
 0x2a7   : > { %v2699_v0 = vmax.f32 %v2687_v14, 0.0  ;;  %v2793_v62 = vmul.f32 %v8318_v57, %v8265_v13  ;;  %3554 = vmatpush.bf16.msrb.mxu3 %v5632_v55  ;;  %v2771_v1 = vsel %vm2770_vm7, %v8251_v49, %v2767_v4  ;;  %v2845_v51 = vrot.slane %v2741_v28, 6  ;;  %v5893_v55 = vld [vmem:[#allocation13 + $0x21c] sm:$0xf0] }
 0x2a8   : > { %v5720_v25 = vor.u32 %v6185_v3, %v5719_v45  ;;  %v2847_v7 = vrot.slane %v2771_v1, 6  ;;  %v5816_v17 = vor.u32 %v6209_v39, %v5815_v21  ;;  %v5800_v31 = vor.u32 %v6204_v52, %v5797_v6 }
 0x2a9   : > { %v8328_v8 = vadd.f32 1e-05, %v2699_v0  ;;  %3566 = vmatpush.bf16.msra.mxu0 %v5812_v29  ;;  %3585 = vmatpush.bf16.msra.mxu1 %v5908_v37  ;;  %v2853_v14 = vsel %vm1589_vm9, %v2852_v26, %v2845_v51  ;;  %v9295_v11 = vsel %vm8106_vm3, %v8010_v47, %v8076_v2  ;;  %v8338_v32 = vmul.f32 %v8280_v50, %v2773_v23  ;;  %v5803_v26 = vld [vmem:[#allocation13 + $0x158] sm:$0xf]  ;;  %v6206_v47 = vld [vmem:[#allocation13 + $0x160] sm:$0xf0] }
 0x2aa   : > { %v2854_v49 = vsel %vm1587_vm8, %v9295_v11, %v2846_v19  ;;  %3604 = vmatpush.bf16.msra.mxu2 %v5720_v25  ;;  %v8341_v40 = vmul.f32 %v8247_v60, %v2783_v38  ;;  %v2864_v20 = vmul.f32 %v2853_v14, %v8306_v63  ;;  %v5896_v61 = vor.u32 %v6228_v24, %v5893_v55  ;;  %v6201_v2 = vld [vmem:[#allocation13 + $0x13c] sm:$0xf]  ;;  %v5785_v38 = vld [vmem:[#allocation13 + $0x144] sm:$0xf0]  ;;  %v5791_v24 = vld [vmem:[#allocation13 + $0x140] sm:$0xf] }
 0x2ab   : > { %v2855_v4 = vsel %vm1589_vm9, %v2854_v49, %v2847_v7  ;;  %3623 = vmatpush.bf16.msra.mxu3 %v5816_v17  ;;  %v8346_v19 = vmul.f32 %v8318_v57, %v2793_v62  ;;  %6514 = vrsqrt.f32 %v8328_v8  ;;  %v5708_v45 = vor.u32 %v6182_v48, %v5707_v46  ;;  %v6225_v23 = vld [vmem:[#allocation13 + $0x1fc] sm:$0xf]  ;;  %v5881_v0 = vld [vmem:[#allocation13 + $0x204] sm:$0xf0]  ;;  %v5695_v7 = vld [vmem:[#allocation13 + $0x80] sm:$0xf] }
 0x2ac   : > { %v2865_v33 = vmul.f32 %v2855_v4, %v8306_v63  ;;  %v5804_v3 = vor.u32 %v6206_v47, %v5803_v26  ;;  %v2872_v28 = vperm.slane %v2864_v20, 0  ;;  %v2873_v29 = vperm.slane %v2864_v20, 1  ;;  %v6179_v17 = vld [vmem:[#allocation13 + $0x88] sm:$0xf0]  ;;  %v8360_v14 = vld [vmem:[%s9149_s8] sm:$0x7] }
 0x2ad   : > { %v2874_v37 = vperm.slane %v2864_v20, 2  ;;  %3567 = vmatpush.bf16.msra.mxu0 %v5800_v31  ;;  %3586 = vmatpush.bf16.msra.mxu1 %v5896_v61  ;;  %v5788_v21 = vor.u32 %v6201_v2, %v5785_v38  ;;  %v5884_v62 = vor.u32 %v6225_v23, %v5881_v0  ;;  %v8355_v31 = vmul.f32 %v8260_v10, %v8303_v35  ;;  %v6203_v49 = vld [vmem:[#allocation13 + $0x148] sm:$0xf0]  ;;  %v6198_v55 = vld [vmem:[#allocation13 + $0x124] sm:$0xf] }
 0x2ae   : > { %v2875_v39 = vperm.slane %v2865_v33, 0  ;;  %v2876_v1 = vperm.slane %v2865_v33, 1  ;;  %v2877_v51 = vperm.slane %v2865_v33, 2  ;;  %3605 = vmatpush.bf16.msra.mxu2 %v5708_v45  ;;  %v2896_v25 = vmul.f32 %v2872_v28, %v7954_v12  ;;  %v5773_v46 = vld [vmem:[#allocation13 + $0x12c] sm:$0xf0] }
 0x2af   : > { %v2897_v52 = vmul.f32 %v2873_v29, %v8059_v41  ;;  %v2898_v6 = vmul.f32 %v2874_v37, %v8179_v56  ;;  %3624 = vmatpush.bf16.msra.mxu3 %v5804_v3  ;;  %v2944_v56 = vmul.f32 %v2872_v28, %v7935_v22  ;;  %v2945_v20 = vmul.f32 %v2873_v29, %v8006_v15  ;;  %v6222_v61 = vld [vmem:[#allocation13 + $0x1e4] sm:$0xf]  ;;  %v5869_v26 = vld [vmem:[#allocation13 + $0x1ec] sm:$0xf0]  ;;  %v5683_v2 = vld [vmem:[#allocation13 + $0x68] sm:$0xf] }
 0x2b0   : > { %v2899_v11 = vmul.f32 %v2875_v39, %v7962_v16  ;;  %v2900_v12 = vmul.f32 %v2876_v1, %v8085_v42  ;;  %v2901_v41 = vmul.f32 %v2877_v51, %v8200_v30  ;;  %v2947_v35 = vmul.f32 %v2875_v39, %v7943_v27  ;;  %v6176_v33 = vld [vmem:[#allocation13 + $0x70] sm:$0xf0]  ;;  %v5779_v38 = vld [vmem:[#allocation13 + $0x128] sm:$0xf] }
 0x2b1   : > { %v2920_v48 = vrot.slane %v2897_v52, 7  ;;  %v2921_v4 = vrot.slane %v2898_v6, 6  ;;  %3568 = vmatpush.bf16.msra.mxu0 %v5788_v21  ;;  %3587 = vmatpush.bf16.msra.mxu1 %v5884_v62  ;;  %v8369_v16 = vpop.eup %6514  ;;  %v2948_v22 = vmul.f32 %v2876_v1, %v8035_v5  ;;  %v2946_v47 = vmul.f32 %v2874_v37, %v8139_v18  ;;  %v6200_v23 = vld [vmem:[#allocation13 + $0x130] sm:$0xf0] }
 0x2b2   : > { %v2922_v42 = vrot.slane %v2900_v12, 7  ;;  %v2923_v30 = vrot.slane %v2901_v41, 6  ;;  %v2949_v15 = vmul.f32 %v2877_v51, %v8156_v44  ;;  %v5696_v45 = vor.u32 %v6179_v17, %v5695_v7 }
 0x2b3   : > { %v2928_v27 = vsel %vm1587_vm8, %v2896_v25, %v2920_v48  ;;  %v5792_v3 = vor.u32 %v6203_v49, %v5791_v24  ;;  %vm2788_vm3 = vweird.f32 %v8176_v43  ;;  %v5776_v29 = vor.u32 %v6198_v55, %v5773_v46 }
 0x2b4   : > { %v2929_v0 = vsel %vm1589_vm9, %v2928_v27, %v2921_v4  ;;  %v2930_v28 = vsel %vm1587_vm8, %v2899_v11, %v2922_v42  ;;  %v5872_v5 = vor.u32 %v6222_v61, %v5869_v26  ;;  %vm2779_vm10 = vweird.f32 %v8280_v50  ;;  %3606 = vmatpush.bf16.msra.mxu2 %v5696_v45  ;;  %vm2790_vm12 = vmor %vm2788_vm3, %vm2789_vm14  ;;  %v6195_v45 = vld [vmem:[#allocation13 + $0x10c] sm:$0xf] }
 0x2b5   : > { %v2931_v18 = vsel %vm1589_vm9, %v2930_v28, %v2923_v30  ;;  %v2940_v37 = vsub.f32 %v8360_v14, %v2929_v0  ;;  %3625 = vmatpush.bf16.msra.mxu3 %v5792_v3  ;;  %v5684_v44 = vor.u32 %v6176_v33, %v5683_v2  ;;  %v8382_v21 = vadd.f32 1e-05, %v8189_v59  ;;  %3569 = vmatpush.bf16.msra.mxu0 %v5776_v29  ;;  %v5761_v3 = vld [vmem:[#allocation13 + $0x114] sm:$0xf0]  ;;  %v6219_v0 = vld [vmem:[#allocation13 + $0x1cc] sm:$0xf] }
 0x2b6   : > { %v2941_v39 = vsub.f32 %v8360_v14, %v2931_v18  ;;  %3588 = vmatpush.bf16.msra.mxu1 %v5872_v5  ;;  %v5780_v1 = vor.u32 %v6200_v23, %v5779_v38  ;;  %v2775_v51 = vmul.f32 0.5, %v8338_v32  ;;  %v2785_v62 = vmul.f32 0.5, %v8341_v40  ;;  %v5857_v28 = vld [vmem:[#allocation13 + $0x1d4] sm:$0xf0]  ;;  %v6186_v38 = vld [vmem:[#allocation13 + $0xc4] sm:$0xf] }
 0x2b7   : > { %v2960_v25 = vperm.slane %v2940_v37, 0  ;;  %v2961_v52 = vperm.slane %v2940_v37, 1  ;;  %v2962_v6 = vperm.slane %v2940_v37, 2  ;;  %v2795_v7 = vmul.f32 0.5, %v8346_v19 }
 0x2b8   : > { %v2963_v17 = vperm.slane %v2941_v39, 0  ;;  %v2964_v24 = vperm.slane %v2941_v39, 1  ;;  %v2965_v11 = vperm.slane %v2941_v39, 2  ;;  %v2776_v12 = vsub.f32 1.5, %v2775_v51  ;;  %3607 = vmatpush.bf16.msra.mxu2 %v5684_v44  ;;  %v5671_v44 = vld [vmem:[#allocation13 + $0x50] sm:$0xf] }
 0x2b9   : > { %v2823_v59 = vmul.f32 %v8369_v16, %v8328_v8  ;;  %v2984_v41 = vadd.f32 %v2960_v25, %v2944_v56  ;;  %v2985_v49 = vadd.f32 %v2961_v52, %v2945_v20  ;;  %3626 = vmatpush.bf16.msra.mxu3 %v5780_v1  ;;  %v2786_v55 = vsub.f32 1.5, %v2785_v62  ;;  %v6173_v39 = vld [vmem:[#allocation13 + $0x58] sm:$0xf0]  ;;  %v5767_v25 = vld [vmem:[#allocation13 + $0x110] sm:$0xf] }
 0x2ba   : > { %v2987_v32 = vadd.f32 %v2963_v17, %v2947_v35  ;;  %v2988_v46 = vadd.f32 %v2964_v24, %v2948_v22  ;;  %v2986_v40 = vadd.f32 %v2962_v6, %v2946_v47  ;;  %v2989_v48 = vadd.f32 %v2965_v11, %v2949_v15  ;;  %v6197_v6 = vld [vmem:[#allocation13 + $0x118] sm:$0xf0] }
 0x2bb   : > { %v2787_v4 = vmul.f32 %v8247_v60, %v2786_v55  ;;  %v2796_v61 = vsub.f32 1.5, %v2795_v7  ;;  %vm2799_vm11 = vweird.f32 %v8318_v57  ;;  %6516 = vrsqrt.f32 %v8382_v21  ;;  %v6192_v7 = vld [vmem:[#allocation13 + $0xf4] sm:$0xf]  ;;  %v5845_v55 = vld [vmem:[#allocation13 + $0x1bc] sm:$0xf0] }
 0x2bc   : > { %v8393_v19 = vpack.c.bf16 %v2987_v32, %v2984_v41  ;;  %v8395_v26 = vpack.c.bf16 %v2988_v46, %v2985_v49  ;;  %v8397_v56 = vpack.c.bf16 %v2989_v48, %v2986_v40  ;;  %v2777_v20 = vmul.f32 %v8280_v50, %v2776_v12  ;;  %v6216_v41 = vld [vmem:[#allocation13 + $0x1b4] sm:$0xf]  ;;  %v5659_v32 = vld [vmem:[#allocation13 + $0x38] sm:$0xf] }
 0x2bd   : > { %v2791_v35 = vsel %vm2790_vm12, %v8247_v60, %v2787_v4  ;;  %v2797_v42 = vmul.f32 %v8318_v57, %v2796_v61  ;;  %vm2798_vm13 = vweird.f32 %v8265_v13  ;;  %v2815_v30 = vmul.f32 0.5, %v8355_v31  ;;  %v5755_v61 = vld [vmem:[#allocation13 + $0xf8] sm:$0xf]  ;;  %v9303_v46 = vld [vmem:[#allocation27_spill] sm:$0xff] }
 0x2be   : > { %3498 = vmatmul.bf16.vlgmr.msrb.gmra.mxu0 %v8393_v19  ;;  %3517 = vmatmul.bf16.vlgmr.msrb.gmra.mxu1 %v8395_v26  ;;  %vm2778_vm15 = vweird.f32 %v8158_v34  ;;  %vm2800_vm0 = vmor %vm2798_vm13, %vm2799_vm11  ;;  %v2824_v22 = vmul.f32 %v8369_v16, %v2823_v59  ;;  %v2848_v13 = vrot.slane %v2791_v35, 7  ;;  %vm2819_vm2 = vweird.f32 %v8260_v10  ;;  %v5749_v59 = vld [vmem:[#allocation13 + $0xfc] sm:$0xf0] }
 0x2bf   : > { %3536 = vmatmul.bf16.vlgmr.msrb.gmra.mxu2 %v8397_v56  ;;  %3555 = vmatmul.bf16.vlgmr.msrb.gmra.mxu3 %v8393_v19  ;;  %vm2780_vm1 = vmor %vm2778_vm15, %vm2779_vm10  ;;  %v2801_v60 = vsel %vm2800_vm0, %v8318_v57, %v2797_v42  ;;  %v2816_v43 = vsub.f32 1.5, %v2815_v30  ;;  %vm2818_vm4 = vweird.f32 %v8181_v54  ;;  %vm2829_vm5 = vweird.f32 %v8369_v16  ;;  %v6189_v30 = vld [vmem:[#allocation13 + $0xdc] sm:$0xf] }
 0x2c0   : > { %v2781_v31 = vsel %vm2780_vm1, %v8280_v50, %v2777_v20  ;;  %v2825_v47 = vmul.f32 0.5, %v2824_v22  ;;  %v2849_v34 = vrot.slane %v2801_v60, 6  ;;  %vm8428_vm6 = vmor %vm2818_vm4, %vm2819_vm2  ;;  %vm2828_vm7 = vweird.f32 %v8328_v8  ;;  %v5737_v22 = vld [vmem:[#allocation13 + $0xe4] sm:$0xf0] }
 0x2c1   : > { %v8419_v2 = vpop.eup %6516  ;;  %v2817_v33 = vmul.f32 %v8260_v10, %v2816_v43  ;;  %v2856_v27 = vsel %vm1587_vm8, %v2781_v31, %v2848_v13  ;;  %v5764_v23 = vor.u32 %v6195_v45, %v5761_v3  ;;  %v5860_v37 = vor.u32 %v6219_v0, %v5857_v28  ;;  %vm8443_vm14 = vmor %vm2828_vm7, %vm2829_vm5  ;;  %v6213_v31 = vld [vmem:[#allocation13 + $0x19c] sm:$0xf]  ;;  %v6210_v0 = vld [vmem:[#allocation13 + $0x184] sm:$0xf] }
 0x2c2   : > { %v2803_v15 = vmul.f32 %v8419_v2, %v8382_v21  ;;  %v2826_v57 = vsub.f32 1.5, %v2825_v47  ;;  %v2857_v50 = vsel %vm1589_vm9, %v2856_v27, %v2849_v34  ;;  %v5672_v62 = vor.u32 %v6173_v39, %v5671_v44  ;;  %v5833_v47 = vld [vmem:[#allocation13 + $0x1a4] sm:$0xf0]  ;;  %v5647_v34 = vld [vmem:[#allocation13 + $0x20] sm:$0xf] }
 0x2c3   : > { %v8434_v54 = vmul.f32 %v2857_v50, %v8306_v63  ;;  %v2821_v5 = vsel %vm8428_vm6, %v8260_v10, %v2817_v33  ;;  %3570 = vmatpush.bf16.msra.mxu0 %v5764_v23  ;;  %vm2809_vm3 = vweird.f32 %v8419_v2  ;;  %3589 = vmatpush.bf16.msra.mxu1 %v5860_v37  ;;  %vm2808_vm10 = vweird.f32 %v8382_v21  ;;  %v6194_v21 = vld [vmem:[#allocation13 + $0x100] sm:$0xf0]  ;;  %v6191_v50 = vld [vmem:[#allocation13 + $0xe8] sm:$0xf0]  ;;  %v5725_v23 = vld [vmem:[#allocation13 + $0xcc] sm:$0xf0] }
 0x2c4   : > { %v2804_v29 = vmul.f32 %v8419_v2, %v2803_v15  ;;  %v2827_v18 = vmul.f32 %v8369_v16, %v2826_v57  ;;  %v2850_v17 = vrot.slane %v2821_v5, 7  ;;  %3608 = vmatpush.bf16.msra.mxu2 %v5672_v62  ;;  %vm8463_vm11 = vmor %vm2808_vm10, %vm2809_vm3  ;;  %v5768_v48 = vor.u32 %v6197_v6, %v5767_v25  ;;  %v6167_v15 = vld [vmem:[#allocation13 + $0x28] sm:$0xf0]  ;;  %v5743_v57 = vld [vmem:[#allocation13 + $0xe0] sm:$0xf] }
 0x2c5   : > { %v2879_v1 = vperm.slane %v8434_v54, 1  ;;  %v2880_v51 = vperm.slane %v8434_v54, 2  ;;  %v2878_v24 = vperm.slane %v8434_v54, 0  ;;  %v5752_v4 = vor.u32 %v6192_v7, %v5749_v59  ;;  %v5635_v5 = vld [vmem:[#allocation13 + $0x8] sm:$0xf] }
 0x2c6   : > { %v2805_v52 = vmul.f32 0.5, %v2804_v29  ;;  %v2831_v10 = vsel %vm8443_vm14, %v8369_v16, %v2827_v18  ;;  %v5848_v35 = vor.u32 %v6216_v41, %v5845_v55  ;;  %3627 = vmatpush.bf16.msra.mxu3 %v5768_v48  ;;  %v5756_v43 = vor.u32 %v6194_v21, %v5755_v61  ;;  %v5821_v29 = vld [vmem:[#allocation13 + $0x18c] sm:$0xf0]  ;;  %v6164_v18 = vld [vmem:[#allocation13 + $0x10] sm:$0xf0] }
 0x2c7   : > { %v2903_v11 = vmul.f32 %v2879_v1, %v8132_v53  ;;  %v2904_v12 = vmul.f32 %v2880_v51, %v8240_v36  ;;  %v2851_v16 = vrot.slane %v2831_v10, 6  ;;  %v6170_v36 = vld [vmem:[#allocation13 + $0x40] sm:$0xf0]  ;;  %v2902_v60 = vmul.f32 %v2878_v24, %v8078_v58  ;;  %3571 = vmatpush.bf16.msra.mxu0 %v5752_v4  ;;  %v5731_v62 = vld [vmem:[#allocation13 + $0xc8] sm:$0xf] }
 0x2c8   : > { %v2806_v49 = vsub.f32 1.5, %v2805_v52  ;;  %v5660_v42 = vor.u32 %v6170_v36, %v5659_v32  ;;  %v5740_v13 = vor.u32 %v6189_v30, %v5737_v22  ;;  %3590 = vmatpush.bf16.msra.mxu1 %v5848_v35  ;;  %v5836_v27 = vor.u32 %v6213_v31, %v5833_v47  ;;  %v6188_v25 = vld [vmem:[#allocation13 + $0xd0] sm:$0xf0]  ;;  %v6227_v61 = vld [vmem:[#allocation13 + $0x208] sm:$0xf0] }
 0x2c9   : > { %v2924_v53 = vrot.slane %v2903_v11, 7  ;;  %v2925_v40 = vrot.slane %v2904_v12, 6  ;;  %v5648_v3 = vor.u32 %v6167_v15, %v5647_v34  ;;  %v5744_v37 = vor.u32 %v6191_v50, %v5743_v57  ;;  %v6233_v11 = vld [vmem:[#allocation13 + $0x238] sm:$0xf0]  ;;  %v9304_v30 = vld [vmem:[#allocation26_spill] sm:$0xff]  ;;  %v9306_v31 = vld [vmem:[#allocation31_spill] sm:$0xff] }
 0x2ca   : > { %v2807_v20 = vmul.f32 %v8419_v2, %v2806_v49  ;;  %3609 = vmatpush.bf16.msra.mxu2 %v5660_v42  ;;  %3628 = vmatpush.bf16.msra.mxu3 %v5756_v43  ;;  %v5728_v39 = vor.u32 %v6186_v38, %v5725_v23  ;;  %v5824_v8 = vor.u32 %v6210_v0, %v5821_v29  ;;  %v9302_v12 = vld [vmem:[#allocation28_spill] sm:$0xff]  ;;  %v9307_v34 = vld [vmem:[#allocation35_spill] sm:$0xff]  ;;  %v5875_v23 = vld [vmem:[#allocation13 + $0x1e8] sm:$0xf] }
 0x2cb   : > { %v2932_v58 = vsel %vm1587_vm8, %v2902_v60, %v2924_v53  ;;  %3572 = vmatpush.bf16.msra.mxu0 %v5740_v13  ;;  %v5636_v7 = vor.u32 %v6164_v18, %v5635_v5  ;;  %v5732_v41 = vor.u32 %v6188_v25, %v5731_v62  ;;  %v5899_v49 = vld [vmem:[#allocation13 + $0x218] sm:$0xf]  ;;  %v2950_v22 = vmul.f32 %v2878_v24, %v9304_v30  ;;  %v6218_v62 = vld [vmem:[#allocation13 + $0x1c0] sm:$0xf0] }
 0x2cc   : > { %v2811_v33 = vsel %vm8463_vm11, %v8419_v2, %v2807_v20  ;;  %v2933_v44 = vsel %vm1589_vm9, %v2932_v58, %v2925_v40  ;;  %3591 = vmatpush.bf16.msra.mxu1 %v5836_v27  ;;  %v9305_v60 = vld [vmem:[#allocation32_spill] sm:$0xff]  ;;  %v9308_v27 = vld [vmem:[#allocation30_spill] sm:$0xff] }
 0x2cd   : > { %v2858_v45 = vsel %vm1587_vm8, %v2811_v33, %v2850_v17  ;;  %v5911_v17 = vld [vmem:[#allocation13 + $0x230] sm:$0xf]  ;;  %v2942_v55 = vsub.f32 %v8360_v14, %v2933_v44  ;;  %v2951_v43 = vmul.f32 %v2879_v1, %v9305_v60  ;;  %v2952_v15 = vmul.f32 %v2880_v51, %v9308_v27  ;;  %v6224_v1 = vld [vmem:[#allocation13 + $0x1f0] sm:$0xf0]  ;;  %v6221_v44 = vld [vmem:[#allocation13 + $0x1d8] sm:$0xf0] }
 0x2ce   : > { %v2859_v28 = vsel %vm1589_vm9, %v2858_v45, %v2851_v16  ;;  %3610 = vmatpush.bf16.msra.mxu2 %v5648_v3  ;;  %3629 = vmatpush.bf16.msra.mxu3 %v5744_v37  ;;  %v6230_v16 = vld [vmem:[#allocation13 + $0x220] sm:$0xf0]  ;;  %v5912_v32 = vor.u32 %v6233_v11, %v5911_v17  ;;  %v5876_v51 = vor.u32 %v6224_v1, %v5875_v23  ;;  %v5863_v37 = vld [vmem:[#allocation13 + $0x1d0] sm:$0xf]  ;;  %v6212_v17 = vld [vmem:[#allocation13 + $0x190] sm:$0xf0] }
 0x2cf   : > { %v2867_v2 = vmul.f32 %v2859_v28, %v8306_v63  ;;  %3573 = vmatpush.bf16.msra.mxu0 %v5728_v39  ;;  %v5900_v4 = vor.u32 %v6230_v16, %v5899_v49  ;;  %v2966_v35 = vperm.slane %v2942_v55, 0  ;;  %v2967_v42 = vperm.slane %v2942_v55, 1  ;;  %v9309_v45 = vld [vmem:[#allocation33_spill] sm:$0xff] }
 0x2d0   : > { %3592 = vmatpush.bf16.msra.mxu1 %v5824_v8  ;;  %v2968_v13 = vperm.slane %v2942_v55, 2  ;;  %v5864_v39 = vor.u32 %v6221_v44, %v5863_v37  ;;  %v5851_v8 = vld [vmem:[#allocation13 + $0x1b8] sm:$0xf] }
 0x2d1   : > { %v2881_v52 = vperm.slane %v2867_v2, 0  ;;  %v2882_v10 = vperm.slane %v2867_v2, 1  ;;  %v2883_v6 = vperm.slane %v2867_v2, 2  ;;  %v2990_v3 = vadd.f32 %v2966_v35, %v2950_v22 }
 0x2d2   : > { %3611 = vmatpush.bf16.msra.mxu2 %v5636_v7  ;;  %3630 = vmatpush.bf16.msra.mxu3 %v5732_v41  ;;  %v2991_v38 = vadd.f32 %v2967_v42, %v2951_v43  ;;  %v2992_v29 = vadd.f32 %v2968_v13, %v2952_v15  ;;  %v5852_v25 = vor.u32 %v6218_v62, %v5851_v8  ;;  %v5827_v7 = vld [vmem:[#allocation13 + $0x188] sm:$0xf] }
 0x2d3   : > { %v2906_v59 = vmul.f32 %v2882_v10, %v9302_v12  ;;  %v2907_v63 = vmul.f32 %v2883_v6, %v8278_v9  ;;  %v2905_v53 = vmul.f32 %v2881_v52, %v9303_v46  ;;  %3642 = vmatpush.bf16.msrb.mxu0 %v5912_v32  ;;  %v5887_v9 = vld [vmem:[#allocation13 + $0x200] sm:$0xf]  ;;  %v2953_v47 = vmul.f32 %v2881_v52, %v9306_v31 }
 0x2d4   : > { %v2954_v33 = vmul.f32 %v2882_v10, %v9307_v34  ;;  %v5888_v57 = vor.u32 %v6227_v61, %v5887_v9  ;;  %v2955_v58 = vmul.f32 %v2883_v6, %v9309_v45  ;;  %v5839_v52 = vld [vmem:[#allocation13 + $0x1a0] sm:$0xf]  ;;  %v6215_v10 = vld [vmem:[#allocation13 + $0x1a8] sm:$0xf0]  ;;  %v5828_v11 = vor.u32 %v6212_v17, %v5827_v7 }
 0x2d5   : > { %v2926_v40 = vrot.slane %v2906_v59, 7  ;;  %v2927_v48 = vrot.slane %v2907_v63, 6  ;;  %v5840_v6 = vor.u32 %v6215_v10, %v5839_v52  ;;  %v8503_v12 = vld [vmem:[#allocation14] sm:$0x7] }
 0x2d6   : > { %v3100_v59 = vperm.slane %v8503_v12, 0  ;;  %v8507_v30 = vperm.slane %v8503_v12, 1 }
 0x2d7   : > { %v2934_v36 = vsel %vm1587_vm8, %v2905_v53, %v2926_v40  ;;  %3643 = vmatpush.bf16.msrb.mxu0 %v5900_v4 }
 0x2d8   : > { %v2935_v20 = vsel %vm1589_vm9, %v2934_v36, %v2927_v48 }
 0x2d9   : > { %v2943_v21 = vsub.f32 %v8360_v14, %v2935_v20 }
 0x2db   : > { %v2969_v14 = vperm.slane %v2943_v21, 0  ;;  %v2970_v50 = vperm.slane %v2943_v21, 1  ;;  %v2971_v24 = vperm.slane %v2943_v21, 2  ;;  %3644 = vmatpush.bf16.msrb.mxu0 %v5888_v57 }
 0x2dd   : > { %v2993_v0 = vadd.f32 %v2969_v14, %v2953_v47  ;;  %v2994_v28 = vadd.f32 %v2970_v50, %v2954_v33  ;;  %v2995_v5 = vadd.f32 %v2971_v24, %v2955_v58 }
 0x2df   : > { %v2999_v18 = vpack.c.bf16 %v2993_v0, %v2990_v3  ;;  %v3000_v2 = vpack.c.bf16 %v2994_v28, %v2991_v38  ;;  %v3001_v54 = vpack.c.bf16 %v2995_v5, %v2992_v29  ;;  %3645 = vmatpush.bf16.msrb.mxu0 %v5876_v51 }
 0x2e1   : > { %3503 = vmatmul.bf16.gmra.mxu0 %v2999_v18  ;;  %3522 = vmatmul.bf16.gmra.mxu1 %v3000_v2 }
 0x2e2   : > { %3541 = vmatmul.bf16.gmra.mxu2 %v3001_v54  ;;  %3560 = vmatmul.bf16.gmra.mxu3 %v2999_v18 }
 0x2e3   : > { %3646 = vmatpush.bf16.msrb.mxu0 %v5864_v39 }
 0x2e7   : > { %3647 = vmatpush.bf16.msrb.mxu0 %v5852_v25 }
 0x2eb   : > { %3648 = vmatpush.bf16.msrb.mxu0 %v5840_v6 }
 0x2ef   : > { %3649 = vmatpush.bf16.msrb.mxu0 %v5828_v11 }
 0x2f1   : > { %3574 = vmatmul.bf16.vlgmr.msra.gmra.mxu0 %v8395_v26  ;;  %3593 = vmatmul.bf16.vlgmr.msra.gmra.mxu1 %v8397_v56 }
 0x2f2   : > { %3612 = vmatmul.bf16.vlgmr.msra.gmra.mxu2 %v8393_v19  ;;  %3631 = vmatmul.bf16.vlgmr.msra.gmra.mxu3 %v8395_v26 }
 0x301   : > { %3579 = vmatmul.bf16.gmra.mxu0 %v3000_v2  ;;  %3598 = vmatmul.bf16.gmra.mxu1 %v3001_v54 }
 0x302   : > { %3617 = vmatmul.bf16.gmra.mxu2 %v2999_v18  ;;  %3636 = vmatmul.bf16.gmra.mxu3 %v3000_v2 }
 0x311   : > { %3650 = vmatmul.bf16.vlgmr.msrb.gmra.mxu0 %v8397_v56 }
 0x321   : > { %3655 = vmatmul.bf16.gmra.mxu0 %v3001_v54 }
 0x33b   : > { %v3499_v63 = vpop.f32.mrf.mxu0  ;;  %v3518_v41 = vpop.f32.mrf.mxu1 }
 0x33c   : > { %v3500_v49 = vadd.f32 %v3499_v63, %v3100_v59 }
 0x33e   : > { %v3519_v55 = vadd.f32 %v3518_v41, %v3500_v49 }
 0x342   : > { %v3537_v16 = vpop.f32.mrf.mxu2  ;;  %v3556_v22 = vpop.f32.mrf.mxu3 }
 0x343   : > { %v3538_v19 = vadd.f32 %v3537_v16, %v3519_v55  ;;  %v3501_v32 = vpop.f32.mrf.mxu0  ;;  %v3520_v26 = vpop.f32.mrf.mxu1  ;;  %v3557_v13 = vadd.f32 %v3556_v22, %v8507_v30 }
 0x344   : > { %v3502_v53 = vadd.f32 %v3501_v32, %v3100_v59 }
 0x345   : > { %v3673_v46 = vmul.f32 1.442695, %v3538_v19  ;;  %vm3661_vm12 = vcmp.gt.f32.partialorder %v3538_v19, 0.0 }
 0x346   : > { %v3521_v36 = vadd.f32 %v3520_v26, %v3502_v53 }
 0x347   : > { %6518 = vpow2.f32 %v3673_v46 }
 0x34a   : > { %v3539_v4 = vpop.f32.mrf.mxu2  ;;  %v3558_v44 = vpop.f32.mrf.mxu3 }
 0x34b   : > { %v3540_v9 = vadd.f32 %v3539_v4, %v3521_v36 }
 0x34d   : > { %v6519_v56 = vpop.eup %6518  ;;  %v3679_v42 = vmul.f32 1.442695, %v3540_v9  ;;  %vm3664_vm13 = vcmp.gt.f32.partialorder %v3540_v9, 0.0 }
 0x34e   : > { %v5913_v61 = vadd.f32 -1.0, %v6519_v56 }
 0x34f   : > { %6520 = vpow2.f32 %v3679_v42 }
 0x350   : > { %v3709_v21 = vmul.f32 1.6732632, %v5913_v61 }
 0x352   : > { %v3721_v43 = vsel %vm3661_vm12, %v3538_v19, %v3709_v21  ;;  %v3559_v19 = vadd.f32 %v3558_v44, %v8507_v30 }
 0x353   : > { %v8510_v34 = vmul.f32 1.050701, %v3721_v43 }
 0x355   : > { %v6521_v57 = vpop.eup %6520  ;;  %v3819_v45 = vmul.f32 %v8510_v34, %v8510_v34  ;;  %v3747_v38 = vrot.slane %v8510_v34, 4 }
 0x356   : > { %v5916_v58 = vadd.f32 -1.0, %v6521_v57 }
 0x357   : > { %v3831_v0 = vrot.slane %v3819_v45, 4  ;;  %v3748_v18 = vadd.f32 %v3747_v38, %v8510_v34 }
 0x358   : > { %v3712_v28 = vmul.f32 1.6732632, %v5916_v58 }
 0x359   : > { %v3832_v54 = vadd.f32 %v3831_v0, %v3819_v45  ;;  %v3749_v62 = vrot.slane %v3748_v18, 2 }
 0x35a   : > { %v3724_v37 = vsel %vm3664_vm13, %v3540_v9, %v3712_v28 }
 0x35b   : > { %v3833_v25 = vrot.slane %v3832_v54, 2  ;;  %v8522_v52 = vmul.f32 1.050701, %v3724_v37  ;;  %v3750_v7 = vadd.f32 %v3749_v62, %v3748_v18 }
 0x35d   : > { %v3765_v63 = vrot.slane %v8522_v52, 4  ;;  %v3822_v49 = vmul.f32 %v8522_v52, %v8522_v52  ;;  %v3751_v26 = vrot.slane %v3750_v7, 1 }
 0x35e   : > { %v3504_v40 = vpop.f32.mrf.mxu0  ;;  %v3523_v48 = vpop.f32.mrf.mxu1 }
 0x35f   : > { %v3505_v27 = vadd.f32 %v3504_v40, %v3100_v59  ;;  %v3766_v56 = vadd.f32 %v3765_v63, %v8522_v52  ;;  %v3849_v61 = vrot.slane %v3822_v49, 4 }
 0x361   : > { %v3524_v24 = vadd.f32 %v3523_v48, %v3505_v27 }
 0x365   : > { %v3542_v60 = vpop.f32.mrf.mxu2  ;;  %v3561_v46 = vpop.f32.mrf.mxu3 }
 0x366   : > { %v3506_v20 = vpop.f32.mrf.mxu0  ;;  %v3525_v35 = vpop.f32.mrf.mxu1  ;;  %v8515_v23 = vadd.f32 %v3542_v60, %v3524_v24  ;;  %v3752_v60 = vadd.f32 %v3751_v26, %v3750_v7 }
 0x367   : > { %v3507_v14 = vadd.f32 %v3506_v20, %v3100_v59  ;;  %v3834_v59 = vadd.f32 %v3833_v25, %v3832_v54 }
 0x368   : > { %v3685_v2 = vmul.f32 1.442695, %v8515_v23  ;;  %vm3667_vm0 = vcmp.gt.f32.partialorder %v8515_v23, 0.0 }
 0x369   : > { %v3526_v1 = vadd.f32 %v3525_v35, %v3507_v14  ;;  %v3835_v4 = vrot.slane %v3834_v59, 1 }
 0x36d   : > { %v3544_v3 = vpop.f32.mrf.mxu2  ;;  %v3563_v28 = vpop.f32.mrf.mxu3 }
 0x36e   : > { %v3575_v31 = vpop.f32.mrf.mxu0  ;;  %v3594_v33 = vpop.f32.mrf.mxu1  ;;  %v8517_v29 = vadd.f32 %v3544_v3, %v3526_v1  ;;  %v8539_v1 = vmul.f32 0.125, %v3752_v60 }
 0x36f   : > { %v3576_v47 = vadd.f32 %v3575_v31, %v3557_v13  ;;  %v3836_v31 = vadd.f32 %v3835_v4, %v3834_v59 }
 0x370   : > { %v3691_v39 = vmul.f32 1.442695, %v8517_v29  ;;  %vm3670_vm1 = vcmp.gt.f32.partialorder %v8517_v29, 0.0  ;;  %v3927_v54 = vmul.f32 %v8539_v1, %v8539_v1 }
 0x371   : > { %v3595_v15 = vadd.f32 %v3594_v33, %v3576_v47  ;;  %v3767_v47 = vrot.slane %v3766_v56, 2  ;;  %v3915_v24 = vmul.f32 0.125, %v3836_v31 }
 0x373   : > { %v3675_v50 = vmul.f32 1.442695, %v3595_v15  ;;  %vm3662_vm15 = vcmp.gt.f32.partialorder %v3595_v15, 0.0  ;;  %v3768_v3 = vadd.f32 %v3767_v47, %v3766_v56 }
 0x375   : > { %6522 = vpow2.f32 %v3675_v50 }
 0x376   : > { %6524 = vpow2.f32 %v3685_v2  ;;  %v3577_v48 = vpop.f32.mrf.mxu0  ;;  %v3596_v42 = vpop.f32.mrf.mxu1 }
 0x377   : > { %6526 = vpow2.f32 %v3691_v39  ;;  %v3578_v9 = vadd.f32 %v3577_v48, %v3559_v19  ;;  %v3939_v39 = vsub.f32 %v3915_v24, %v3927_v54 }
 0x379   : > { %v3597_v22 = vadd.f32 %v3596_v42, %v3578_v9 }
 0x37b   : > { %v6523_v5 = vpop.eup %6522  ;;  %v3681_v27 = vmul.f32 1.442695, %v3597_v22  ;;  %vm3665_vm2 = vcmp.gt.f32.partialorder %v3597_v22, 0.0 }
 0x37c   : > { %v5914_v51 = vadd.f32 -1.0, %v6523_v5  ;;  %v6525_v41 = vpop.eup %6524 }
 0x37d   : > { %v6527_v32 = vpop.eup %6526  ;;  %v5919_v36 = vadd.f32 -1.0, %v6525_v41  ;;  %6528 = vpow2.f32 %v3681_v27 }
 0x37e   : > { %v3710_v8 = vmul.f32 1.6732632, %v5914_v51  ;;  %v5922_v21 = vadd.f32 -1.0, %v6527_v32  ;;  %v3580_v48 = vpop.f32.mrf.mxu0  ;;  %v3599_v9 = vpop.f32.mrf.mxu1 }
 0x37f   : > { %v3715_v33 = vmul.f32 1.6732632, %v5919_v36 }
 0x380   : > { %v3722_v10 = vsel %vm3662_vm15, %v3595_v15, %v3710_v8  ;;  %v3850_v15 = vadd.f32 %v3849_v61, %v3822_v49  ;;  %v3718_v50 = vmul.f32 1.6732632, %v5922_v21 }
 0x381   : > { %v8524_v6 = vmul.f32 1.050701, %v3722_v10  ;;  %v3727_v38 = vsel %vm3667_vm0, %v8515_v23, %v3715_v33  ;;  %v3769_v23 = vrot.slane %v3768_v3, 1  ;;  %v3613_v10 = vpop.f32.mrf.mxu2 }
 0x382   : > { %v3851_v0 = vrot.slane %v3850_v15, 2  ;;  %v3730_v2 = vsel %vm3670_vm1, %v8517_v29, %v3718_v50  ;;  %v8547_v51 = vmul.f32 1.050701, %v3727_v38  ;;  %v8581_v50 = vperm.slane %v8503_v12, 2 }
 0x383   : > { %v3753_v17 = vrot.slane %v8524_v6, 4  ;;  %v3820_v11 = vmul.f32 %v8524_v6, %v8524_v6  ;;  %v6529_v44 = vpop.eup %6528  ;;  %v8549_v62 = vmul.f32 1.050701, %v3730_v2  ;;  %v3770_v63 = vadd.f32 %v3769_v23, %v3768_v3 }
 0x384   : > { %v3852_v8 = vadd.f32 %v3851_v0, %v3850_v15  ;;  %v5917_v7 = vadd.f32 -1.0, %v6529_v44  ;;  %v3783_v26 = vrot.slane %v8547_v51, 4  ;;  %v3564_v38 = vadd.f32 %v3563_v28, %v8507_v30 }
 0x385   : > { %v3754_v16 = vadd.f32 %v3753_v17, %v8524_v6  ;;  %v3837_v55 = vrot.slane %v3820_v11, 4  ;;  %v3951_v17 = vmax.f32 %v3939_v39, 0.0  ;;  %v3828_v49 = vmul.f32 %v8549_v62, %v8549_v62 }
 0x386   : > { %v3713_v29 = vmul.f32 1.6732632, %v5917_v7  ;;  %v3853_v41 = vrot.slane %v3852_v8, 1  ;;  %v3582_v0 = vpop.f32.mrf.mxu0  ;;  %v3614_v39 = vadd.f32 %v3613_v10, %v8581_v50  ;;  %v3601_v7 = vpop.f32.mrf.mxu1 }
 0x387   : > { %v3755_v53 = vrot.slane %v3754_v16, 2  ;;  %v3838_v40 = vadd.f32 %v3837_v55, %v3820_v11  ;;  %v3825_v11 = vmul.f32 %v8547_v51, %v8547_v51  ;;  %v3562_v55 = vadd.f32 %v3561_v46, %v8507_v30 }
 0x388   : > { %v8560_v32 = vadd.f32 1e-05, %v3951_v17  ;;  %v3854_v61 = vadd.f32 %v3853_v41, %v3852_v8  ;;  %v3885_v46 = vrot.slane %v3828_v49, 4  ;;  %v3583_v23 = vadd.f32 %v3582_v0, %v3564_v38 }
 0x389   : > { %v3756_v20 = vadd.f32 %v3755_v53, %v3754_v16  ;;  %v3839_v35 = vrot.slane %v3838_v40, 2  ;;  %v3725_v16 = vsel %vm3665_vm2, %v3597_v22, %v3713_v29  ;;  %v3867_v53 = vrot.slane %v3825_v11, 4  ;;  %v3615_v60 = vpop.f32.mrf.mxu2 }
 0x38a   : > { %v8558_v19 = vmul.f32 1.050701, %v3725_v16  ;;  %v3581_v36 = vadd.f32 %v3580_v48, %v3562_v55  ;;  %v3801_v22 = vrot.slane %v8549_v62, 4  ;;  %v3918_v33 = vmul.f32 0.125, %v3854_v61 }
 0x38b   : > { %v3757_v43 = vrot.slane %v3756_v20, 1  ;;  %v3840_v13 = vadd.f32 %v3839_v35, %v3838_v40  ;;  %v3632_v40 = vpop.f32.mrf.mxu3  ;;  %v3886_v27 = vadd.f32 %v3885_v46, %v3828_v49  ;;  %v8590_v30 = vadd.f32 %v3601_v7, %v3583_v23 }
 0x38c   : > { %v3771_v4 = vrot.slane %v8558_v19, 4  ;;  %v3823_v56 = vmul.f32 %v8558_v19, %v8558_v19  ;;  %v8570_v21 = vadd.f32 %v3599_v9, %v3581_v36  ;;  %v3802_v3 = vadd.f32 %v3801_v22, %v8549_v62 }
 0x38d   : > { %v3758_v57 = vadd.f32 %v3757_v43, %v3756_v20  ;;  %v3841_v14 = vrot.slane %v3840_v13, 1  ;;  %v8567_v20 = vmul.f32 0.125, %v3770_v63  ;;  %v3784_v43 = vadd.f32 %v3783_v26, %v8547_v51 }
 0x38e   : > { %v3772_v35 = vadd.f32 %v3771_v4, %v8558_v19  ;;  %v3855_v42 = vrot.slane %v3823_v56, 4  ;;  %v3687_v15 = vmul.f32 1.442695, %v8570_v21  ;;  %v3887_v54 = vrot.slane %v3886_v27, 2  ;;  %v3651_v36 = vpop.f32.mrf.mxu0 }
 0x38f   : > { %v3842_v45 = vadd.f32 %v3841_v14, %v3840_v13  ;;  %v8536_v58 = vmul.f32 0.125, %v3758_v57  ;;  %v3868_v13 = vadd.f32 %v3867_v53, %v3825_v11  ;;  %v3930_v57 = vmul.f32 %v8567_v20, %v8567_v20 }
 0x390   : > { %v3773_v31 = vrot.slane %v3772_v35, 2  ;;  %v3856_v47 = vadd.f32 %v3855_v42, %v3823_v56  ;;  %v3803_v17 = vrot.slane %v3802_v3, 2  ;;  %v3888_v41 = vadd.f32 %v3887_v54, %v3886_v27 }
 0x391   : > { %v3916_v5 = vmul.f32 0.125, %v3842_v45  ;;  %v3928_v18 = vmul.f32 %v8536_v58, %v8536_v58  ;;  %v3869_v2 = vrot.slane %v3868_v13, 2  ;;  %v3942_v12 = vsub.f32 %v3918_v33, %v3930_v57  ;;  %v3618_v16 = vpop.f32.mrf.mxu2 }
 0x392   : > { %v3774_v45 = vadd.f32 %v3773_v31, %v3772_v35  ;;  %v3857_v24 = vrot.slane %v3856_v47, 2  ;;  %v3693_v55 = vmul.f32 1.442695, %v8590_v30  ;;  %v3633_v10 = vadd.f32 %v3632_v40, %v3614_v39 }
 0x393   : > { %v3940_v37 = vsub.f32 %v3916_v5, %v3928_v18  ;;  %v3785_v18 = vrot.slane %v3784_v43, 2  ;;  %v3634_v44 = vpop.f32.mrf.mxu3  ;;  %v3870_v11 = vadd.f32 %v3869_v2, %v3868_v13  ;;  %v3954_v26 = vmax.f32 %v3942_v12, 0.0 }
 0x394   : > { %v3775_v8 = vrot.slane %v3774_v45, 1  ;;  %v3616_v56 = vadd.f32 %v3615_v60, %v8581_v50  ;;  %v3804_v61 = vadd.f32 %v3803_v17, %v3802_v3  ;;  %v3619_v35 = vadd.f32 %v3618_v16, %v8581_v50 }
 0x395   : > { %v3952_v25 = vmax.f32 %v3940_v37, 0.0  ;;  %v3786_v29 = vadd.f32 %v3785_v18, %v3784_v43  ;;  %v8599_v42 = vadd.f32 %v3651_v36, %v3633_v10  ;;  %v3871_v43 = vrot.slane %v3870_v11, 1 }
 0x396   : > { %v3776_v53 = vadd.f32 %v3775_v8, %v3774_v45  ;;  %vm3668_vm4 = vcmp.gt.f32.partialorder %v8570_v21, 0.0  ;;  %v8604_v40 = vadd.f32 1e-05, %v3954_v26  ;;  %v3889_v27 = vrot.slane %v3888_v41, 1  ;;  %v3653_v7 = vpop.f32.mrf.mxu0 }
 0x397   : > { %v8553_v59 = vadd.f32 1e-05, %v3952_v25  ;;  %v3858_v25 = vadd.f32 %v3857_v24, %v3856_v47  ;;  %v3787_v22 = vrot.slane %v3786_v29, 1  ;;  %v3677_v33 = vmul.f32 1.442695, %v8599_v42 }
 0x398   : > { %v8606_v60 = vmul.f32 0.125, %v3776_v53  ;;  %v3805_v24 = vrot.slane %v3804_v61, 1  ;;  %v3635_v3 = vadd.f32 %v3634_v44, %v3616_v56  ;;  %vm3671_vm5 = vcmp.gt.f32.partialorder %v8590_v30, 0.0 }
 0x399   : > { %6530 = vrsqrt.f32 %v8553_v59  ;;  %v3859_v48 = vrot.slane %v3858_v25, 1  ;;  %v3788_v0 = vadd.f32 %v3787_v22, %v3786_v29  ;;  %vm3663_vm6 = vcmp.gt.f32.partialorder %v8599_v42, 0.0 }
 0x39a   : > { %6532 = vrsqrt.f32 %v8560_v32  ;;  %v3931_v12 = vmul.f32 %v8606_v60, %v8606_v60  ;;  %vm3991_vm3 = vweird.f32 %v8553_v59  ;;  %vm3981_vm12 = vweird.f32 %v8560_v32 }
 0x39b   : > { %6534 = vpow2.f32 %v3687_v15  ;;  %v3860_v31 = vadd.f32 %v3859_v48, %v3858_v25  ;;  %v3637_v57 = vpop.f32.mrf.mxu3  ;;  %v3620_v25 = vpop.f32.mrf.mxu2  ;;  %v8622_v16 = vmul.f32 0.125, %v3788_v0  ;;  %vm4011_vm13 = vweird.f32 %v8604_v40 }
 0x39c   : > { %6536 = vpow2.f32 %v3693_v55  ;;  %v3638_v38 = vadd.f32 %v3637_v57, %v3619_v35 }
 0x39d   : > { %6538 = vpow2.f32 %v3677_v33  ;;  %v3919_v23 = vmul.f32 0.125, %v3860_v31  ;;  %v3933_v33 = vmul.f32 %v8622_v16, %v8622_v16 }
 0x39e   : > { %6540 = vrsqrt.f32 %v8604_v40 }
 0x39f   : > { %v8578_v14 = vpop.eup %6530  ;;  %v3943_v53 = vsub.f32 %v3919_v23, %v3931_v12 }
 0x3a0   : > { %v8585_v5 = vpop.eup %6532  ;;  %v3986_v37 = vmul.f32 %v8578_v14, %v8553_v59  ;;  %vm3992_vm0 = vweird.f32 %v8578_v14 }
 0x3a1   : > { %v3976_v28 = vmul.f32 %v8585_v5, %v8560_v32  ;;  %v6535_v63 = vpop.eup %6534  ;;  %vm3982_vm10 = vweird.f32 %v8585_v5  ;;  %vm8769_vm1 = vmor %vm3991_vm3, %vm3992_vm0 }
 0x3a2   : > { %v3987_v49 = vmul.f32 %v8578_v14, %v3986_v37  ;;  %v5920_v4 = vadd.f32 -1.0, %v6535_v63  ;;  %v6537_v18 = vpop.eup %6536  ;;  %v8620_v63 = vadd.f32 %v3653_v7, %v3635_v3  ;;  %vm8789_vm2 = vmor %vm3981_vm12, %vm3982_vm10 }
 0x3a3   : > { %v3977_v9 = vmul.f32 %v8585_v5, %v3976_v28  ;;  %v5923_v39 = vadd.f32 -1.0, %v6537_v18  ;;  %v3806_v28 = vadd.f32 %v3805_v24, %v3804_v61  ;;  %v6539_v10 = vpop.eup %6538 }
 0x3a4   : > { %v3716_v46 = vmul.f32 1.6732632, %v5920_v4  ;;  %v8601_v13 = vmul.f32 0.5, %v3987_v49  ;;  %v3890_v49 = vadd.f32 %v3889_v27, %v3888_v41  ;;  %v3621_v4 = vadd.f32 %v3620_v25, %v8581_v50  ;;  %v8628_v36 = vpop.eup %6540 }
 0x3a5   : > { %v3978_v45 = vmul.f32 0.5, %v3977_v9  ;;  %v3719_v29 = vmul.f32 1.6732632, %v5923_v39  ;;  %v3683_v56 = vmul.f32 1.442695, %v8620_v63  ;;  %v8635_v22 = vmul.f32 0.125, %v3806_v28 }
 0x3a6   : > { %v3728_v47 = vsel %vm3668_vm4, %v8570_v21, %v3716_v46  ;;  %v3872_v21 = vadd.f32 %v3871_v43, %v3870_v11  ;;  %v3989_v37 = vsub.f32 1.5, %v8601_v13  ;;  %v5915_v46 = vadd.f32 -1.0, %v6539_v10  ;;  %v6238_v13 = vld [vmem:[#allocation17 + $0x20] sm:$0xff] }
 0x3a7   : > { %v8610_v15 = vmul.f32 1.050701, %v3728_v47  ;;  %v3979_v17 = vsub.f32 1.5, %v3978_v45  ;;  %v3731_v48 = vsel %vm3671_vm5, %v8590_v30, %v3719_v29  ;;  %6542 = vpow2.f32 %v3683_v56  ;;  %v3639_v47 = vpop.f32.mrf.mxu3 }
 0x3a8   : > { %v3921_v26 = vmul.f32 0.125, %v3872_v21  ;;  %v8630_v41 = vmul.f32 1.050701, %v3731_v48  ;;  %v8637_v43 = vmul.f32 0.125, %v3890_v49  ;;  %v3955_v27 = vmax.f32 %v3943_v53, 0.0 }
 0x3a9   : > { %v3789_v2 = vrot.slane %v8610_v15, 4  ;;  %v3826_v54 = vmul.f32 %v8610_v15, %v8610_v15  ;;  %v8633_v35 = vmul.f32 %v8585_v5, %v3979_v17  ;;  %v3640_v45 = vadd.f32 %v3639_v47, %v3621_v4 }
 0x3aa   : > { %9310 = vst [vmem:[#allocation29_spill] sm:$0xff] %v8630_v41  ;;  %v3807_v50 = vrot.slane %v8630_v41, 4  ;;  %v3829_v57 = vmul.f32 %v8630_v41, %v8630_v41  ;;  %v3711_v24 = vmul.f32 1.6732632, %v5915_v46  ;;  %v4006_v12 = vmul.f32 %v8628_v36, %v8604_v40 }
 0x3ab   : > { %v3790_v44 = vadd.f32 %v3789_v2, %v8610_v15  ;;  %v3873_v8 = vrot.slane %v3826_v54, 4  ;;  %v3656_v2 = vpop.f32.mrf.mxu0  ;;  %v8655_v25 = vmul.f32 %v8635_v22, %v8635_v22  ;;  %vm3666_vm7 = vcmp.gt.f32.partialorder %v8620_v63, 0.0 }
 0x3ac   : > { %v3808_v18 = vadd.f32 %v3807_v50, %v8630_v41  ;;  %v3723_v21 = vsel %vm3663_vm6, %v8599_v42, %v3711_v24  ;;  %v8647_v23 = vadd.f32 %v3656_v2, %v3638_v38  ;;  %v3945_v42 = vsub.f32 %v3921_v26, %v3933_v33 }
 0x3ad   : > { %v3791_v11 = vrot.slane %v3790_v44, 2  ;;  %v3874_v55 = vadd.f32 %v3873_v8, %v3826_v54  ;;  %v3891_v54 = vrot.slane %v3829_v57, 4  ;;  %v6543_v7 = vpop.eup %6542  ;;  %v8657_v28 = vmul.f32 1.050701, %v3723_v21 }
 0x3ae   : > { %v3809_v8 = vrot.slane %v3808_v18, 2  ;;  %v3689_v29 = vmul.f32 1.442695, %v8647_v23  ;;  %v8660_v38 = vadd.f32 1e-05, %v3955_v27  ;;  %v5918_v4 = vadd.f32 -1.0, %v6543_v7 }
 0x3af   : > { %v3792_v9 = vadd.f32 %v3791_v11, %v3790_v44  ;;  %v3875_v61 = vrot.slane %v3874_v55, 2  ;;  %v3892_v17 = vadd.f32 %v3891_v54, %v3829_v57  ;;  %v3759_v53 = vrot.slane %v8657_v28, 4 }
 0x3b0   : > { %v3821_v48 = vmul.f32 %v8657_v28, %v8657_v28  ;;  %6544 = vpow2.f32 %v3689_v29  ;;  %v3957_v33 = vmax.f32 %v3945_v42, 0.0  ;;  %vm3669_vm14 = vcmp.gt.f32.partialorder %v8647_v23, 0.0 }
 0x3b1   : > { %v3793_v30 = vrot.slane %v3792_v9, 1  ;;  %v3876_v31 = vadd.f32 %v3875_v61, %v3874_v55  ;;  %v3810_v55 = vadd.f32 %v3809_v8, %v3808_v18  ;;  %v3893_v10 = vrot.slane %v3892_v17, 2 }
 0x3b2   : > { %v8668_v61 = vmul.f32 %v8628_v36, %v4006_v12  ;;  %v3760_v46 = vadd.f32 %v3759_v53, %v8657_v28  ;;  %6546 = vrsqrt.f32 %v8660_v38  ;;  %v3948_v8 = vsub.f32 %v8637_v43, %v8655_v25 }
 0x3b3   : > { %v3794_v3 = vadd.f32 %v3793_v30, %v3792_v9  ;;  %v3877_v0 = vrot.slane %v3876_v31, 1  ;;  %v3811_v9 = vrot.slane %v3810_v55, 1  ;;  %v3894_v26 = vadd.f32 %v3893_v10, %v3892_v17  ;;  %v3658_v47 = vpop.f32.mrf.mxu0 }
 0x3b4   : > { %v3843_v30 = vrot.slane %v3821_v48, 4  ;;  %v3761_v57 = vrot.slane %v3760_v46, 2  ;;  %v8678_v54 = vadd.f32 %v3658_v47, %v3640_v45  ;;  %v8687_v42 = vadd.f32 1e-05, %v3957_v33 }
 0x3b5   : > { %v3878_v39 = vadd.f32 %v3877_v0, %v3876_v31  ;;  %v8651_v44 = vmul.f32 0.125, %v3794_v3  ;;  %v3714_v31 = vmul.f32 1.6732632, %v5918_v4  ;;  %v3812_v50 = vadd.f32 %v3811_v9, %v3810_v55 }
 0x3b6   : > { %v3895_v27 = vrot.slane %v3894_v26, 1  ;;  %v3844_v24 = vadd.f32 %v3843_v30, %v3821_v48  ;;  %v3762_v12 = vadd.f32 %v3761_v57, %v3760_v46  ;;  %v6545_v7 = vpop.eup %6544  ;;  %v3695_v48 = vmul.f32 1.442695, %v8678_v54 }
 0x3b7   : > { %v3922_v49 = vmul.f32 0.125, %v3878_v39  ;;  %v3934_v11 = vmul.f32 %v8651_v44, %v8651_v44  ;;  %v3726_v3 = vsel %vm3666_vm7, %v8620_v63, %v3714_v31  ;;  %v8674_v18 = vmul.f32 0.125, %v3812_v50 }
 0x3b8   : > { %v8676_v2 = vmul.f32 1.050701, %v3726_v3  ;;  %v3896_v21 = vadd.f32 %v3895_v27, %v3894_v26  ;;  %v3845_v39 = vrot.slane %v3844_v24, 2  ;;  %v3763_v45 = vrot.slane %v3762_v12, 1  ;;  %v8689_v10 = vpop.eup %6546 }
 0x3b9   : > { %v3946_v56 = vsub.f32 %v3922_v49, %v3934_v11  ;;  %v3937_v17 = vmul.f32 %v8674_v18, %v8674_v18  ;;  %v5921_v55 = vadd.f32 -1.0, %v6545_v7  ;;  %6548 = vpow2.f32 %v3695_v48 }
 0x3ba   : > { %v3777_v29 = vrot.slane %v8676_v2, 4  ;;  %v3824_v63 = vmul.f32 %v8676_v2, %v8676_v2  ;;  %v3925_v49 = vmul.f32 0.125, %v3896_v21  ;;  %v3846_v11 = vadd.f32 %v3845_v39, %v3844_v24 }
 0x3bb   : > { %v3958_v0 = vmax.f32 %v3946_v56, 0.0  ;;  %v3764_v56 = vadd.f32 %v3763_v45, %v3762_v12  ;;  %v3717_v26 = vmul.f32 1.6732632, %v5921_v55  ;;  %v3960_v3 = vmax.f32 %v3948_v8, 0.0  ;;  %v6249_v8 = vld [vmem:[#allocation17 + $0x78] sm:$0xff] }
 0x3bc   : > { %v3778_v43 = vadd.f32 %v3777_v29, %v8676_v2  ;;  %v3861_v25 = vrot.slane %v3824_v63, 4  ;;  %v3949_v4 = vsub.f32 %v3925_v49, %v3937_v17  ;;  %v3847_v9 = vrot.slane %v3846_v11, 1  ;;  %v6241_v49 = vld [vmem:[#allocation17 + $0x38] sm:$0xff]  ;;  %4480 = vmatpush.bf16.msrb.mxu2 %v6249_v8  ;;  %v6247_v8 = vld [vmem:[#allocation17 + $0x68] sm:$0xff] }
 0x3bd   : > { %v8691_v53 = vadd.f32 1e-05, %v3958_v0  ;;  %v8696_v47 = vmul.f32 0.125, %v3764_v56  ;;  %v3729_v33 = vsel %vm3669_vm14, %v8647_v23, %v3717_v26  ;;  %v4016_v0 = vmul.f32 %v8689_v10, %v8660_v38  ;;  %v6257_v45 = vld [vmem:[#allocation17 + $0xb8] sm:$0xff]  ;;  %4461 = vmatpush.bf16.msrb.mxu1 %v6241_v49  ;;  %v6239_v49 = vld [vmem:[#allocation17 + $0x28] sm:$0xff] }
 0x3be   : > { %v3779_v46 = vrot.slane %v3778_v43, 2  ;;  %v3862_v30 = vadd.f32 %v3861_v25, %v3824_v63  ;;  %v3961_v31 = vmax.f32 %v3949_v4, 0.0  ;;  %v3848_v50 = vadd.f32 %v3847_v9, %v3846_v11  ;;  %4499 = vmatpush.bf16.msrb.mxu3 %v6257_v45 }
 0x3bf   : > { %v8699_v24 = vmul.f32 1.050701, %v3729_v33  ;;  %6550 = vrsqrt.f32 %v8691_v53  ;;  %v3929_v12 = vmul.f32 %v8696_v47, %v8696_v47  ;;  %v8712_v11 = vmul.f32 0.5, %v8668_v61  ;;  %v6549_v55 = vpop.eup %6548 }
 0x3c0   : > { %v3780_v27 = vadd.f32 %v3779_v46, %v3778_v43  ;;  %v3863_v57 = vrot.slane %v3862_v30, 2  ;;  %v3917_v21 = vmul.f32 0.125, %v3848_v50  ;;  %v8709_v29 = vadd.f32 1e-05, %v3961_v31  ;;  %v6248_v46 = vld [vmem:[#allocation17 + $0x70] sm:$0xff] }
 0x3c1   : > { %9311 = vst [vmem:[#allocation34_spill] sm:$0xff] %v8699_v24  ;;  %v3795_v17 = vrot.slane %v8699_v24, 4  ;;  %v3827_v23 = vmul.f32 %v8699_v24, %v8699_v24  ;;  %6552 = vrsqrt.f32 %v8687_v42  ;;  %v4017_v56 = vmul.f32 %v8689_v10, %v4016_v0  ;;  %4481 = vmatpush.bf16.msrb.mxu2 %v6248_v46 }
 0x3c2   : > { %v3781_v39 = vrot.slane %v3780_v27, 1  ;;  %v3864_v7 = vadd.f32 %v3863_v57, %v3862_v30  ;;  %v3941_v63 = vsub.f32 %v3917_v21, %v3929_v12  ;;  %v5924_v26 = vadd.f32 -1.0, %v6549_v55  ;;  %v6240_v30 = vld [vmem:[#allocation17 + $0x30] sm:$0xff] }
 0x3c3   : > { %v3796_v48 = vadd.f32 %v3795_v17, %v8699_v24  ;;  %v3879_v4 = vrot.slane %v3827_v23, 4  ;;  %v8719_v61 = vadd.f32 1e-05, %v3960_v3  ;;  %v6256_v57 = vld [vmem:[#allocation17 + $0xb0] sm:$0xff]  ;;  %6554 = vrsqrt.f32 %v8709_v29  ;;  %4462 = vmatpush.bf16.msrb.mxu1 %v6240_v30 }
 0x3c4   : > { %v3782_v43 = vadd.f32 %v3781_v39, %v3780_v27  ;;  %v3865_v25 = vrot.slane %v3864_v7, 1  ;;  %v3953_v9 = vmax.f32 %v3941_v63, 0.0  ;;  %vm3672_vm11 = vcmp.gt.f32.partialorder %v8678_v54, 0.0  ;;  %4500 = vmatpush.bf16.msrb.mxu3 %v6256_v57 }
 0x3c5   : > { %v3797_v33 = vrot.slane %v3796_v48, 2  ;;  %v3880_v27 = vadd.f32 %v3879_v4, %v3827_v23  ;;  %v8723_v21 = vpop.eup %6550  ;;  %v3720_v12 = vmul.f32 1.6732632, %v5924_v26  ;;  %v4009_v45 = vsub.f32 1.5, %v8712_v11  ;;  %v6255_v4 = vld [vmem:[#allocation17 + $0xa8] sm:$0xff]  ;;  %4482 = vmatpush.bf16.msrb.mxu2 %v6247_v8 }
 0x3c6   : > { %v3866_v31 = vadd.f32 %v3865_v25, %v3864_v7  ;;  %v8721_v50 = vmul.f32 0.125, %v3782_v43  ;;  %v8726_v0 = vadd.f32 1e-05, %v3953_v9  ;;  %vm4012_vm15 = vweird.f32 %v8628_v36 }
 0x3c7   : > { %v3798_v7 = vadd.f32 %v3797_v33, %v3796_v48  ;;  %v3881_v17 = vrot.slane %v3880_v27, 2  ;;  %v8733_v23 = vpop.eup %6552  ;;  %v3732_v63 = vsel %vm3672_vm11, %v8678_v54, %v3720_v12  ;;  %v8739_v55 = vmul.f32 0.5, %v4017_v56  ;;  %4463 = vmatpush.bf16.msrb.mxu1 %v6239_v49  ;;  %vm8802_vm5 = vmor %vm4011_vm13, %vm4012_vm15 }
 0x3c8   : > { %v3920_v3 = vmul.f32 0.125, %v3866_v31  ;;  %v3932_v39 = vmul.f32 %v8721_v50, %v8721_v50  ;;  %6556 = vrsqrt.f32 %v8726_v0  ;;  %v4046_v9 = vmul.f32 %v8723_v21, %v8691_v53  ;;  %4501 = vmatpush.bf16.msrb.mxu3 %v6255_v4 }
 0x3c9   : > { %v3799_v25 = vrot.slane %v3798_v7, 1  ;;  %v3882_v48 = vadd.f32 %v3881_v17, %v3880_v27  ;;  %v8743_v26 = vmul.f32 1.050701, %v3732_v63  ;;  %v3990_v54 = vmul.f32 %v8578_v14, %v3989_v37  ;;  %v8750_v30 = vpop.eup %6554  ;;  %v6246_v27 = vld [vmem:[#allocation17 + $0x60] sm:$0xff] }
 0x3ca   : > { %v3944_v43 = vsub.f32 %v3920_v3, %v3932_v39  ;;  %6558 = vrsqrt.f32 %v8719_v61  ;;  %v8756_v37 = vmul.f32 %v8628_v36, %v4009_v45  ;;  %v4036_v57 = vmul.f32 %v8733_v23, %v8687_v42  ;;  %v6254_v17 = vld [vmem:[#allocation17 + $0xa0] sm:$0xff]  ;;  %4483 = vmatpush.bf16.msrb.mxu2 %v6246_v27 }
 0x3cb   : > { %9312 = vst [vmem:[#allocation28_spill] sm:$0xff] %v8743_v26  ;;  %v3800_v46 = vadd.f32 %v3799_v25, %v3798_v7  ;;  %v3883_v56 = vrot.slane %v3882_v48, 1  ;;  %v3813_v31 = vrot.slane %v8743_v26, 4  ;;  %v3830_v33 = vmul.f32 %v8743_v26, %v8743_v26  ;;  %4464 = vmatpush.bf16.msrb.mxu1 %v6238_v13  ;;  %v6253_v13 = vld [vmem:[#allocation17 + $0x98] sm:$0xff] }
 0x3cc   : > { %v3956_v11 = vmax.f32 %v3944_v43, 0.0  ;;  %v4019_v12 = vsub.f32 1.5, %v8739_v55  ;;  %v3994_v55 = vsel %vm8769_vm1, %v8578_v14, %v3990_v54  ;;  %v4047_v43 = vmul.f32 %v8723_v21, %v4046_v9  ;;  %v6245_v54 = vld [vmem:[#allocation17 + $0x58] sm:$0xff]  ;;  %4502 = vmatpush.bf16.msrb.mxu3 %v6254_v17  ;;  %v6244_v17 = vld [vmem:[#allocation17 + $0x50] sm:$0xff] }
 0x3cd   : > { %v3884_v39 = vadd.f32 %v3883_v56, %v3882_v48  ;;  %v8763_v7 = vmul.f32 0.125, %v3800_v46  ;;  %v3814_v49 = vadd.f32 %v3813_v31, %v8743_v26  ;;  %v3897_v45 = vrot.slane %v3830_v33, 4 }
 0x3ce   : > { %v8761_v3 = vadd.f32 1e-05, %v3956_v11  ;;  %v8773_v8 = vpop.eup %6556  ;;  %vm4021_vm4 = vweird.f32 %v8660_v38  ;;  %v6237_v11 = vld [vmem:[#allocation17 + $0x18] sm:$0xff]  ;;  %v3984_v46 = vsel %vm8789_vm2, %v8585_v5, %v8633_v35  ;;  %v4076_v31 = vmul.f32 %v8750_v30, %v8709_v29  ;;  %4484 = vmatpush.bf16.msrb.mxu2 %v6245_v54 }
 0x3cf   : > { %v3996_v25 = vmul.f32 %v8773_v8, %v8726_v0  ;;  %v3923_v59 = vmul.f32 0.125, %v3884_v39  ;;  %v3935_v48 = vmul.f32 %v8763_v7, %v8763_v7  ;;  %v3815_v14 = vrot.slane %v3814_v49, 2  ;;  %4465 = vmatpush.bf16.msrb.mxu1 %v6237_v11 }
 0x3d0   : > { %6560 = vrsqrt.f32 %v8761_v3  ;;  %v3898_v9 = vadd.f32 %v3897_v45, %v3830_v33  ;;  %v8806_v56 = vpop.eup %6558  ;;  %v4014_v5 = vsel %vm8802_vm5, %v8628_v36, %v8756_v37  ;;  %v4107_v39 = vrot.slane %v3994_v55, 7  ;;  %4503 = vmatpush.bf16.msrb.mxu3 %v6253_v13 }
 0x3d1   : > { %v3997_v33 = vmul.f32 %v8773_v8, %v3996_v25  ;;  %v3947_v27 = vsub.f32 %v3923_v59, %v3935_v48  ;;  %v3816_v40 = vadd.f32 %v3815_v14, %v3814_v49  ;;  %v4037_v63 = vmul.f32 %v8733_v23, %v4036_v57  ;;  %v6236_v59 = vld [vmem:[#allocation17 + $0x10] sm:$0xff] }
 0x3d2   : > { %v3899_v35 = vrot.slane %v3898_v9, 2  ;;  %v4020_v26 = vmul.f32 %v8689_v10, %v4019_v12  ;;  %v4048_v24 = vmul.f32 0.5, %v4047_v43  ;;  %vm4022_vm6 = vweird.f32 %v8689_v10  ;;  %v6252_v57 = vld [vmem:[#allocation17 + $0x90] sm:$0xff]  ;;  %4485 = vmatpush.bf16.msrb.mxu2 %v6244_v17 }
 0x3d3   : > { %v3998_v45 = vmul.f32 0.5, %v3997_v33  ;;  %v3959_v4 = vmax.f32 %v3947_v27, 0.0  ;;  %v3817_v41 = vrot.slane %v3816_v40, 1  ;;  %v4066_v49 = vmul.f32 %v8806_v56, %v8719_v61  ;;  %vm8836_vm3 = vmor %vm4021_vm4, %vm4022_vm6  ;;  %4466 = vmatpush.bf16.msrb.mxu1 %v6236_v59 }
 0x3d4   : > { %v3900_v25 = vadd.f32 %v3899_v35, %v3898_v9  ;;  %vm4002_vm7 = vweird.f32 %v8773_v8  ;;  %v4077_v12 = vmul.f32 %v8750_v30, %v4076_v31  ;;  %v4115_v11 = vsel %vm1587_vm8, %v3984_v46, %v4107_v39  ;;  %v6243_v46 = vld [vmem:[#allocation17 + $0x48] sm:$0xff]  ;;  %4504 = vmatpush.bf16.msrb.mxu3 %v6252_v57 }
 0x3d5   : > { %v8822_v55 = vadd.f32 1e-05, %v3959_v4  ;;  %v3999_v14 = vsub.f32 1.5, %v3998_v45  ;;  %v3818_v9 = vadd.f32 %v3817_v41, %v3816_v40  ;;  %vm4001_vm14 = vweird.f32 %v8726_v0  ;;  %v6235_v35 = vld [vmem:[#allocation17 + $0x8] sm:$0xff] }
 0x3d6   : > { %v8820_v48 = vpop.eup %6560  ;;  %v3901_v54 = vrot.slane %v3900_v25, 1  ;;  %v4049_v31 = vsub.f32 1.5, %v4048_v24  ;;  %vm4003_vm10 = vmor %vm4001_vm14, %vm4002_vm7  ;;  %v4024_v38 = vsel %vm8836_vm3, %v8689_v10, %v4020_v26  ;;  %v6251_v0 = vld [vmem:[#allocation17 + $0x88] sm:$0xff]  ;;  %v4038_v39 = vmul.f32 0.5, %v4037_v63  ;;  %4486 = vmatpush.bf16.msrb.mxu2 %v6243_v46  ;;  %v6242_v63 = vld [vmem:[#allocation17 + $0x40] sm:$0xff] }
 0x3d7   : > { %v4026_v43 = vmul.f32 %v8820_v48, %v8761_v3  ;;  %6562 = vrsqrt.f32 %v8822_v55  ;;  %v4000_v33 = vmul.f32 %v8773_v8, %v3999_v14  ;;  %v8841_v40 = vmul.f32 0.125, %v3818_v9  ;;  %v8855_v14 = vld [vmem:[%s9152_s11] sm:$0x7]  ;;  %4467 = vmatpush.bf16.msrb.mxu1 %v6235_v35 }
 0x3d8   : > { %v3902_v13 = vadd.f32 %v3901_v54, %v3900_v25  ;;  %v4067_v45 = vmul.f32 %v8806_v56, %v4066_v49  ;;  %v4078_v4 = vmul.f32 0.5, %v4077_v12  ;;  %v4109_v10 = vrot.slane %v4024_v38, 7  ;;  %v6234_v49 = vld [vmem:[#allocation17] sm:$0xff]  ;;  %4505 = vmatpush.bf16.msrb.mxu3 %v6251_v0 }
 0x3d9   : > { %v4027_v41 = vmul.f32 %v8820_v48, %v4026_v43  ;;  %v4004_v24 = vsel %vm4003_vm10, %v8773_v8, %v4000_v33  ;;  %v3938_v59 = vmul.f32 %v8841_v40, %v8841_v40  ;;  %v4050_v26 = vmul.f32 %v8723_v21, %v4049_v31  ;;  %v6250_v54 = vld [vmem:[#allocation17 + $0x80] sm:$0xff] }
 0x3da   : > { %v3926_v17 = vmul.f32 0.125, %v3902_v13  ;;  %v4108_v43 = vrot.slane %v4004_v24, 6  ;;  %vm4051_vm11 = vweird.f32 %v8691_v53  ;;  %vm4052_vm12 = vweird.f32 %v8723_v21  ;;  %4487 = vmatpush.bf16.msrb.mxu2 %v6242_v63 }
 0x3db   : > { %v4028_v25 = vmul.f32 0.5, %v4027_v41  ;;  %vm4032_vm13 = vweird.f32 %v8820_v48  ;;  %vm4042_vm15 = vweird.f32 %v8733_v23  ;;  %vm4031_vm0 = vweird.f32 %v8761_v3  ;;  %vm8875_vm2 = vmor %vm4051_vm11, %vm4052_vm12  ;;  %4468 = vmatpush.bf16.msrb.mxu1 %v6234_v49 }
 0x3dc   : > { %v3950_v8 = vsub.f32 %v3926_v17, %v3938_v59  ;;  %v4116_v12 = vsel %vm1589_vm9, %v4115_v11, %v4108_v43  ;;  %v4039_v27 = vsub.f32 1.5, %v4038_v39  ;;  %v4079_v31 = vsub.f32 1.5, %v4078_v4  ;;  %vm4033_vm4 = vmor %vm4031_vm0, %vm4032_vm13  ;;  %4506 = vmatpush.bf16.msrb.mxu3 %v6250_v54 }
 0x3dd   : > { %v4029_v57 = vsub.f32 1.5, %v4028_v25  ;;  %v8863_v9 = vpop.eup %6562  ;;  %v8867_v33 = vmul.f32 %v4116_v12, %v8855_v14  ;;  %vm4041_vm1 = vweird.f32 %v8687_v42  ;;  %v4068_v46 = vmul.f32 0.5, %v4067_v45 }
 0x3de   : > { %v3962_v41 = vmax.f32 %v3950_v8, 0.0  ;;  %v4056_v3 = vmul.f32 %v8863_v9, %v8822_v55  ;;  %v4054_v53 = vsel %vm8875_vm2, %v8723_v21, %v4050_v26  ;;  %vm4082_vm6 = vweird.f32 %v8750_v30  ;;  %v8907_v8 = vld [vmem:[#allocation16] sm:$0x7]  ;;  %vm4043_vm3 = vmor %vm4041_vm1, %vm4042_vm15 }
 0x3df   : > { %v4030_v13 = vmul.f32 %v8820_v48, %v4029_v57  ;;  %v4135_v35 = vperm.slane %v8867_v33, 0  ;;  %v4136_v38 = vperm.slane %v8867_v33, 1  ;;  %v4137_v0 = vperm.slane %v8867_v33, 2 }
 0x3e0   : > { %v8889_v24 = vadd.f32 1e-05, %v3962_v41  ;;  %v4057_v45 = vmul.f32 %v8863_v9, %v4056_v3  ;;  %v4080_v59 = vmul.f32 %v8750_v30, %v4079_v31  ;;  %v4117_v21 = vsel %vm1587_vm8, %v4014_v5, %v4109_v10 }
 0x3e1   : > { %v4034_v39 = vsel %vm4033_vm4, %v8820_v48, %v4030_v13  ;;  %v4160_v25 = vmul.f32 %v4136_v38, %v8536_v58  ;;  %v4161_v17 = vmul.f32 %v4137_v0, %v8696_v47  ;;  %v4159_v48 = vmul.f32 %v4135_v35, %v8539_v1 }
 0x3e2   : > { %v4110_v4 = vrot.slane %v4034_v39, 6  ;;  %6564 = vrsqrt.f32 %v8889_v24  ;;  %vm4081_vm7 = vweird.f32 %v8709_v29  ;;  %v4058_v47 = vmul.f32 0.5, %v4057_v45 }
 0x3e3   : > { %v4183_v58 = vrot.slane %v4160_v25, 7  ;;  %v4184_v26 = vrot.slane %v4161_v17, 6  ;;  %v4040_v32 = vmul.f32 %v8733_v23, %v4039_v27  ;;  %v4069_v49 = vsub.f32 1.5, %v4068_v46  ;;  %vm8913_vm5 = vmor %vm4081_vm7, %vm4082_vm6 }
 0x3e4   : > { %v4118_v43 = vsel %vm1589_vm9, %v4117_v21, %v4110_v4  ;;  %v4111_v1 = vrot.slane %v4054_v53, 7  ;;  %v4059_v37 = vsub.f32 1.5, %v4058_v47  ;;  %vm4062_vm14 = vweird.f32 %v8863_v9 }
 0x3e5   : > { %v4128_v63 = vmul.f32 %v4118_v43, %v8855_v14  ;;  %v4191_v29 = vsel %vm1587_vm8, %v4159_v48, %v4183_v58  ;;  %v4084_v5 = vsel %vm8913_vm5, %v8750_v30, %v4080_v59  ;;  %v4044_v30 = vsel %vm4043_vm3, %v8733_v23, %v4040_v32 }
 0x3e6   : > { %v4192_v54 = vsel %vm1589_vm9, %v4191_v29, %v4184_v26  ;;  %v4060_v27 = vmul.f32 %v8863_v9, %v4059_v37  ;;  %vm4061_vm10 = vweird.f32 %v8822_v55  ;;  %v4070_v3 = vmul.f32 %v8806_v56, %v4069_v49 }
 0x3e7   : > { %v4138_v10 = vperm.slane %v4128_v63, 0  ;;  %v4139_v57 = vperm.slane %v4128_v63, 1  ;;  %v4140_v12 = vperm.slane %v4128_v63, 2  ;;  %v4203_v33 = vsub.f32 %v8907_v8, %v4192_v54  ;;  %vm8933_vm11 = vmor %vm4061_vm10, %vm4062_vm14 }
 0x3e8   : > { %v6565_v31 = vpop.eup %6564  ;;  %v4113_v46 = vrot.slane %v4084_v5, 7  ;;  %v4119_v42 = vsel %vm1587_vm8, %v4044_v30, %v4111_v1  ;;  %vm4072_vm12 = vweird.f32 %v8806_v56  ;;  %v4208_v17 = vmul.f32 %v4136_v38, %v8524_v6 }
 0x3e9   : > { %v4163_v41 = vmul.f32 %v4139_v57, %v8606_v60  ;;  %v4164_v13 = vmul.f32 %v4140_v12, %v8721_v50  ;;  %v4162_v53 = vmul.f32 %v4138_v10, %v8567_v20  ;;  %v4064_v60 = vsel %vm8933_vm11, %v8863_v9, %v4060_v27 }
 0x3ea   : > { %v4207_v50 = vmul.f32 %v4135_v35, %v8510_v34  ;;  %v4223_v23 = vperm.slane %v4203_v33, 0  ;;  %v4224_v55 = vperm.slane %v4203_v33, 1  ;;  %v4086_v4 = vmul.f32 %v6565_v31, %v8889_v24 }
 0x3eb   : > { %v4185_v39 = vrot.slane %v4163_v41, 7  ;;  %v4186_v45 = vrot.slane %v4164_v13, 6  ;;  %v4209_v20 = vmul.f32 %v4137_v0, %v8657_v28  ;;  %v4112_v59 = vrot.slane %v4064_v60, 6 }
 0x3ec   : > { %v4210_v48 = vmul.f32 %v4138_v10, %v8522_v52  ;;  %v4225_v9 = vperm.slane %v4203_v33, 2  ;;  %v4087_v43 = vmul.f32 %v6565_v31, %v4086_v4  ;;  %v4211_v34 = vmul.f32 %v4139_v57, %v8558_v19 }
 0x3ed   : > { %v4193_v25 = vsel %vm1587_vm8, %v4162_v53, %v4185_v39  ;;  %v4212_v35 = vmul.f32 %v4140_v12, %v8676_v2  ;;  %v4120_v26 = vsel %vm1589_vm9, %v4119_v42, %v4112_v59  ;;  %v4247_v47 = vadd.f32 %v4223_v23, %v4207_v50  ;;  %v9327_v59 = vld [vmem:[#allocation29_spill] sm:$0xff] }
 0x3ee   : > { %v4194_v21 = vsel %vm1589_vm9, %v4193_v25, %v4186_v45  ;;  %v4248_v63 = vadd.f32 %v4224_v55, %v4208_v17  ;;  %v4088_v6 = vmul.f32 0.5, %v4087_v43  ;;  %v4129_v28 = vmul.f32 %v4120_v26, %v8855_v14 }
 0x3ef   : > { %v4204_v58 = vsub.f32 %v8907_v8, %v4194_v21  ;;  %vm4092_vm13 = vweird.f32 %v6565_v31  ;;  %v4249_v52 = vadd.f32 %v4225_v9, %v4209_v20  ;;  %vm4091_vm15 = vweird.f32 %v8889_v24 }
 0x3f0   : > { %v4089_v49 = vsub.f32 1.5, %v4088_v6  ;;  %v4142_v36 = vperm.slane %v4129_v28, 1  ;;  %v4143_v1 = vperm.slane %v4129_v28, 2  ;;  %v4141_v5 = vperm.slane %v4129_v28, 0  ;;  %vm4093_vm1 = vmor %vm4091_vm15, %vm4092_vm13 }
 0x3f1   : > { %v4226_v38 = vperm.slane %v4204_v58, 0  ;;  %v4227_v0 = vperm.slane %v4204_v58, 1  ;;  %v4228_v32 = vperm.slane %v4204_v58, 2  ;;  %vm4071_vm0 = vweird.f32 %v8719_v61  ;;  %v9329_v58 = vld [vmem:[#allocation28_spill] sm:$0xff] }
 0x3f2   : > { %v4090_v2 = vmul.f32 %v6565_v31, %v4089_v49  ;;  %v4166_v10 = vmul.f32 %v4142_v36, %v8651_v44  ;;  %v4167_v57 = vmul.f32 %v4143_v1, %v8763_v7  ;;  %vm4073_vm2 = vmor %vm4071_vm0, %vm4072_vm12  ;;  %v4165_v44 = vmul.f32 %v4141_v5, %v8622_v16 }
 0x3f3   : > { %v4250_v29 = vadd.f32 %v4226_v38, %v4210_v48  ;;  %v4251_v37 = vadd.f32 %v4227_v0, %v4211_v34  ;;  %v4252_v19 = vadd.f32 %v4228_v32, %v4212_v35  ;;  %v4074_v24 = vsel %vm4073_vm2, %v8806_v56, %v4070_v3 }
 0x3f4   : > { %v4094_v27 = vsel %vm4093_vm1, %v6565_v31, %v4090_v2  ;;  %v4187_v41 = vrot.slane %v4166_v10, 7  ;;  %v4121_v7 = vsel %vm1587_vm8, %v4074_v24, %v4113_v46  ;;  %v4188_v30 = vrot.slane %v4167_v57, 6 }
 0x3f5   : > { %v4259_v12 = vpack.c.bf16 %v4250_v29, %v4247_v47  ;;  %v4260_v54 = vpack.c.bf16 %v4251_v37, %v4248_v63  ;;  %v4261_v33 = vpack.c.bf16 %v4252_v19, %v4249_v52  ;;  %v4114_v13 = vrot.slane %v4094_v27, 6 }
 0x3f6   : > { %v4195_v11 = vsel %vm1587_vm8, %v4165_v44, %v4187_v41  ;;  %v4213_v17 = vmul.f32 %v4141_v5, %v8547_v51 }
 0x3f7   : > { %4469 = vmatmul.bf16.vlgmr.msrb.gmra.mxu1 %v4259_v12  ;;  %4488 = vmatmul.bf16.vlgmr.msrb.gmra.mxu2 %v4260_v54  ;;  %v4122_v61 = vsel %vm1589_vm9, %v4121_v7, %v4114_v13  ;;  %v4196_v45 = vsel %vm1589_vm9, %v4195_v11, %v4188_v30 }
 0x3f8   : > { %4507 = vmatmul.bf16.vlgmr.msrb.gmra.mxu3 %v4261_v33  ;;  %v4130_v42 = vmul.f32 %v4122_v61, %v8855_v14  ;;  %v4205_v16 = vsub.f32 %v8907_v8, %v4196_v45 }
 0x3fa   : > { %v4144_v53 = vperm.slane %v4130_v42, 0  ;;  %v4145_v31 = vperm.slane %v4130_v42, 1  ;;  %v4146_v39 = vperm.slane %v4130_v42, 2  ;;  %v4229_v14 = vperm.slane %v4205_v16, 0 }
 0x3fb   : > { %v4230_v4 = vperm.slane %v4205_v16, 1  ;;  %v4231_v20 = vperm.slane %v4205_v16, 2 }
 0x3fc   : > { %v4169_v56 = vmul.f32 %v4145_v31, %v8674_v18  ;;  %v4170_v3 = vmul.f32 %v4146_v39, %v8841_v40  ;;  %v4168_v46 = vmul.f32 %v4144_v53, %v8635_v22  ;;  %v4216_v18 = vmul.f32 %v4144_v53, %v8549_v62  ;;  %v9328_v22 = vld [vmem:[#allocation34_spill] sm:$0xff] }
 0x3fd   : > { %v4214_v40 = vmul.f32 %v4142_v36, %v8610_v15  ;;  %v4217_v21 = vmul.f32 %v4145_v31, %v9327_v59  ;;  %v4215_v48 = vmul.f32 %v4143_v1, %v9328_v22  ;;  %v4218_v34 = vmul.f32 %v4146_v39, %v9329_v58  ;;  %v6418_v15 = vld [vmem:[%s9155_s14] ss:$0 sm:$0xff] }
 0x3fe   : > { %v4189_v60 = vrot.slane %v4169_v56, 7  ;;  %v4190_v50 = vrot.slane %v4170_v3, 6  ;;  %v4253_v26 = vadd.f32 %v4229_v14, %v4213_v17 }
 0x3ff   : > { %v4254_v47 = vadd.f32 %v4230_v4, %v4214_v40  ;;  %v4255_v6 = vadd.f32 %v4231_v20, %v4215_v48 }
 0x400   : > { %v4197_v23 = vsel %vm1587_vm8, %v4168_v46, %v4189_v60 }
 0x401   : > { %v4198_v55 = vsel %vm1589_vm9, %v4197_v23, %v4190_v50 }
 0x402   : > { %v4206_v25 = vsub.f32 %v8907_v8, %v4198_v55 }
 0x404   : > { %v4232_v9 = vperm.slane %v4206_v25, 0  ;;  %v4233_v43 = vperm.slane %v4206_v25, 1  ;;  %v4234_v35 = vperm.slane %v4206_v25, 2 }
 0x406   : > { %v4256_v63 = vadd.f32 %v4232_v9, %v4216_v18  ;;  %v4257_v8 = vadd.f32 %v4233_v43, %v4217_v21  ;;  %v4258_v51 = vadd.f32 %v4234_v35, %v4218_v34 }
 0x408   : > { %v4262_v28 = vpack.c.bf16 %v4256_v63, %v4253_v26  ;;  %v4263_v38 = vpack.c.bf16 %v4257_v8, %v4254_v47  ;;  %v4264_v62 = vpack.c.bf16 %v4258_v51, %v4255_v6 }
 0x40a   : > { %4474 = vmatmul.bf16.gmra.mxu1 %v4262_v28  ;;  %4493 = vmatmul.bf16.gmra.mxu2 %v4263_v38 }
 0x40b   : > { %4512 = vmatmul.bf16.gmra.mxu3 %v4264_v62 }
 0x474   : > { %v4470_v0 = vpop.f32.mrf.mxu1 }
 0x475   : > { %v4471_v32 = vadd.f32 %v6418_v15, %v4470_v0 }
 0x47a   : > { %v4489_v52 = vpop.f32.mrf.mxu2 }
 0x47b   : > { %v4490_v49 = vadd.f32 %v4489_v52, %v4471_v32  ;;  %v4508_v36 = vpop.f32.mrf.mxu3 }
 0x47c   : > { %v4472_v37 = vpop.f32.mrf.mxu1 }
 0x47d   : > { %v4509_v1 = vadd.f32 %v4508_v36, %v4490_v49  ;;  %v4473_v5 = vadd.f32 %v6418_v15, %v4472_v37 }
 0x47f   : > { %v4522_v29 = vmul.f32 1.442695, %v4509_v1  ;;  %vm4518_vm8 = vcmp.gt.f32.partialorder %v4509_v1, 0.0 }
 0x481   : > { %6566 = vpow2.f32 %v4522_v29 }
 0x482   : > { %v4491_v10 = vpop.f32.mrf.mxu2 }
 0x483   : > { %v4510_v57 = vpop.f32.mrf.mxu3  ;;  %v4492_v12 = vadd.f32 %v4491_v10, %v4473_v5 }
 0x485   : > { %v4511_v27 = vadd.f32 %v4510_v57, %v4492_v12 }
 0x487   : > { %v6567_v19 = vpop.eup %6566  ;;  %v4475_v33 = vpop.f32.mrf.mxu1  ;;  %v4524_v13 = vmul.f32 1.442695, %v4511_v27  ;;  %vm4519_vm9 = vcmp.gt.f32.partialorder %v4511_v27, 0.0 }
 0x488   : > { %v6021_v2 = vadd.f32 -1.0, %v6567_v19  ;;  %v4476_v30 = vadd.f32 %v6418_v15, %v4475_v33 }
 0x489   : > { %6568 = vpow2.f32 %v4524_v13 }
 0x48a   : > { %v4534_v54 = vmul.f32 1.6732632, %v6021_v2 }
 0x48c   : > { %v4538_v41 = vsel %vm4518_vm8, %v4509_v1, %v4534_v54 }
 0x48d   : > { %v8986_v24 = vmul.f32 1.050701, %v4538_v41  ;;  %v4494_v61 = vpop.f32.mrf.mxu2 }
 0x48e   : > { %v4513_v11 = vpop.f32.mrf.mxu3  ;;  %v4495_v31 = vadd.f32 %v4494_v61, %v4476_v30 }
 0x48f   : > { %v4548_v44 = vrot.slane %v8986_v24, 4  ;;  %v4572_v7 = vmul.f32 %v8986_v24, %v8986_v24  ;;  %v4477_v3 = vpop.f32.mrf.mxu1  ;;  %v6569_v16 = vpop.eup %6568 }
 0x490   : > { %v4514_v56 = vadd.f32 %v4513_v11, %v4495_v31  ;;  %v6022_v23 = vadd.f32 -1.0, %v6569_v16  ;;  %v4478_v4 = vadd.f32 %v6418_v15, %v4477_v3 }
 0x491   : > { %v4549_v42 = vadd.f32 %v4548_v44, %v8986_v24  ;;  %v4576_v53 = vrot.slane %v4572_v7, 4 }
 0x492   : > { %v4526_v50 = vmul.f32 1.442695, %v4514_v56  ;;  %v4535_v25 = vmul.f32 1.6732632, %v6022_v23  ;;  %vm4520_vm4 = vcmp.gt.f32.partialorder %v4514_v56, 0.0 }
 0x493   : > { %v4550_v39 = vrot.slane %v4549_v42, 2  ;;  %v4577_v45 = vadd.f32 %v4576_v53, %v4572_v7 }
 0x494   : > { %6570 = vpow2.f32 %v4526_v50  ;;  %v4539_v59 = vsel %vm4519_vm9, %v4511_v27, %v4535_v25  ;;  %v6265_v25 = vld [vmem:[#allocation19 + $0x38] sm:$0xff] }
 0x495   : > { %v4551_v46 = vadd.f32 %v4550_v39, %v4549_v42  ;;  %v4578_v60 = vrot.slane %v4577_v45, 2  ;;  %v4496_v17 = vpop.f32.mrf.mxu2  ;;  %v8994_v9 = vmul.f32 1.050701, %v4539_v59  ;;  %4778 = vmatpush.bf16.msra.mxu0 %v6265_v25  ;;  %6266 = vmatpush.bf16.msra.mxu1 %v6265_v25  ;;  %v6258_v25 = vld [vmem:[#allocation19] sm:$0xff] }
 0x496   : > { %v4497_v40 = vadd.f32 %v4496_v17, %v4478_v4  ;;  %v4515_v21 = vpop.f32.mrf.mxu3 }
 0x497   : > { %v4552_v55 = vrot.slane %v4551_v46, 1  ;;  %v4579_v14 = vadd.f32 %v4578_v60, %v4577_v45  ;;  %v4554_v26 = vrot.slane %v8994_v9, 4  ;;  %v4573_v47 = vmul.f32 %v8994_v9, %v8994_v9 }
 0x498   : > { %v4516_v43 = vadd.f32 %v4515_v21, %v4497_v40 }
 0x499   : > { %v4553_v20 = vadd.f32 %v4552_v55, %v4551_v46  ;;  %v4580_v18 = vrot.slane %v4579_v14, 1  ;;  %v4555_v51 = vadd.f32 %v4554_v26, %v8994_v9  ;;  %v4582_v28 = vrot.slane %v4573_v47, 4 }
 0x49a   : > { %v6571_v58 = vpop.eup %6570  ;;  %v4528_v8 = vmul.f32 1.442695, %v4516_v43  ;;  %vm4521_vm6 = vcmp.gt.f32.partialorder %v4516_v43, 0.0 }
 0x49b   : > { %v4581_v22 = vadd.f32 %v4580_v18, %v4579_v14  ;;  %v8992_v48 = vmul.f32 0.125, %v4553_v20  ;;  %v6023_v63 = vadd.f32 -1.0, %v6571_v58  ;;  %v4556_v15 = vrot.slane %v4555_v51, 2 }
 0x49c   : > { %6572 = vpow2.f32 %v4528_v8  ;;  %v4583_v0 = vadd.f32 %v4582_v28, %v4573_v47 }
 0x49d   : > { %v4604_v34 = vmul.f32 0.125, %v4581_v22  ;;  %v4608_v35 = vmul.f32 %v8992_v48, %v8992_v48  ;;  %v4536_v38 = vmul.f32 1.6732632, %v6023_v63  ;;  %v4557_v49 = vadd.f32 %v4556_v15, %v4555_v51 }
 0x49e   : > { %v4584_v36 = vrot.slane %v4583_v0, 2 }
 0x49f   : > { %v4612_v6 = vsub.f32 %v4604_v34, %v4608_v35  ;;  %v4540_v32 = vsel %vm4520_vm4, %v4514_v56, %v4536_v38  ;;  %v4558_v29 = vrot.slane %v4557_v49, 1  ;;  %v6264_v35 = vld [vmem:[#allocation19 + $0x30] sm:$0xff]  ;;  %v6263_v38 = vld [vmem:[#allocation19 + $0x28] sm:$0xff] }
 0x4a0   : > { %v9004_v1 = vmul.f32 1.050701, %v4540_v32  ;;  %v4585_v37 = vadd.f32 %v4584_v36, %v4583_v0  ;;  %4779 = vmatpush.bf16.msra.mxu0 %v6264_v35  ;;  %6267 = vmatpush.bf16.msra.mxu1 %v6264_v35  ;;  %v9030_v32 = vld [vmem:[%s9330_s27] sm:$0x1]  ;;  %s5207_s27 = sshll.u32 %s9336_s0, 2 }
 0x4a1   : > { %v4616_v62 = vmax.f32 %v4612_v6, 0.0  ;;  %v4559_v10 = vadd.f32 %v4558_v29, %v4557_v49  ;;  %p887_p1 = scmp.lt.s32.totalorder %s5207_s27, 7 }
 0x4a2   : > { %v6573_v19 = vpop.eup %6572  ;;  %v4560_v5 = vrot.slane %v9004_v1, 4  ;;  %v4574_v2 = vmul.f32 %v9004_v1, %v9004_v1  ;;  %v4586_v57 = vrot.slane %v4585_v37, 1 }
 0x4a3   : > { %v9002_v52 = vadd.f32 1e-05, %v4616_v62  ;;  %v6024_v12 = vadd.f32 -1.0, %v6573_v19  ;;  %v9011_v41 = vmul.f32 0.125, %v4559_v10  ;;  %s9343_s27 = smov (!%p887_p1, %s5207_s27), 7 }
 0x4a4   : > { %v4561_v54 = vadd.f32 %v4560_v5, %v9004_v1  ;;  %v4588_v33 = vrot.slane %v4574_v2, 4  ;;  %v4587_v27 = vadd.f32 %v4586_v57, %v4585_v37  ;;  %4780 = vmatpush.bf16.msra.mxu0 %v6263_v38  ;;  %6268 = vmatpush.bf16.msra.mxu1 %v6263_v38  ;;  %s5208_s15 = sshll.u32 %s9343_s27, 3 }
 0x4a5   : > { %6574 = vrsqrt.f32 %v9002_v52  ;;  %v4537_v13 = vmul.f32 1.6732632, %v6024_v12  ;;  %v4609_v11 = vmul.f32 %v9011_v41, %v9011_v41  ;;  %vm4630_vm5 = vweird.f32 %v9002_v52  ;;  %s890_s23 = scalar_lea.vmem %s9337_s28, %s5208_s15 }
 0x4a6   : > { %v4562_v44 = vrot.slane %v4561_v54, 2  ;;  %v4589_v7 = vadd.f32 %v4588_v33, %v4574_v2  ;;  %v4605_v61 = vmul.f32 0.125, %v4587_v27 }
 0x4a7   : > { %v4541_v42 = vsel %vm4521_vm6, %v4516_v43, %v4537_v13 }
 0x4a8   : > { %v4563_v31 = vadd.f32 %v4562_v44, %v4561_v54  ;;  %v4590_v39 = vrot.slane %v4589_v7, 2  ;;  %v4613_v45 = vsub.f32 %v4605_v61, %v4609_v11  ;;  %v9016_v56 = vmul.f32 1.050701, %v4541_v42  ;;  %v6261_v54 = vld [vmem:[#allocation19 + $0x18] sm:$0xff]  ;;  %v6260_v61 = vld [vmem:[#allocation19 + $0x10] sm:$0xff] }
 0x4a9   : > { %v4547_v11 = vld [vmem:[%s9331_s7] sm:$0x1] }
 0x4aa   : > { %v4564_v16 = vrot.slane %v4563_v31, 1  ;;  %v4591_v46 = vadd.f32 %v4590_v39, %v4589_v7  ;;  %v4617_v60 = vmax.f32 %v4613_v45, 0.0  ;;  %v4566_v50 = vrot.slane %v9016_v56, 4 }
 0x4ab   : > { %v6575_v30 = vpop.eup %6574  ;;  %v4575_v23 = vmul.f32 %v9016_v56, %v9016_v56 }
 0x4ac   : > { %v4625_v53 = vmul.f32 %v6575_v30, %v9002_v52  ;;  %v4565_v14 = vadd.f32 %v4564_v16, %v4563_v31  ;;  %v4592_v4 = vrot.slane %v4591_v46, 1  ;;  %v4621_v17 = vadd.f32 1e-05, %v4617_v60  ;;  %v6262_v52 = vld [vmem:[#allocation19 + $0x20] sm:$0xff]  ;;  %v6259_v16 = vld [vmem:[#allocation19 + $0x8] sm:$0xff] }
 0x4ad   : > { %v4567_v20 = vadd.f32 %v4566_v50, %v9016_v56  ;;  %v4594_v18 = vrot.slane %v4575_v23, 4  ;;  %vm4631_vm7 = vweird.f32 %v6575_v30  ;;  %4781 = vmatpush.bf16.msra.mxu0 %v6262_v52  ;;  %6269 = vmatpush.bf16.msra.mxu1 %v6262_v52 }
 0x4ae   : > { %v4626_v3 = vmul.f32 %v6575_v30, %v4625_v53  ;;  %v4593_v59 = vadd.f32 %v4592_v4, %v4591_v46  ;;  %v9022_v21 = vmul.f32 0.125, %v4565_v14  ;;  %6576 = vrsqrt.f32 %v4621_v17  ;;  %vm4632_vm14 = vmor %vm4630_vm5, %vm4631_vm7 }
 0x4af   : > { %v4568_v22 = vrot.slane %v4567_v20, 2  ;;  %v4595_v43 = vadd.f32 %v4594_v18, %v4575_v23  ;;  %vm4640_vm10 = vweird.f32 %v4621_v17 }
 0x4b0   : > { %v4627_v55 = vmul.f32 0.5, %v4626_v3  ;;  %v4606_v58 = vmul.f32 0.125, %v4593_v59  ;;  %v4610_v34 = vmul.f32 %v9022_v21, %v9022_v21 }
 0x4b1   : > { %v4569_v26 = vadd.f32 %v4568_v22, %v4567_v20  ;;  %v4596_v47 = vrot.slane %v4595_v43, 2  ;;  %4782 = vmatpush.bf16.msra.mxu0 %v6261_v54  ;;  %6270 = vmatpush.bf16.msra.mxu1 %v6261_v54 }
 0x4b2   : > { %v4628_v40 = vsub.f32 1.5, %v4627_v55  ;;  %v4614_v8 = vsub.f32 %v4606_v58, %v4610_v34 }
 0x4b3   : > { %v4570_v6 = vrot.slane %v4569_v26, 1  ;;  %v4597_v51 = vadd.f32 %v4596_v47, %v4595_v43 }
 0x4b4   : > { %v4629_v63 = vmul.f32 %v6575_v30, %v4628_v40  ;;  %v4618_v28 = vmax.f32 %v4614_v8, 0.0  ;;  %v6577_v62 = vpop.eup %6576 }
 0x4b5   : > { %v4571_v15 = vadd.f32 %v4570_v6, %v4569_v26  ;;  %v4598_v0 = vrot.slane %v4597_v51, 1  ;;  %v4635_v36 = vmul.f32 %v6577_v62, %v4621_v17  ;;  %vm4641_vm3 = vweird.f32 %v6577_v62  ;;  %4783 = vmatpush.bf16.msra.mxu0 %v6260_v61  ;;  %6271 = vmatpush.bf16.msra.mxu1 %v6260_v61 }
 0x4b6   : > { %v4633_v49 = vsel %vm4632_vm14, %v6575_v30, %v4629_v63  ;;  %v4622_v29 = vadd.f32 1e-05, %v4618_v28  ;;  %vm4642_vm11 = vmor %vm4640_vm10, %vm4641_vm3 }
 0x4b7   : > { %v4599_v37 = vadd.f32 %v4598_v0, %v4597_v51  ;;  %v9032_v19 = vmul.f32 0.125, %v4571_v15  ;;  %v4636_v5 = vmul.f32 %v6577_v62, %v4635_v36  ;;  %v4664_v2 = vmul.f32 %v4633_v49, %v9030_v32 }
 0x4b8   : > { %6578 = vrsqrt.f32 %v4622_v29  ;;  %vm4650_vm13 = vweird.f32 %v4622_v29 }
 0x4b9   : > { %v4607_v10 = vmul.f32 0.125, %v4599_v37  ;;  %v4611_v57 = vmul.f32 %v9032_v19, %v9032_v19  ;;  %v4637_v12 = vmul.f32 0.5, %v4636_v5  ;;  %v4668_v44 = vmul.f32 %v4664_v2, %v8992_v48  ;;  %4784 = vmatpush.bf16.msra.mxu0 %v6259_v16  ;;  %6272 = vmatpush.bf16.msra.mxu1 %v6259_v16 }
 0x4ba   : > { %v4680_v48 = vperm.slane %v4664_v2, 0 }
 0x4bb   : > { %v4615_v33 = vsub.f32 %v4607_v10, %v4611_v57  ;;  %v4638_v27 = vsub.f32 1.5, %v4637_v12  ;;  %v4672_v3 = vsub.f32 %v4547_v11, %v4668_v44 }
 0x4bc   : > { %v4688_v4 = vmul.f32 %v4680_v48, %v8986_v24 }
 0x4bd   : > { %v4619_v13 = vmax.f32 %v4615_v33, 0.0  ;;  %v4639_v30 = vmul.f32 %v6577_v62, %v4638_v27  ;;  %v4696_v14 = vperm.slane %v4672_v3, 0  ;;  %4785 = vmatpush.bf16.msra.mxu0 %v6258_v25  ;;  %6273 = vmatpush.bf16.msra.mxu1 %v6258_v25 }
 0x4be   : > { %v6579_v7 = vpop.eup %6578 }
 0x4bf   : > { %v4645_v42 = vmul.f32 %v6579_v7, %v4622_v29  ;;  %v4623_v53 = vadd.f32 1e-05, %v4619_v13  ;;  %v4643_v31 = vsel %vm4642_vm11, %v6577_v62, %v4639_v30  ;;  %vm4651_vm12 = vweird.f32 %v6579_v7 }
 0x4c0   : > { %v4665_v39 = vmul.f32 %v4643_v31, %v9030_v32  ;;  %vm4652_vm15 = vmor %vm4650_vm13, %vm4651_vm12  ;;  %v4704_v43 = vadd.f32 %v4696_v14, %v4688_v4 }
 0x4c1   : > { %v4646_v45 = vmul.f32 %v6579_v7, %v4645_v42  ;;  %6580 = vrsqrt.f32 %v4623_v53  ;;  %vm4660_vm1 = vweird.f32 %v4623_v53 }
 0x4c2   : > { %v4681_v46 = vperm.slane %v4665_v39, 0  ;;  %v4669_v50 = vmul.f32 %v4665_v39, %v9011_v41 }
 0x4c3   : > { %v4647_v60 = vmul.f32 0.5, %v4646_v45 }
 0x4c4   : > { %v4673_v55 = vsub.f32 %v4547_v11, %v4669_v50  ;;  %v4689_v20 = vmul.f32 %v4681_v46, %v8994_v9 }
 0x4c5   : > { %v4648_v23 = vsub.f32 1.5, %v4647_v60 }
 0x4c6   : > { %v4697_v40 = vperm.slane %v4673_v55, 0 }
 0x4c7   : > { %v6581_v17 = vpop.eup %6580  ;;  %v4649_v18 = vmul.f32 %v6579_v7, %v4648_v23 }
 0x4c8   : > { %v4655_v59 = vmul.f32 %v6581_v17, %v4623_v53  ;;  %v4705_v41 = vadd.f32 %v4697_v40, %v4689_v20  ;;  %vm4661_vm0 = vweird.f32 %v6581_v17 }
 0x4c9   : > { %v4653_v22 = vsel %vm4652_vm15, %v6579_v7, %v4649_v18  ;;  %vm4662_vm2 = vmor %vm4660_vm1, %vm4661_vm0 }
 0x4ca   : > { %v4656_v58 = vmul.f32 %v6581_v17, %v4655_v59  ;;  %v4666_v34 = vmul.f32 %v4653_v22, %v9030_v32  ;;  %v4708_v24 = vpack.c.bf16 %v4705_v41, %v4704_v43 }
 0x4cc   : > { %v4657_v35 = vmul.f32 0.5, %v4656_v58  ;;  %4786 = vmatmul.bf16.vlgmr.msra.gmra.mxu0 %v4708_v24  ;;  %v4670_v9 = vmul.f32 %v4666_v34, %v9022_v21  ;;  %v4682_v51 = vperm.slane %v4666_v34, 0 }
 0x4ce   : > { %v4658_v26 = vsub.f32 1.5, %v4657_v35  ;;  %v4674_v6 = vsub.f32 %v4547_v11, %v4670_v9  ;;  %v4690_v0 = vmul.f32 %v4682_v51, %v9004_v1 }
 0x4d0   : > { %v4659_v47 = vmul.f32 %v6581_v17, %v4658_v26  ;;  %v4698_v15 = vperm.slane %v4674_v6, 0 }
 0x4d2   : > { %v4663_v63 = vsel %vm4662_vm2, %v6581_v17, %v4659_v47  ;;  %v4706_v29 = vadd.f32 %v4698_v15, %v4690_v0 }
 0x4d3   : > { %v4667_v8 = vmul.f32 %v4663_v63, %v9030_v32  ;;  %v6419_v32 = vld [vmem:[%s9332_s30] ss:$0 sm:$0xff] }
 0x4d5   : > { %v4683_v28 = vperm.slane %v4667_v8, 0  ;;  %v4671_v38 = vmul.f32 %v4667_v8, %v9032_v19 }
 0x4d7   : > { %v4675_v62 = vsub.f32 %v4547_v11, %v4671_v38  ;;  %v4691_v49 = vmul.f32 %v4683_v28, %v9016_v56 }
 0x4d9   : > { %v4699_v36 = vperm.slane %v4675_v62, 0 }
 0x4db   : > { %v4707_v21 = vadd.f32 %v4699_v36, %v4691_v49 }
 0x4dd   : > { %v4709_v37 = vpack.c.bf16 %v4707_v21, %v4706_v29 }
 0x4df   : > { %4791 = vmatmul.bf16.vlgmr.msra.gmra.mxu1 %v4709_v37 }
 0x549   : > { %v4787_v52 = vpop.f32.mrf.mxu0 }
 0x54a   : > { %v4788_v5 = vadd.f32 %v6419_v32, %v4787_v52 }
 0x54c   : > { %v4801_v2 = vmul.f32 1.442695, %v4788_v5  ;;  %vm4797_vm8 = vcmp.gt.f32.partialorder %v4788_v5, 0.0 }
 0x54e   : > { %6582 = vpow2.f32 %v4801_v2 }
 0x551   : > { %v4789_v19 = vpop.f32.mrf.mxu0 }
 0x552   : > { %v4790_v10 = vadd.f32 %v6419_v32, %v4789_v19 }
 0x554   : > { %v6583_v57 = vpop.eup %6582  ;;  %v4803_v12 = vmul.f32 1.442695, %v4790_v10  ;;  %vm4798_vm9 = vcmp.gt.f32.partialorder %v4790_v10, 0.0 }
 0x555   : > { %v6057_v1 = vadd.f32 -1.0, %v6583_v57 }
 0x556   : > { %6584 = vpow2.f32 %v4803_v12 }
 0x557   : > { %v4813_v56 = vmul.f32 1.6732632, %v6057_v1 }
 0x559   : > { %v4817_v54 = vsel %vm4797_vm8, %v4788_v5, %v4813_v56  ;;  %vm5011_vm8 = vcmask 7168  }
 0x55a   : > { %v9054_v33 = vmul.f32 1.050701, %v4817_v54 }
 0x55c   : > { %v4792_v27 = vpop.f32.mrf.mxu1  ;;  %v6585_v13 = vpop.eup %6584  ;;  %v4827_v44 = vrot.slane %v9054_v33, 4  ;;  %v4851_v7 = vmul.f32 %v9054_v33, %v9054_v33 }
 0x55d   : > { %v4793_v30 = vadd.f32 %v6419_v32, %v4792_v27  ;;  %v6058_v61 = vadd.f32 -1.0, %v6585_v13 }
 0x55e   : > { %v4855_v11 = vrot.slane %v4851_v7, 4  ;;  %v4828_v53 = vadd.f32 %v4827_v44, %v9054_v33 }
 0x55f   : > { %v4805_v42 = vmul.f32 1.442695, %v4793_v30  ;;  %v4814_v31 = vmul.f32 1.6732632, %v6058_v61  ;;  %vm4799_vm4 = vcmp.gt.f32.partialorder %v4793_v30, 0.0 }
 0x560   : > { %v4856_v39 = vadd.f32 %v4855_v11, %v4851_v7  ;;  %v4829_v45 = vrot.slane %v4828_v53, 2 }
 0x561   : > { %6586 = vpow2.f32 %v4805_v42  ;;  %v4818_v3 = vsel %vm4798_vm9, %v4790_v10, %v4814_v31 }
 0x562   : > { %v4857_v48 = vrot.slane %v4856_v39, 2  ;;  %v9060_v16 = vmul.f32 1.050701, %v4818_v3  ;;  %v4830_v46 = vadd.f32 %v4829_v45, %v4828_v53 }
 0x564   : > { %v4794_v60 = vpop.f32.mrf.mxu1  ;;  %v4833_v50 = vrot.slane %v9060_v16, 4  ;;  %v4852_v23 = vmul.f32 %v9060_v16, %v9060_v16  ;;  %v4831_v14 = vrot.slane %v4830_v46, 1  ;;  %v4858_v4 = vadd.f32 %v4857_v48, %v4856_v39 }
 0x565   : > { %v4795_v55 = vadd.f32 %v6419_v32, %v4794_v60 }
 0x566   : > { %v4834_v17 = vadd.f32 %v4833_v50, %v9060_v16  ;;  %v4861_v20 = vrot.slane %v4852_v23, 4  ;;  %v4832_v59 = vadd.f32 %v4831_v14, %v4830_v46  ;;  %v4859_v22 = vrot.slane %v4858_v4, 1 }
 0x567   : > { %v6587_v25 = vpop.eup %6586  ;;  %v4807_v18 = vmul.f32 1.442695, %v4795_v55  ;;  %vm4800_vm6 = vcmp.gt.f32.partialorder %v4795_v55, 0.0 }
 0x568   : > { %v6059_v40 = vadd.f32 -1.0, %v6587_v25  ;;  %v4862_v43 = vadd.f32 %v4861_v20, %v4852_v23  ;;  %v4835_v41 = vrot.slane %v4834_v17, 2  ;;  %v4860_v34 = vadd.f32 %v4859_v22, %v4858_v4 }
 0x569   : > { %6588 = vpow2.f32 %v4807_v18  ;;  %v9066_v24 = vmul.f32 0.125, %v4832_v59 }
 0x56a   : > { %v4815_v58 = vmul.f32 1.6732632, %v6059_v40  ;;  %v4863_v35 = vrot.slane %v4862_v43, 2  ;;  %v4836_v26 = vadd.f32 %v4835_v41, %v4834_v17  ;;  %v4883_v47 = vmul.f32 0.125, %v4860_v34 }
 0x56b   : > { %v4887_v63 = vmul.f32 %v9066_v24, %v9066_v24 }
 0x56c   : > { %v4819_v9 = vsel %vm4799_vm4, %v4793_v30, %v4815_v58  ;;  %v4864_v8 = vadd.f32 %v4863_v35, %v4862_v43  ;;  %v4837_v51 = vrot.slane %v4836_v26, 1 }
 0x56d   : > { %v9070_v6 = vmul.f32 1.050701, %v4819_v9  ;;  %v4891_v28 = vsub.f32 %v4883_v47, %v4887_v63 }
 0x56e   : > { %v4838_v0 = vadd.f32 %v4837_v51, %v4836_v26  ;;  %v4865_v49 = vrot.slane %v4864_v8, 1  ;;  %v9093_v26 = vld [vmem:[%s9333_s24] sm:$0x1] }
 0x56f   : > { %v6589_v38 = vpop.eup %6588  ;;  %v4839_v62 = vrot.slane %v9070_v6, 4  ;;  %v4853_v15 = vmul.f32 %v9070_v6, %v9070_v6  ;;  %v4895_v29 = vmax.f32 %v4891_v28, 0.0 }
 0x570   : > { %v6060_v36 = vadd.f32 -1.0, %v6589_v38  ;;  %v4866_v37 = vadd.f32 %v4865_v49, %v4864_v8  ;;  %v9075_v32 = vmul.f32 0.125, %v4838_v0  ;;  %v9101_v0 = vld [vmem:[%s9334_s16] sm:$0x1] }
 0x571   : > { %v4867_v21 = vrot.slane %v4853_v15, 4  ;;  %v4840_v52 = vadd.f32 %v4839_v62, %v9070_v6  ;;  %v4899_v2 = vadd.f32 1e-05, %v4895_v29 }
 0x572   : > { %v4816_v5 = vmul.f32 1.6732632, %v6060_v36  ;;  %v4884_v10 = vmul.f32 0.125, %v4866_v37  ;;  %v4888_v57 = vmul.f32 %v9075_v32, %v9075_v32 }
 0x573   : > { %v4868_v19 = vadd.f32 %v4867_v21, %v4853_v15  ;;  %v4841_v12 = vrot.slane %v4840_v52, 2  ;;  %6590 = vrsqrt.f32 %v4899_v2  ;;  %vm4909_vm5 = vweird.f32 %v4899_v2 }
 0x574   : > { %v4820_v1 = vsel %vm4800_vm6, %v4795_v55, %v4816_v5  ;;  %v4892_v27 = vsub.f32 %v4884_v10, %v4888_v57 }
 0x575   : > { %v4869_v56 = vrot.slane %v4868_v19, 2  ;;  %v9080_v54 = vmul.f32 1.050701, %v4820_v1  ;;  %v4842_v13 = vadd.f32 %v4841_v12, %v4840_v52  ;;  %v6420_v12 = vld [vmem:[%s9335_s26] ss:$0 sm:$0xff] }
 0x576   : > { %v4896_v30 = vmax.f32 %v4892_v27, 0.0 }
 0x577   : > { %v4845_v44 = vrot.slane %v9080_v54, 4  ;;  %v4854_v7 = vmul.f32 %v9080_v54, %v9080_v54  ;;  %v4843_v61 = vrot.slane %v4842_v13, 1  ;;  %v4870_v11 = vadd.f32 %v4869_v56, %v4868_v19 }
 0x578   : > { %v4900_v31 = vadd.f32 1e-05, %v4896_v30 }
 0x579   : > { %v4846_v42 = vadd.f32 %v4845_v44, %v9080_v54  ;;  %v4873_v53 = vrot.slane %v4854_v7, 4  ;;  %v4844_v39 = vadd.f32 %v4843_v61, %v4842_v13  ;;  %v6591_v45 = vpop.eup %6590  ;;  %v4871_v3 = vrot.slane %v4870_v11, 1 }
 0x57a   : > { %v4904_v46 = vmul.f32 %v6591_v45, %v4899_v2  ;;  %6592 = vrsqrt.f32 %v4900_v31  ;;  %vm4910_vm7 = vweird.f32 %v6591_v45  ;;  %vm4919_vm10 = vweird.f32 %v4900_v31 }
 0x57b   : > { %v4874_v48 = vadd.f32 %v4873_v53, %v4854_v7  ;;  %v4872_v60 = vadd.f32 %v4871_v3, %v4870_v11  ;;  %v9086_v50 = vmul.f32 0.125, %v4844_v39  ;;  %v4847_v23 = vrot.slane %v4846_v42, 2  ;;  %vm4911_vm14 = vmor %vm4909_vm5, %vm4910_vm7 }
 0x57c   : > { %v4905_v14 = vmul.f32 %v6591_v45, %v4904_v46 }
 0x57d   : > { %v4875_v55 = vrot.slane %v4874_v48, 2  ;;  %v4885_v4 = vmul.f32 0.125, %v4872_v60  ;;  %v4889_v25 = vmul.f32 %v9086_v50, %v9086_v50  ;;  %v4848_v17 = vadd.f32 %v4847_v23, %v4846_v42 }
 0x57e   : > { %v4906_v18 = vmul.f32 0.5, %v4905_v14 }
 0x57f   : > { %v4876_v20 = vadd.f32 %v4875_v55, %v4874_v48  ;;  %v4893_v40 = vsub.f32 %v4885_v4, %v4889_v25  ;;  %v4849_v59 = vrot.slane %v4848_v17, 1 }
 0x580   : > { %v6593_v22 = vpop.eup %6592  ;;  %v4907_v43 = vsub.f32 1.5, %v4906_v18 }
 0x581   : > { %v4877_v41 = vrot.slane %v4876_v20, 1  ;;  %v4914_v58 = vmul.f32 %v6593_v22, %v4900_v31  ;;  %v4897_v34 = vmax.f32 %v4893_v40, 0.0  ;;  %v4850_v35 = vadd.f32 %v4849_v59, %v4848_v17 }
 0x582   : > { %v4908_v9 = vmul.f32 %v6591_v45, %v4907_v43  ;;  %vm4920_vm3 = vweird.f32 %v6593_v22 }
 0x583   : > { %v4878_v47 = vadd.f32 %v4877_v41, %v4876_v20  ;;  %v4915_v63 = vmul.f32 %v6593_v22, %v4914_v58  ;;  %v4901_v8 = vadd.f32 1e-05, %v4897_v34  ;;  %v9095_v51 = vmul.f32 0.125, %v4850_v35  ;;  %vm4921_vm11 = vmor %vm4919_vm10, %vm4920_vm3 }
 0x584   : > { %v4912_v28 = vsel %vm4911_vm14, %v6591_v45, %v4908_v9 }
 0x585   : > { %v4886_v38 = vmul.f32 0.125, %v4878_v47  ;;  %v4943_v62 = vmul.f32 %v4912_v28, %v9093_v26  ;;  %v4916_v15 = vmul.f32 0.5, %v4915_v63  ;;  %6594 = vrsqrt.f32 %v4901_v8  ;;  %v6421_v47 = vld [vmem:[#allocation2] ss:$0 sm:$0xff] }
 0x586   : > { %v4890_v49 = vmul.f32 %v9095_v51, %v9095_v51  ;;  %vm4929_vm13 = vweird.f32 %v4901_v8 }
 0x587   : > { %v4947_v36 = vmul.f32 %v4943_v62, %v9066_v24  ;;  %v4959_v29 = vperm.slane %v4943_v62, 0  ;;  %v4917_v21 = vsub.f32 1.5, %v4916_v15 }
 0x588   : > { %v4894_v37 = vsub.f32 %v4886_v38, %v4890_v49 }
 0x589   : > { %v4951_v52 = vsub.f32 %v9101_v0, %v4947_v36  ;;  %v4918_v5 = vmul.f32 %v6593_v22, %v4917_v21  ;;  %v4967_v10 = vmul.f32 %v4959_v29, %v9054_v33 }
 0x58a   : > { %v4898_v2 = vmax.f32 %v4894_v37, 0.0 }
 0x58b   : > { %v6595_v19 = vpop.eup %6594  ;;  %v4975_v57 = vperm.slane %v4951_v52, 0  ;;  %v4922_v1 = vsel %vm4921_vm11, %v6593_v22, %v4918_v5 }
 0x58c   : > { %v4944_v24 = vmul.f32 %v4922_v1, %v9093_v26  ;;  %v4924_v56 = vmul.f32 %v6595_v19, %v4901_v8  ;;  %v4902_v27 = vadd.f32 1e-05, %v4898_v2  ;;  %vm4930_vm12 = vweird.f32 %v6595_v19 }
 0x58d   : > { %v4983_v13 = vadd.f32 %v4975_v57, %v4967_v10  ;;  %vm4931_vm15 = vmor %vm4929_vm13, %vm4930_vm12 }
 0x58e   : > { %v4948_v44 = vmul.f32 %v4944_v24, %v9075_v32  ;;  %v4960_v7 = vperm.slane %v4944_v24, 0  ;;  %v4925_v30 = vmul.f32 %v6595_v19, %v4924_v56  ;;  %6596 = vrsqrt.f32 %v4902_v27 }
 0x58f   : > { %v4991_v61 = vmul.f32 %v6420_v12, %v4983_v13  ;;  %vm4939_vm1 = vweird.f32 %v4902_v27 }
 0x590   : > { %v4952_v11 = vsub.f32 %v9101_v0, %v4948_v44  ;;  %v4926_v33 = vmul.f32 0.5, %v4925_v30  ;;  %v4968_v42 = vmul.f32 %v4960_v7, %v9060_v16 }
 0x591   : > { %4995 = vadd.xlane.f32.xlu0 %v4991_v61 }
 0x592   : > { %v4976_v53 = vperm.slane %v4952_v11, 0  ;;  %v4927_v31 = vsub.f32 1.5, %v4926_v33 }
 0x594   : > { %v6597_v39 = vpop.eup %6596  ;;  %v4984_v45 = vadd.f32 %v4976_v53, %v4968_v42  ;;  %v4928_v3 = vmul.f32 %v6595_v19, %v4927_v31 }
 0x595   : > { %v4934_v48 = vmul.f32 %v6597_v39, %v4902_v27  ;;  %vm4940_vm0 = vweird.f32 %v6597_v39 }
 0x596   : > { %v4992_v32 = vmul.f32 %v6420_v12, %v4984_v45  ;;  %v4932_v46 = vsel %vm4931_vm15, %v6595_v19, %v4928_v3  ;;  %vm4941_vm2 = vmor %vm4939_vm1, %vm4940_vm0 }
 0x597   : > { %v4945_v60 = vmul.f32 %v4932_v46, %v9093_v26  ;;  %v4935_v23 = vmul.f32 %v6597_v39, %v4934_v48 }
 0x599   : > { %4997 = vadd.xlane.f32.xlu0 %v4992_v32  ;;  %v4949_v55 = vmul.f32 %v4945_v60, %v9086_v50  ;;  %v4961_v14 = vperm.slane %v4945_v60, 0  ;;  %v4936_v4 = vmul.f32 0.5, %v4935_v23 }
 0x59b   : > { %v4953_v16 = vsub.f32 %v9101_v0, %v4949_v55  ;;  %v4937_v25 = vsub.f32 1.5, %v4936_v4  ;;  %v4969_v17 = vmul.f32 %v4961_v14, %v9070_v6 }
 0x59d   : > { %v4977_v20 = vperm.slane %v4953_v16, 0  ;;  %v4938_v18 = vmul.f32 %v6597_v39, %v4937_v25 }
 0x59f   : > { %v4985_v40 = vadd.f32 %v4977_v20, %v4969_v17  ;;  %v4942_v59 = vsel %vm4941_vm2, %v6597_v39, %v4938_v18 }
 0x5a0   : > { %v4946_v22 = vmul.f32 %v4942_v59, %v9093_v26 }
 0x5a1   : > { %v4993_v43 = vmul.f32 %v6420_v12, %v4985_v40 }
 0x5a2   : > { %v4950_v50 = vmul.f32 %v4946_v22, %v9095_v51  ;;  %v4962_v41 = vperm.slane %v4946_v22, 0 }
 0x5a3   : > { %4999 = vadd.xlane.f32.xlu1 %v4993_v43 }
 0x5a4   : > { %v4954_v58 = vsub.f32 %v9101_v0, %v4950_v50  ;;  %v4970_v34 = vmul.f32 %v4962_v41, %v9080_v54 }
 0x5a6   : > { %v4978_v35 = vperm.slane %v4954_v58, 0 }
 0x5a8   : > { %v4986_v6 = vadd.f32 %v4978_v35, %v4970_v34 }
 0x5aa   : > { %v4994_v9 = vmul.f32 %v6420_v12, %v4986_v6 }
 0x5ac   : > { %5001 = vadd.xlane.f32.xlu1 %v4994_v9 }
 0x604   : > { %v4996_v26 = vpop.xlane.xlu0 %4995 }
 0x605   : > { %v5007_v63 = vadd.f32 %v6421_v47, %v4996_v26 }
 0x607   : > { %5012 = vst.msk [vmem:[%s890_s23] sm:$0xff] %vm5011_vm8, %v5007_v63 }
 0x60c   : > { %v4998_v8 = vpop.xlane.xlu0 %4997 }
 0x60d   : > { %v5008_v54 = vadd.f32 %v6421_v47, %v4998_v8 }
 0x60f   : > { %5013 = vst.msk [vmem:[%s890_s23 + $0x8] sm:$0xff] %vm5011_vm8, %v5008_v54 }
 0x616   : > { %v5000_v51 = vpop.xlane.xlu1 %4999 }
 0x617   : > { %v5009_v28 = vadd.f32 %v6421_v47, %v5000_v51 }
 0x619   : > { %5014 = vst.msk [vmem:[%s890_s23 + $0x10] sm:$0xff] %vm5011_vm8, %v5009_v28 }
 0x61f   : > { %v5002_v38 = vpop.xlane.xlu1 %5001 }
 0x620   : > { %v5010_v62 = vadd.f32 %v6421_v47, %v5002_v38 }
 0x622   : > { %5015 = vst.msk [vmem:[%s890_s23 + $0x18] sm:$0xff] %vm5011_vm8, %v5010_v62 }
 0x623 PF: > { %p40_p3 = scmp.ge.s32.totalorder %s7228_s6, 4   ;;  %s9338_s24 = smov %s6974_s25 }
 0x624   : > { %s9339_s25 = smov %s6978_s5  ;;  %s9340_s5 = smov %s7239_s21 }
 0x625   : > { %s9341_s1 = smov %s7228_s6  ;;  %42 = sbr.rel (!%p40_p3) target bundleno = 24 (0x18), region = 192 }
 0x62a   :  { %5038 = vsyncpa [#allocation4], 1 }
 0x62b   :  { %5040 = vsyncpa [#allocation4 + $0x1], 1 }
 0x62c   :  { %5041 = vsyncpa [#allocation6], 1 }
 0x62d   :  { %5042 = vsyncpa [#allocation9], 1 }
 0x62e   :  { %5043 = vsyncpa [#allocation12], 1 }
 0x62f   :  { %5044 = vsyncpa [#allocation15], 1 }
 0x630   :  { %5045 = vsyncpa [#allocation18], 1 }

</bundles_post_ra>
